<compile_context>
chip_gen: v5e
topology: v5e:2x2
jax: 0.10.0
libtpu: 0.0.40
codegen_flags: <defaults>
</compile_context>

<pallas_src>
import jax
import jax.numpy as jnp
import numpy as np
from jax.experimental import pallas as pl
from jax.experimental.pallas import tpu as pltpu


# ----------------------------------------------------------------------------- #
# Pallas kernel: one tile of tm rows, full feature width.
# Folded ResidualMLP(14+L -> H -> H -> H -> 6):
#   h   = tanh(x @ (W0+S0) + b0)
#   h   = tanh(h @ (W1+I)  + b1)
#   h   = tanh(h @ (W2+I)  + b2)
#   dyn =      h @ (W3+S3) + b3                      (dt_vel | dt_omega)
# Output assembly (padded to Dpad lanes):
#   [vel(3), quat_exp(omega)(4), dyn(6), zeros(latent + pad)]
# ----------------------------------------------------------------------------- #
def odefunc_kernel(zt_ref, w0, b0, w1, b1, w2, b2, w3, b3, out_ref):
    x = zt_ref[...]          # (tm, 14+L) float32; last column is t
    mdt = w0.dtype           # matmul operand dtype (f32 or bf16), set by the wrapper

    # --- dynamics_net (shortcut-folded ResidualMLP), f32 accumulation ---
    h = jnp.tanh(
        jnp.dot(x.astype(mdt), w0[...], preferred_element_type=jnp.float32) + b0[...]
    )
    h = jnp.tanh(
        jnp.dot(h.astype(mdt), w1[...], preferred_element_type=jnp.float32) + b1[...]
    )
    h = jnp.tanh(
        jnp.dot(h.astype(mdt), w2[...], preferred_element_type=jnp.float32) + b2[...]
    )
    dyn = (
        jnp.dot(h.astype(mdt), w3[...], preferred_element_type=jnp.float32) + b3[...]
    )  # (tm, 6) = [dt_vel(3) | dt_omega(3)]

    # --- quaternion exponential map of omega, vectorized over the 3-wide slab ---
    omega = x[:, 10:13]                                           # (tm, 3)
    theta = jnp.sqrt(jnp.sum(omega * omega, axis=-1, keepdims=True))  # (tm, 1)
    small = theta < 1e-6
    theta_safe = jnp.where(small, jnp.ones_like(theta), theta)
    sin_half = jnp.sin(0.5 * theta_safe)
    cos_half = jnp.cos(0.5 * theta_safe)
    qw = jnp.where(small, jnp.ones_like(cos_half), cos_half)          # (tm, 1)
    factor = jnp.where(small, 0.5, sin_half / (theta_safe + 1e-8))    # (tm, 1)
    qxyz = factor * omega                                             # (tm, 3)

    # --- output assembly: lane-dense zero store, then slice stores ---
    out_ref[...] = jnp.zeros_like(out_ref)   # dt_latent + padding lanes
    out_ref[:, 0:3] = x[:, 7:10]             # dt_pos = velocity part of the state
    out_ref[:, 3:4] = qw
    out_ref[:, 4:7] = qxyz
    out_ref[:, 7:13] = dyn                   # dt_vel, dt_omega


# ----------------------------------------------------------------------------- #
# Wrapper
# ----------------------------------------------------------------------------- #
def ode_func_forward(t, z, params, *, tm_max=2048, use_bf16=False):
    """z: [B, N, 13+L] float32, t: scalar (or [B]) float32. Returns dz/dt [B, N, 13+L].

    use_bf16: feed bf16 operands to the MXU (f32 accumulate / f32 elementwise);
    recommended on v6e/v7x, validate at ~1e-2 tolerance.
    """
    B, N, D = z.shape
    Din = D + 1
    H = params["w1"].shape[0]
    M = B * N

    # glue: build zt = concat([z, t], -1) and flatten rows
    t_exp = jnp.broadcast_to(jnp.reshape(t, (-1, 1, 1)).astype(z.dtype), (B, N, 1))
    zt = jnp.concatenate([z, t_exp], axis=-1).reshape(M, Din)

    # Row tile: as large as VMEM comfortably allows, but keep >= 2 grid steps
    # so both v7x TensorCores get work ("parallel" axis). Per-row VMEM is tiny
    # (~(Din + Dpad + H) * 4 bytes), so tm_max=2048 is well under budget.
    grid_n = min(M, max(2, pl.cdiv(M, tm_max)))
    while M % grid_n:
        grid_n += 1
    tm = M // grid_n
    if tm % 8 != 0:          # (8,128) sublane rule: fall back to a single full tile
        grid_n, tm = 1, M

    # Pad the output feature axis to a multiple of 128 lanes (unmasked vst / DMA).
    Dpad = pl.cdiv(D, 128) * 128

    # Fold shortcuts into the main weights (x@W + x@S == x@(W+S); h@W + h == h@(W+I)).
    eye = jnp.eye(H, dtype=jnp.float32)
    wdt = jnp.bfloat16 if use_bf16 else jnp.float32
    w0f = (params["w0"] + params["s0"]).astype(wdt)
    w1f = (params["w1"] + eye).astype(wdt)
    w2f = (params["w2"] + eye).astype(wdt)
    w3f = (params["w3"] + params["s3"]).astype(wdt)
    b0, b1, b2, b3 = params["b0"], params["b1"], params["b2"], params["b3"]  # f32

    full = lambda r, c: pl.BlockSpec((r, c), lambda i: (0, 0))
    out_pad = pl.pallas_call(
        odefunc_kernel,
        out_shape=jax.ShapeDtypeStruct((M, Dpad), jnp.float32),
        grid_spec=pltpu.PrefetchScalarGridSpec(
            num_scalar_prefetch=0,
            grid=(grid_n,),
            in_specs=[
                pl.BlockSpec((tm, Din), lambda i: (i, 0)),  # zt rows
                full(Din, H), full(1, H),                   # W0+S0, b0
                full(H, H), full(1, H),                     # W1+I,  b1
                full(H, H), full(1, H),                     # W2+I,  b2
                full(H, 6), full(1, 6),                     # W3+S3, b3
            ],
            out_specs=pl.BlockSpec((tm, Dpad), lambda i: (i, 0)),
        ),
        compiler_params=pltpu.CompilerParams(dimension_semantics=("parallel",)),
    )(zt, w0f, b0, w1f, b1, w2f, b2, w3f, b3)

    return out_pad[:, :D].reshape(B, N, D)


# ----------------------------------------------------------------------------- #
# Pure-JAX reference (mirrors the PyTorch forward exactly, unfused weights)
# ----------------------------------------------------------------------------- #
def ode_func_reference(t, z, params):
    B, N, D = z.shape
    t_exp = jnp.broadcast_to(jnp.reshape(t, (-1, 1, 1)).astype(z.dtype), (B, N, 1))
    x = jnp.concatenate([z, t_exp], axis=-1)
    h = jnp.tanh(x @ params["w0"] + params["b0"] + x @ params["s0"])
    h = jnp.tanh(h @ params["w1"] + params["b1"] + h)
    h = jnp.tanh(h @ params["w2"] + params["b2"] + h)
    dyn = h @ params["w3"] + params["b3"] + h @ params["s3"]
    dt_vel, dt_omega = dyn[..., :3], dyn[..., 3:6]
    dt_pos = z[..., 7:10]
    omega = z[..., 10:13]
    theta = jnp.linalg.norm(omega, axis=-1, keepdims=True)
    small = theta < 1e-6
    ts = jnp.where(small, jnp.ones_like(theta), theta)
    sh, ch = jnp.sin(0.5 * ts), jnp.cos(0.5 * ts)
    on = omega / (ts + 1e-8)
    quat = jnp.concatenate([ch, sh * on], -1)
    quat = jnp.where(
        jnp.broadcast_to(small, quat.shape),
        jnp.concatenate([jnp.ones_like(ch), 0.5 * omega], -1),
        quat,
    )
    dt_latent = jnp.zeros_like(z[..., 13:])
    return jnp.concatenate([dt_pos, quat, dt_vel, dt_omega, dt_latent], -1)


# ----------------------------------------------------------------------------- #
# Deterministic parameter init (synthetic; shapes from ResidualMLP(14+L, 6, H, 4))
# ----------------------------------------------------------------------------- #
def init_params(key, latent_dim, hidden_dim):
    Din = 13 + latent_dim + 1
    H = hidden_dim
    ks = jax.random.split(key, 9)
    scale = 0.1
    return {
        "w0": scale * jax.random.normal(ks[0], (Din, H), jnp.float32),
        "b0": scale * jax.random.normal(ks[1], (1, H), jnp.float32),
        "s0": scale * jax.random.normal(ks[2], (Din, H), jnp.float32),
        "w1": scale * jax.random.normal(ks[3], (H, H), jnp.float32),
        "b1": scale * jax.random.normal(ks[4], (1, H), jnp.float32),
        "w2": scale * jax.random.normal(ks[5], (H, H), jnp.float32),
        "b2": scale * jax.random.normal(ks[6], (1, H), jnp.float32),
        "w3": scale * jax.random.normal(ks[7], (H, 6), jnp.float32),
        "b3": jnp.zeros((1, 6), jnp.float32),
        "s3": scale * jax.random.normal(ks[8], (H, 6), jnp.float32),
    }


if __name__ == "__main__":
    # small shapes consistent with the module: z = [B, N, 13 + latent_dim]
    B, N, latent_dim, hidden_dim = 2, 128, 32, 64
    D = 13 + latent_dim

    key = jax.random.PRNGKey(0)
    kz, kt, kp = jax.random.split(key, 3)
    z = jax.random.normal(kz, (B, N, D), jnp.float32)
    # make a few rows have near-zero omega to exercise the small-angle branch
    z = z.at[0, :4, 10:13].set(1e-8)
    t = jnp.asarray(0.37, jnp.float32)
    params = init_params(kp, latent_dim, hidden_dim)

    ref = jax.block_until_ready(ode_func_reference(t, z, params))

    # f32 MXU operands: exact path, tight tolerance
    out_f32 = jax.block_until_ready(ode_func_forward(t, z, params, use_bf16=False))
    assert out_f32.shape == (B, N, D)
    np.testing.assert_allclose(np.asarray(out_f32), np.asarray(ref), rtol=1e-5, atol=1e-5)

    # bf16 MXU operands (v6e/v7x fast path): f32 accumulate, looser tolerance
    out_bf16 = jax.block_until_ready(ode_func_forward(t, z, params, use_bf16=True))
    np.testing.assert_allclose(np.asarray(out_bf16), np.asarray(ref), rtol=3e-2, atol=3e-2)

    # TODO(synk): vel_norm / omega_norm (regularization stats) and the nfe counter are
    # Python-side / unused-in-output state in the PyTorch module and are not emitted.
    print("KERNEL_OK")
</pallas_src>

<mosaic_0001>
module attributes {stable_mosaic.version = 11 : i64} {
  func.func @odefunc_kernel(%arg0: i32, %arg1: memref<128x46xf32, #tpu.memory_space<vmem>>, %arg2: memref<46x64xf32, #tpu.memory_space<vmem>>, %arg3: memref<1x64xf32, #tpu.memory_space<vmem>>, %arg4: memref<64x64xf32, #tpu.memory_space<vmem>>, %arg5: memref<1x64xf32, #tpu.memory_space<vmem>>, %arg6: memref<64x64xf32, #tpu.memory_space<vmem>>, %arg7: memref<1x64xf32, #tpu.memory_space<vmem>>, %arg8: memref<64x6xf32, #tpu.memory_space<vmem>>, %arg9: memref<1x6xf32, #tpu.memory_space<vmem>>, %arg10: memref<128x128xf32, #tpu.memory_space<vmem>>) attributes {dimension_semantics = [#tpu.dimension_semantics<parallel>], iteration_bounds = array<i64: 2>, scalar_prefetch = 0 : i64, scratch_operands = 0 : i64, tpu.core_type = #tpu.core_type<tc>, window_params = [{transform_indices = @transform_0, window_bounds = array<i64: 128, 46>}, {pipeline_mode = #tpu.pipeline_mode<synchronous>, transform_indices = @transform_1, window_bounds = array<i64: 46, 64>}, {pipeline_mode = #tpu.pipeline_mode<synchronous>, transform_indices = @transform_2, window_bounds = array<i64: 1, 64>}, {pipeline_mode = #tpu.pipeline_mode<synchronous>, transform_indices = @transform_3, window_bounds = array<i64: 64, 64>}, {pipeline_mode = #tpu.pipeline_mode<synchronous>, transform_indices = @transform_4, window_bounds = array<i64: 1, 64>}, {pipeline_mode = #tpu.pipeline_mode<synchronous>, transform_indices = @transform_5, window_bounds = array<i64: 64, 64>}, {pipeline_mode = #tpu.pipeline_mode<synchronous>, transform_indices = @transform_6, window_bounds = array<i64: 1, 64>}, {pipeline_mode = #tpu.pipeline_mode<synchronous>, transform_indices = @transform_7, window_bounds = array<i64: 64, 6>}, {pipeline_mode = #tpu.pipeline_mode<synchronous>, transform_indices = @transform_8, window_bounds = array<i64: 1, 6>}, {transform_indices = @transform_9, window_bounds = array<i64: 128, 128>}]} {
    %c0 = arith.constant 0 : index
    %c0_0 = arith.constant 0 : index
    %0 = vector.load %arg1[%c0, %c0_0] : memref<128x46xf32, #tpu.memory_space<vmem>>, vector<128x46xf32>
    %c0_1 = arith.constant 0 : index
    %c0_2 = arith.constant 0 : index
    %1 = vector.load %arg2[%c0_1, %c0_2] : memref<46x64xf32, #tpu.memory_space<vmem>>, vector<46x64xf32>
    %cst = arith.constant dense<0.000000e+00> : vector<128x64xf32>
    %2 = tpu.matmul %0, %1, %cst {dimension_numbers = #tpu.dot_dimension_numbers<[1], [0], [0], [1], [0, 0, 1, 1], [], []>} : vector<128x46xf32>, vector<46x64xf32>, vector<128x64xf32> -> vector<128x64xf32>
    %c0_3 = arith.constant 0 : index
    %c0_4 = arith.constant 0 : index
    %3 = vector.load %arg3[%c0_3, %c0_4] : memref<1x64xf32, #tpu.memory_space<vmem>>, vector<1x64xf32>
    %4 = vector.broadcast %3 : vector<1x64xf32> to vector<128x64xf32>
    %5 = arith.addf %2, %4 : vector<128x64xf32>
    %6 = math.tanh %5 : vector<128x64xf32>
    %c0_5 = arith.constant 0 : index
    %c0_6 = arith.constant 0 : index
    %7 = vector.load %arg4[%c0_5, %c0_6] : memref<64x64xf32, #tpu.memory_space<vmem>>, vector<64x64xf32>
    %cst_7 = arith.constant dense<0.000000e+00> : vector<128x64xf32>
    %8 = tpu.matmul %6, %7, %cst_7 {dimension_numbers = #tpu.dot_dimension_numbers<[1], [0], [0], [1], [0, 0, 1, 1], [], []>} : vector<128x64xf32>, vector<64x64xf32>, vector<128x64xf32> -> vector<128x64xf32>
    %c0_8 = arith.constant 0 : index
    %c0_9 = arith.constant 0 : index
    %9 = vector.load %arg5[%c0_8, %c0_9] : memref<1x64xf32, #tpu.memory_space<vmem>>, vector<1x64xf32>
    %10 = vector.broadcast %9 : vector<1x64xf32> to vector<128x64xf32>
    %11 = arith.addf %8, %10 : vector<128x64xf32>
    %12 = math.tanh %11 : vector<128x64xf32>
    %c0_10 = arith.constant 0 : index
    %c0_11 = arith.constant 0 : index
    %13 = vector.load %arg6[%c0_10, %c0_11] : memref<64x64xf32, #tpu.memory_space<vmem>>, vector<64x64xf32>
    %cst_12 = arith.constant dense<0.000000e+00> : vector<128x64xf32>
    %14 = tpu.matmul %12, %13, %cst_12 {dimension_numbers = #tpu.dot_dimension_numbers<[1], [0], [0], [1], [0, 0, 1, 1], [], []>} : vector<128x64xf32>, vector<64x64xf32>, vector<128x64xf32> -> vector<128x64xf32>
    %c0_13 = arith.constant 0 : index
    %c0_14 = arith.constant 0 : index
    %15 = vector.load %arg7[%c0_13, %c0_14] : memref<1x64xf32, #tpu.memory_space<vmem>>, vector<1x64xf32>
    %16 = vector.broadcast %15 : vector<1x64xf32> to vector<128x64xf32>
    %17 = arith.addf %14, %16 : vector<128x64xf32>
    %18 = math.tanh %17 : vector<128x64xf32>
    %c0_15 = arith.constant 0 : index
    %c0_16 = arith.constant 0 : index
    %19 = vector.load %arg8[%c0_15, %c0_16] : memref<64x6xf32, #tpu.memory_space<vmem>>, vector<64x6xf32>
    %cst_17 = arith.constant dense<0.000000e+00> : vector<128x6xf32>
    %20 = tpu.matmul %18, %19, %cst_17 {dimension_numbers = #tpu.dot_dimension_numbers<[1], [0], [0], [1], [0, 0, 1, 1], [], []>} : vector<128x64xf32>, vector<64x6xf32>, vector<128x6xf32> -> vector<128x6xf32>
    %c0_18 = arith.constant 0 : index
    %c0_19 = arith.constant 0 : index
    %21 = vector.load %arg9[%c0_18, %c0_19] : memref<1x6xf32, #tpu.memory_space<vmem>>, vector<1x6xf32>
    %22 = vector.broadcast %21 : vector<1x6xf32> to vector<128x6xf32>
    %23 = arith.addf %20, %22 : vector<128x6xf32>
    %24 = vector.extract_strided_slice %0 {offsets = [0, 10], sizes = [128, 3], strides = [1, 1]} : vector<128x46xf32> to vector<128x3xf32>
    %25 = arith.mulf %24, %24 : vector<128x3xf32>
    %cst_20 = arith.constant dense<0.000000e+00> : vector<128xf32>
    %26 = vector.multi_reduction <add>, %25, %cst_20 [1] : vector<128x3xf32> to vector<128xf32>
    %27 = vector.shape_cast %26 : vector<128xf32> to vector<128x1xf32>
    %28 = math.sqrt %27 : vector<128x1xf32>
    %cst_21 = arith.constant 9.99999997E-7 : f32
    %29 = vector.broadcast %cst_21 : f32 to vector<128x1xf32>
    %30 = arith.cmpf olt, %28, %29 : vector<128x1xf32>
    %cst_22 = arith.constant 1.000000e+00 : f32
    %31 = vector.broadcast %cst_22 : f32 to vector<128x1xf32>
    %32 = arith.select %30, %31, %28 : vector<128x1xi1>, vector<128x1xf32>
    %cst_23 = arith.constant 5.000000e-01 : f32
    %33 = vector.broadcast %cst_23 : f32 to vector<128x1xf32>
    %34 = arith.mulf %33, %32 : vector<128x1xf32>
    %35 = math.sin %34 : vector<128x1xf32>
    %cst_24 = arith.constant 5.000000e-01 : f32
    %36 = vector.broadcast %cst_24 : f32 to vector<128x1xf32>
    %37 = arith.mulf %36, %32 : vector<128x1xf32>
    %38 = math.cos %37 : vector<128x1xf32>
    %cst_25 = arith.constant 1.000000e+00 : f32
    %39 = vector.broadcast %cst_25 : f32 to vector<128x1xf32>
    %40 = arith.select %30, %39, %38 : vector<128x1xi1>, vector<128x1xf32>
    %cst_26 = arith.constant 9.99999993E-9 : f32
    %41 = vector.broadcast %cst_26 : f32 to vector<128x1xf32>
    %42 = arith.addf %32, %41 : vector<128x1xf32>
    %43 = arith.divf %35, %42 : vector<128x1xf32>
    %cst_27 = arith.constant 5.000000e-01 : f32
    %44 = vector.broadcast %cst_27 : f32 to vector<128x1xf32>
    %45 = arith.select %30, %44, %43 : vector<128x1xi1>, vector<128x1xf32>
    %46 = vector.broadcast %45 : vector<128x1xf32> to vector<128x3xf32>
    %47 = arith.mulf %46, %24 : vector<128x3xf32>
    %cst_28 = arith.constant 0.000000e+00 : f32
    %48 = vector.broadcast %cst_28 : f32 to vector<128x128xf32>
    %c0_29 = arith.constant 0 : index
    %c0_30 = arith.constant 0 : index
    %49 = vector.load %arg10[%c0_29, %c0_30] : memref<128x128xf32, #tpu.memory_space<vmem>>, vector<128x128xf32>
    tpu.vector_store %arg10[%c0_29, %c0_30], %48 {strides = array<i32>} : memref<128x128xf32, #tpu.memory_space<vmem>>, vector<128x128xf32>,
    %50 = vector.extract_strided_slice %0 {offsets = [0, 7], sizes = [128, 3], strides = [1, 1]} : vector<128x46xf32> to vector<128x3xf32>
    %c0_31 = arith.constant 0 : index
    %c0_32 = arith.constant 0 : index
    %51 = vector.load %arg10[%c0_31, %c0_32] : memref<128x128xf32, #tpu.memory_space<vmem>>, vector<128x3xf32>
    tpu.vector_store %arg10[%c0_31, %c0_32], %50 {strides = array<i32>} : memref<128x128xf32, #tpu.memory_space<vmem>>, vector<128x3xf32>,
    %c0_33 = arith.constant 0 : index
    %c3 = arith.constant 3 : index
    %52 = vector.load %arg10[%c0_33, %c3] : memref<128x128xf32, #tpu.memory_space<vmem>>, vector<128x1xf32>
    tpu.vector_store %arg10[%c0_33, %c3], %40 {strides = array<i32>} : memref<128x128xf32, #tpu.memory_space<vmem>>, vector<128x1xf32>,
    %c0_34 = arith.constant 0 : index
    %c4 = arith.constant 4 : index
    %53 = vector.load %arg10[%c0_34, %c4] : memref<128x128xf32, #tpu.memory_space<vmem>>, vector<128x3xf32>
    tpu.vector_store %arg10[%c0_34, %c4], %47 {strides = array<i32>} : memref<128x128xf32, #tpu.memory_space<vmem>>, vector<128x3xf32>,
    %c0_35 = arith.constant 0 : index
    %c7 = arith.constant 7 : index
    %54 = vector.load %arg10[%c0_35, %c7] : memref<128x128xf32, #tpu.memory_space<vmem>>, vector<128x6xf32>
    tpu.vector_store %arg10[%c0_35, %c7], %23 {strides = array<i32>} : memref<128x128xf32, #tpu.memory_space<vmem>>, vector<128x6xf32>,
    return
  }
  func.func @transform_0(%arg0: i32) -> (i32, i32) {
    %c0_i32 = arith.constant 0 : i32
    %c0_i32_0 = arith.constant 0 : i32
    return %arg0, %c0_i32 : i32, i32
  }
  func.func @transform_1(%arg0: i32) -> (i32, i32) {
    %c0_i32 = arith.constant 0 : i32
    %c0_i32_0 = arith.constant 0 : i32
    %c0_i32_1 = arith.constant 0 : i32
    return %c0_i32, %c0_i32_0 : i32, i32
  }
  func.func @transform_2(%arg0: i32) -> (i32, i32) {
    %c0_i32 = arith.constant 0 : i32
    %c0_i32_0 = arith.constant 0 : i32
    %c0_i32_1 = arith.constant 0 : i32
    return %c0_i32, %c0_i32_0 : i32, i32
  }
  func.func @transform_3(%arg0: i32) -> (i32, i32) {
    %c0_i32 = arith.constant 0 : i32
    %c0_i32_0 = arith.constant 0 : i32
    %c0_i32_1 = arith.constant 0 : i32
    return %c0_i32, %c0_i32_0 : i32, i32
  }
  func.func @transform_4(%arg0: i32) -> (i32, i32) {
    %c0_i32 = arith.constant 0 : i32
    %c0_i32_0 = arith.constant 0 : i32
    %c0_i32_1 = arith.constant 0 : i32
    return %c0_i32, %c0_i32_0 : i32, i32
  }
  func.func @transform_5(%arg0: i32) -> (i32, i32) {
    %c0_i32 = arith.constant 0 : i32
    %c0_i32_0 = arith.constant 0 : i32
    %c0_i32_1 = arith.constant 0 : i32
    return %c0_i32, %c0_i32_0 : i32, i32
  }
  func.func @transform_6(%arg0: i32) -> (i32, i32) {
    %c0_i32 = arith.constant 0 : i32
    %c0_i32_0 = arith.constant 0 : i32
    %c0_i32_1 = arith.constant 0 : i32
    return %c0_i32, %c0_i32_0 : i32, i32
  }
  func.func @transform_7(%arg0: i32) -> (i32, i32) {
    %c0_i32 = arith.constant 0 : i32
    %c0_i32_0 = arith.constant 0 : i32
    %c0_i32_1 = arith.constant 0 : i32
    return %c0_i32, %c0_i32_0 : i32, i32
  }
  func.func @transform_8(%arg0: i32) -> (i32, i32) {
    %c0_i32 = arith.constant 0 : i32
    %c0_i32_0 = arith.constant 0 : i32
    %c0_i32_1 = arith.constant 0 : i32
    return %c0_i32, %c0_i32_0 : i32, i32
  }
  func.func @transform_9(%arg0: i32) -> (i32, i32) {
    %c0_i32 = arith.constant 0 : i32
    %c0_i32_0 = arith.constant 0 : i32
    return %arg0, %c0_i32 : i32, i32
  }
}

</mosaic_0001>

<bundles_post_ra>
// kernel: tpu_custom_call.1
= control target key start
LH: loop header
LB: loop body
LE: loop exit
PB: predicated region body
PF: predicated region fallthrough
CT: control target
= control target key end

     0   :  { %14 = vsyncpa [#allocation3], 0  ;;  %s11223_s0 = inlined_call_operand.vmem [shape: f32[256,46], index: 0, kind: input, shape index: {}]   ;;  %s11224_s1 = inlined_call_operand.vmem [shape: f32[46,64], index: 1, kind: input, shape index: {}]   ;;  %s11225_s2 = inlined_call_operand.vmem [shape: f32[1,64], index: 2, kind: input, shape index: {}]   ;;  %s11226_s3 = inlined_call_operand.vmem [shape: f32[64,64], index: 3, kind: input, shape index: {}]   ;;  %s11227_s4 = inlined_call_operand.vmem [shape: f32[1,64], index: 4, kind: input, shape index: {}]   ;;  %s11228_s5 = inlined_call_operand.vmem [shape: f32[64,64], index: 5, kind: input, shape index: {}]   ;;  %s11229_s6 = inlined_call_operand.vmem [shape: f32[1,64], index: 6, kind: input, shape index: {}]   ;;  %s11230_s7 = inlined_call_operand.vmem [shape: f32[64,6], index: 7, kind: input, shape index: {}]   ;;  %s11231_s8 = inlined_call_operand.vmem [shape: f32[1,6], index: 8, kind: input, shape index: {}]   ;;  %s11232_s9 = inlined_call_operand.hbm [shape: f32[256,128], index: 9, kind: output, shape index: {}]  }
   0x1   :  { %16 = vsyncpa [#allocation3 + $0x1], 0  ;;  %s7394_s30 = smov 0   ;;  %s7396_s10 = smov 0  }
   0x2   :  { %s7398_s11 = smov 0   ;;  %s7400_s12 = smov 0  }
   0x3 LB: > { %s7415_s13 = sadd.s32 4294967295, %s7328_s12   ;;  %s6856_s14 = sadd.s32 4294967294, %s7328_s12   ;;  %s7328_s12 = sphi %s7400_s12, %s11451_s12   ;;  %s7324_s11 = sphi %s7398_s11, %s11450_s11   ;;  %s7320_s10 = sphi %s7396_s10, %s11449_s10   ;;  %s7316_s30 = sphi %s7394_s30, %s11448_s30  }
   0x4   : > { %s7419_s15 = sadd.s32 1, %s7328_s12   ;;  %s223_s16 = sadd.s32 1, %s7324_s11 }
   0x5   : > { %s220_s17 = ssub.s32 %s7328_s12, %s7419_s15  ;;  %p233_p0 = scmp.ne.s32.totalorder %s7324_s11, %s7320_s10 }
   0x6   : > { %p221_p1 = scmp.eq.s32.totalorder %s220_s17, 0  ;;  %p234_p2 = scmp.eq.s32.totalorder %s7415_s13, 1 }
   0x7   : > { %p239_p3 = scmp.ne.s32.totalorder %s7320_s10, %s7316_s30  ;;  %p240_p4 = scmp.eq.s32.totalorder %s6856_s14, 1 }
   0x8   : > { %s7430_s18 = scalar_select %p221_p1, %s7324_s11, %s223_s16  }
   0x9   : > { %p7432_p5 = por %p234_p2, %p233_p0  ;;  %p7436_p6 = por %p240_p4, %p239_p3 }
   0xa   : > { %p6859_p7 = scmp.ge.s32.totalorder %s7328_s12, 1  ;;  %p291_p8 = scmp.lt.s32.totalorder %s7328_s12, 3 }
   0xc   : > { %p292_p9 = pnand %p6859_p7, %p291_p8 }
   0xe   : > { %295 = sbr.rel (%p292_p9) target bundleno = 1376 (0x560), region = 56 }
  0x13   : > { %v355_v0 = vld [vmem:[%s11224_s1 + $0x28] sm:$0x3f]  ;;  %vm409_vm0 = vcmask 1045504   ;;  %v354_v1 = vld [vmem:[%s11224_s1 + $0x20] sm:$0xff]  ;;  %s6861_s25 = sshll.u32 %s7415_s13, 4  ;;  %v353_v2 = vld [vmem:[%s11224_s1 + $0x18] sm:$0xff] }
  0x14   : > { %6863 = vmatpush.msk.msra.mxu0 %vm409_vm0, %v355_v0  ;;  %p328_p10 = scmp.lt.s32.totalorder %s6861_s25, 31  ;;  %v352_v3 = vld [vmem:[%s11224_s1 + $0x10] sm:$0xff]  ;;  %v351_v4 = vld [vmem:[%s11224_s1 + $0x8] sm:$0xff]  ;;  %v350_v5 = vld [vmem:[%s11224_s1] sm:$0xff]  ;;  %vm360_vm1 = vcmask 375808   ;;  %vm506_vm2 = vcmask 523264  }
  0x15   : > { %v501_v22 = vld [vmem:[%s11226_s3 + $0x38] sm:$0xff]  ;;  %v500_v23 = vld [vmem:[%s11226_s3 + $0x30] sm:$0xff]  ;;  %v499_v24 = vld [vmem:[%s11226_s3 + $0x28] sm:$0xff]  ;;  %vm11246_vm3 = vcmask 23552   ;;  %s7331_s29 = smov 121   ;;  %s324_s28 = sand.u32 1, %s7320_s10  }
  0x16   : > { %424 = vmatpush.msra.mxu0 %v354_v1  ;;  %s11453_s25 = smov (!%p328_p10, %s6861_s25), 31  ;;  %563 = vmatpush.msra.mxu1 %v501_v22  ;;  %v498_v28 = vld [vmem:[%s11226_s3 + $0x20] sm:$0xff]  ;;  %v497_v29 = vld [vmem:[%s11226_s3 + $0x18] sm:$0xff]  ;;  %v496_v30 = vld [vmem:[%s11226_s3 + $0x10] sm:$0xff]  ;;  %s7340_s16 = smov 122  }
  0x17   : > { %s6862_s14 = sshll.u32 %s11453_s25, 3  ;;  %s7330_s25 = smov 118   ;;  %v495_v33 = vld [vmem:[%s11226_s3 + $0x8] sm:$0xff]  ;;  %v494_v35 = vld [vmem:[%s11226_s3] sm:$0xff] }
  0x18   : > { %425 = vmatpush.msra.mxu0 %v353_v2  ;;  %s7461_s23 = scalar_lea.vmem %s11223_s0, %s6862_s14  ;;  %564 = vmatpush.msra.mxu1 %v500_v23  ;;  %v7616_v45 = vld [vmem:[%s11225_s2] ss:$0 sm:$0xff]  ;;  %s7341_s17 = smov 7  }
  0x19   : > { %v7467_v6 = vld [vmem:[%s7461_s23] sm:$0xff]  ;;  %v7472_v7 = vld [vmem:[%s7461_s23 + $0x8] sm:$0xff]  ;;  %v7477_v8 = vld [vmem:[%s7461_s23 + $0x10] sm:$0xff]  ;;  %s6779_s26 = scalar_lea.sflag [#allocation3], %s324_s28 }
  0x1a   : > { %426 = vmatpush.msra.mxu0 %v352_v3  ;;  %v7482_v9 = vld [vmem:[%s7461_s23 + $0x18] sm:$0xff]  ;;  %v7487_v10 = vld [vmem:[%s7461_s23 + $0x20] sm:$0xff]  ;;  %v7492_v11 = vld [vmem:[%s7461_s23 + $0x28] sm:$0xff]  ;;  %v902_v14 = vmul.f32 %v7467_v6, %v7467_v6  ;;  %v904_v16 = vmul.f32 %v7477_v8, %v7477_v8  ;;  %v903_v17 = vmul.f32 %v7472_v7, %v7472_v7  ;;  %565 = vmatpush.msra.mxu1 %v499_v24 }
  0x1b   : > { %v7497_v12 = vld [vmem:[%s7461_s23 + $0x30] sm:$0xff]  ;;  %v7502_v13 = vld [vmem:[%s7461_s23 + $0x38] sm:$0xff]  ;;  %v7510_v15 = vld [vmem:[%s7461_s23 + $0x40] sm:$0xff]  ;;  %v905_v19 = vmul.f32 %v7482_v9, %v7482_v9  ;;  %v906_v31 = vmul.f32 %v7487_v10, %v7487_v10  ;;  %v907_v37 = vmul.f32 %v7492_v11, %v7492_v11 }
  0x1c   : > { %427 = vmatpush.msra.mxu0 %v351_v4  ;;  %934 = vrot.lane.b32.xlu0 %v902_v14, %s7330_s25  ;;  %v7521_v18 = vld [vmem:[%s7461_s23 + $0x48] sm:$0xff]  ;;  %v7529_v20 = vld [vmem:[%s7461_s23 + $0x50] sm:$0xff]  ;;  %v908_v21 = vmul.f32 %v7497_v12, %v7497_v12  ;;  %v7546_v25 = vld [vmem:[%s7461_s23 + $0x58] sm:$0xff]  ;;  %v909_v38 = vmul.f32 %v7502_v13, %v7502_v13  ;;  %v910_v41 = vmul.f32 %v7510_v15, %v7510_v15 }
  0x1d   : > { %938 = vrot.lane.b32.xlu1 %v904_v16, %s7330_s25  ;;  %v911_v26 = vmul.f32 %v7521_v18, %v7521_v18  ;;  %v7554_v27 = vld [vmem:[%s7461_s23 + $0x60] sm:$0xff]  ;;  %566 = vmatpush.msra.mxu1 %v498_v28  ;;  %v7577_v34 = vld [vmem:[%s7461_s23 + $0x68] sm:$0xff]  ;;  %v7583_v36 = vld [vmem:[%s7461_s23 + $0x78] sm:$0xff]  ;;  %v912_v42 = vmul.f32 %v7529_v20, %v7529_v20  ;;  %v913_v43 = vmul.f32 %v7546_v25, %v7546_v25 }
  0x1e   : > { %428 = vmatpush.msra.mxu0 %v350_v5  ;;  %v914_v32 = vmul.f32 %v7554_v27, %v7554_v27  ;;  %942 = vrot.lane.b32.xlu2 %v906_v31, %s7330_s25  ;;  %v917_v39 = vmul.f32 %v7583_v36, %v7583_v36  ;;  %v7597_v40 = vld [vmem:[%s7461_s23 + $0x70] sm:$0xff]  ;;  %v915_v44 = vmul.f32 %v7577_v34, %v7577_v34 }
  0x1f   : > { %6864 = vmatmul.msk.f32.vlgmr.msra.gmra.mxu0 %vm360_vm1, %v7467_v6  ;;  %567 = vmatpush.msra.mxu1 %v497_v29  ;;  %v916_v48 = vmul.f32 %v7597_v40, %v7597_v40 }
  0x21   : > { %568 = vmatpush.msra.mxu1 %v496_v30 }
  0x23   : > { %569 = vmatpush.msra.mxu1 %v495_v33 }
  0x24   : > { %936 = vrot.lane.b32.xlu0 %v903_v17, %s7330_s25 }
  0x25   : > { %940 = vrot.lane.b32.xlu1 %v905_v19, %s7330_s25  ;;  %570 = vmatpush.msra.mxu1 %v494_v35 }
  0x26   : > { %944 = vrot.lane.b32.xlu2 %v907_v37, %s7330_s25 }
  0x27   : > { %6865 = vmatmul.msk.f32.gmra.mxu0 %vm360_vm1, %v7472_v7 }
  0x2c   : > { %946 = vrot.lane.b32.xlu0 %v908_v21, %s7330_s25 }
  0x2d   : > { %948 = vrot.lane.b32.xlu1 %v909_v38, %s7330_s25 }
  0x2e   : > { %950 = vrot.lane.b32.xlu2 %v910_v41, %s7330_s25 }
  0x2f   : > { %6866 = vmatmul.msk.f32.gmra.mxu0 %vm360_vm1, %v7477_v8 }
  0x34   : > { %952 = vrot.lane.b32.xlu0 %v911_v26, %s7330_s25 }
  0x35   : > { %954 = vrot.lane.b32.xlu1 %v912_v42, %s7330_s25 }
  0x36   : > { %956 = vrot.lane.b32.xlu2 %v913_v43, %s7330_s25 }
  0x37   : > { %6867 = vmatmul.msk.f32.gmra.mxu0 %vm360_vm1, %v7482_v9 }
  0x3c   : > { %958 = vrot.lane.b32.xlu0 %v914_v32, %s7330_s25 }
  0x3d   : > { %960 = vrot.lane.b32.xlu1 %v915_v44, %s7330_s25 }
  0x3e   : > { %962 = vrot.lane.b32.xlu2 %v916_v48, %s7330_s25 }
  0x3f   : > { %6868 = vmatmul.msk.f32.gmra.mxu0 %vm360_vm1, %v7487_v10 }
  0x44   : > { %964 = vrot.lane.b32.xlu0 %v917_v39, %s7330_s25 }
  0x47   : > { %6869 = vmatmul.msk.f32.gmra.mxu0 %vm360_vm1, %v7492_v11 }
  0x4f   : > { %6870 = vmatmul.msk.f32.gmra.mxu0 %vm360_vm1, %v7497_v12 }
  0x57   : > { %6871 = vmatmul.msk.f32.gmra.mxu0 %vm360_vm1, %v7502_v13 }
  0x5f   : > { %6872 = vmatmul.msk.f32.gmra.mxu0 %vm360_vm1, %v7510_v15 }
  0x67   : > { %6873 = vmatmul.msk.f32.gmra.mxu0 %vm360_vm1, %v7521_v18 }
  0x6f   : > { %6874 = vmatmul.msk.f32.gmra.mxu0 %vm360_vm1, %v7529_v20 }
  0x77   : > { %6875 = vmatmul.msk.f32.gmra.mxu0 %vm360_vm1, %v7546_v25 }
  0x78   : > { %v943_v23 = vpop.permute.xlu2 %942 }
  0x79   : > { %v995_v30 = vsel %vm11246_vm3, %v943_v23, 0.0  ;;  %v638_v23 = vld [vmem:[%s11228_s5 + $0x10] sm:$0xff] }
  0x7f   : > { %6876 = vmatmul.msk.f32.gmra.mxu0 %vm360_vm1, %v7554_v27 }
  0x80   : > { %v945_v32 = vpop.permute.xlu2 %944 }
  0x81   : > { %v998_v39 = vsel %vm11246_vm3, %v945_v32, 0.0 }
  0x87   : > { %6877 = vmatmul.msk.f32.gmra.mxu0 %vm360_vm1, %v7577_v34 }
  0x88   : > { %v951_v42 = vpop.permute.xlu2 %950 }
  0x89   : > { %v1007_v48 = vsel %vm11246_vm3, %v951_v42, 0.0 }
  0x8e   : > { %v935_v0 = vpop.permute.xlu0 %934 }
  0x8f   : > { %6878 = vmatmul.msk.f32.gmra.mxu0 %vm360_vm1, %v7597_v40  ;;  %v983_v4 = vsel %vm11246_vm3, %v935_v0, 0.0  ;;  %v939_v5 = vpop.permute.xlu1 %938 }
  0x90   : > { %984 = vadd.xlane.f32.xlu1 %v983_v4  ;;  %v989_v21 = vsel %vm11246_vm3, %v939_v5, 0.0  ;;  %v640_v5 = vld [vmem:[%s11228_s5 + $0x20] sm:$0xff] }
  0x91   : > { %990 = vadd.xlane.f32.xlu0 %v989_v21  ;;  %v639_v21 = vld [vmem:[%s11228_s5 + $0x18] sm:$0xff] }
  0x96   : > { %v937_v14 = vpop.permute.xlu0 %936 }
  0x97   : > { %6879 = vmatmul.msk.f32.gmra.mxu0 %vm360_vm1, %v7583_v36  ;;  %v986_v22 = vsel %vm11246_vm3, %v937_v14, 0.0  ;;  %v941_v24 = vpop.permute.xlu1 %940 }
  0x98   : > { %987 = vadd.xlane.f32.xlu2 %v986_v22  ;;  %v992_v31 = vsel %vm11246_vm3, %v941_v24, 0.0  ;;  %996 = vadd.xlane.f32.xlu1 %v995_v30  ;;  %v637_v24 = vld [vmem:[%s11228_s5 + $0x8] sm:$0xff] }
  0x9c   : > { %v430_v46 = vpop.f32.mrf.mxu0 }
  0x9d   : > { %v431_v47 = vadd.f32 %v7616_v45, %v430_v46 }
  0x9e   : > { %v947_v33 = vpop.permute.xlu0 %946 }
  0x9f   : > { %7087 = vtanh.f32 %v431_v47  ;;  %v1001_v41 = vsel %vm11246_vm3, %v947_v33, 0.0 }
  0xa0   : > { %993 = vadd.xlane.f32.xlu2 %v992_v31  ;;  %1002 = vadd.xlane.f32.xlu0 %v1001_v41 }
  0xa4   : > { %v433_v49 = vpop.f32.mrf.mxu0 }
  0xa5   : > { %v7088_v50 = vpop.eup %7087  ;;  %v434_v51 = vadd.f32 %v7616_v45, %v433_v49 }
  0xa6   : > { %6880 = vmatmul.msk.f32.vlgmr.msra.gmra.mxu1 %vm506_vm2, %v7088_v50  ;;  %v953_v43 = vpop.permute.xlu0 %952  ;;  %v957_v50 = vpop.permute.xlu2 %956 }
  0xa7   : > { %7089 = vtanh.f32 %v434_v51  ;;  %v1010_v49 = vsel %vm11246_vm3, %v953_v43, 0.0 }
  0xa8   : > { %999 = vadd.xlane.f32.xlu2 %v998_v39  ;;  %1011 = vadd.xlane.f32.xlu0 %v1010_v49 }
  0xac   : > { %v436_v52 = vpop.f32.mrf.mxu0 }
  0xad   : > { %v7090_v53 = vpop.eup %7089  ;;  %v437_v54 = vadd.f32 %v7616_v45, %v436_v52 }
  0xae   : > { %6881 = vmatmul.msk.f32.gmra.mxu1 %vm506_vm2, %v7090_v53  ;;  %v959_v52 = vpop.permute.xlu0 %958  ;;  %v1016_v53 = vsel %vm11246_vm3, %v957_v50, 0.0 }
  0xaf   : > { %7091 = vtanh.f32 %v437_v54 }
  0xb0   : > { %1008 = vadd.xlane.f32.xlu2 %v1007_v48 }
  0xb4   : > { %v439_v55 = vpop.f32.mrf.mxu0 }
  0xb5   : > { %v7092_v56 = vpop.eup %7091  ;;  %v440_v57 = vadd.f32 %v7616_v45, %v439_v55 }
  0xb6   : > { %6882 = vmatmul.msk.f32.gmra.mxu1 %vm506_vm2, %v7092_v56  ;;  %v1019_v56 = vsel %vm11246_vm3, %v959_v52, 0.0 }
  0xb7   : > { %7093 = vtanh.f32 %v440_v57  ;;  %1020 = vadd.xlane.f32.xlu0 %v1019_v56  ;;  %v643_v57 = vld [vmem:[%s11228_s5 + $0x38] sm:$0xff] }
  0xb8   : > { %1017 = vadd.xlane.f32.xlu2 %v1016_v53  ;;  %704 = vmatpush.msra.mxu2 %v643_v57 }
  0xbc   : > { %v442_v58 = vpop.f32.mrf.mxu0 }
  0xbd   : > { %v7094_v59 = vpop.eup %7093  ;;  %v443_v60 = vadd.f32 %v7616_v45, %v442_v58  ;;  %v642_v58 = vld [vmem:[%s11228_s5 + $0x30] sm:$0xff] }
  0xbe   : > { %6883 = vmatmul.msk.f32.gmra.mxu1 %vm506_vm2, %v7094_v59  ;;  %v641_v59 = vld [vmem:[%s11228_s5 + $0x28] sm:$0xff]  ;;  %705 = vmatpush.msra.mxu2 %v642_v58 }
  0xbf   : > { %7095 = vtanh.f32 %v443_v60  ;;  %v963_v60 = vpop.permute.xlu2 %962 }
  0xc0   : > { %706 = vmatpush.msra.mxu2 %v641_v59 }
  0xc2   : > { %707 = vmatpush.msra.mxu2 %v640_v5 }
  0xc4   : > { %v445_v61 = vpop.f32.mrf.mxu0  ;;  %708 = vmatpush.msra.mxu2 %v639_v21 }
  0xc5   : > { %v7096_v62 = vpop.eup %7095  ;;  %v446_v63 = vadd.f32 %v7616_v45, %v445_v61  ;;  %v949_v61 = vpop.permute.xlu1 %948 }
  0xc6   : > { %6884 = vmatmul.msk.f32.gmra.mxu1 %vm506_vm2, %v7096_v62  ;;  %v1004_v0 = vsel %vm11246_vm3, %v949_v61, 0.0  ;;  %709 = vmatpush.msra.mxu2 %v638_v23 }
  0xc7   : > { %7097 = vtanh.f32 %v446_v63  ;;  %v965_v63 = vpop.permute.xlu0 %964  ;;  %1005 = vadd.xlane.f32.xlu1 %v1004_v0 }
  0xc8   : > { %v1028_v4 = vsel %vm11246_vm3, %v965_v63, 0.0  ;;  %710 = vmatpush.msra.mxu2 %v637_v24 }
  0xc9   : > { %1029 = vadd.xlane.f32.xlu0 %v1028_v4 }
  0xcc   : > { %v448_v1 = vpop.f32.mrf.mxu0 }
  0xcd   : > { %v7098_v2 = vpop.eup %7097  ;;  %v449_v3 = vadd.f32 %v7616_v45, %v448_v1  ;;  %v1025_v1 = vsel %vm11246_vm3, %v963_v60, 0.0 }
  0xce   : > { %6885 = vmatmul.msk.f32.gmra.mxu1 %vm506_vm2, %v7098_v2  ;;  %1026 = vadd.xlane.f32.xlu2 %v1025_v1 }
  0xcf   : > { %7099 = vtanh.f32 %v449_v3 }
  0xd4   : > { %v451_v16 = vpop.f32.mrf.mxu0 }
  0xd5   : > { %v7100_v17 = vpop.eup %7099  ;;  %v452_v19 = vadd.f32 %v7616_v45, %v451_v16  ;;  %v955_v16 = vpop.permute.xlu1 %954 }
  0xd6   : > { %6886 = vmatmul.msk.f32.gmra.mxu1 %vm506_vm2, %v7100_v17  ;;  %v1013_v22 = vsel %vm11246_vm3, %v955_v16, 0.0 }
  0xd7   : > { %7101 = vtanh.f32 %v452_v19  ;;  %1014 = vadd.xlane.f32.xlu1 %v1013_v22 }
  0xdc   : > { %v454_v26 = vpop.f32.mrf.mxu0 }
  0xdd   : > { %v7102_v28 = vpop.eup %7101  ;;  %v455_v29 = vadd.f32 %v7616_v45, %v454_v26  ;;  %v636_v26 = vld [vmem:[%s11228_s5] sm:$0xff]  ;;  %6539 = vrot.lane.b32.xlu0 %v7477_v8, %s7331_s29 }
  0xde   : > { %6887 = vmatmul.msk.f32.gmra.mxu1 %vm506_vm2, %v7102_v28  ;;  %711 = vmatpush.msra.mxu2 %v636_v26  ;;  %v7706_v8 = vld [vmem:[%s11227_s4] ss:$0 sm:$0xff] }
  0xdf   : > { %7103 = vtanh.f32 %v455_v29  ;;  %v961_v29 = vpop.permute.xlu1 %960 }
  0xe0   : > { %v1022_v32 = vsel %vm11246_vm3, %v961_v29, 0.0 }
  0xe1   : > { %1023 = vadd.xlane.f32.xlu1 %v1022_v32 }
  0xe4   : > { %v457_v35 = vpop.f32.mrf.mxu0 }
  0xe5   : > { %v7104_v37 = vpop.eup %7103  ;;  %v458_v38 = vadd.f32 %v7616_v45, %v457_v35  ;;  %6543 = vrot.lane.b32.xlu0 %v7487_v10, %s7331_s29 }
  0xe6   : > { %6888 = vmatmul.msk.f32.gmra.mxu1 %vm506_vm2, %v7104_v37  ;;  %6537 = vrot.lane.b32.xlu2 %v7472_v7, %s7331_s29 }
  0xe7   : > { %7105 = vtanh.f32 %v458_v38 }
  0xec   : > { %v460_v44 = vpop.f32.mrf.mxu0 }
  0xed   : > { %v7106_v46 = vpop.eup %7105  ;;  %v461_v47 = vadd.f32 %v7616_v45, %v460_v44  ;;  %6549 = vrot.lane.b32.xlu0 %v7502_v13, %s7331_s29 }
  0xee   : > { %6889 = vmatmul.msk.f32.gmra.mxu1 %vm506_vm2, %v7106_v46  ;;  %6545 = vrot.lane.b32.xlu2 %v7492_v11, %s7331_s29 }
  0xef   : > { %7107 = vtanh.f32 %v461_v47 }
  0xf4   : > { %v463_v51 = vpop.f32.mrf.mxu0 }
  0xf5   : > { %v7108_v54 = vpop.eup %7107  ;;  %v464_v55 = vadd.f32 %v7616_v45, %v463_v51  ;;  %6555 = vrot.lane.b32.xlu0 %v7529_v20, %s7331_s29 }
  0xf6   : > { %6890 = vmatmul.msk.f32.gmra.mxu1 %vm506_vm2, %v7108_v54  ;;  %6551 = vrot.lane.b32.xlu2 %v7510_v15, %s7331_s29 }
  0xf7   : > { %7109 = vtanh.f32 %v464_v55 }
  0xfa   : > { %6535 = vrot.lane.b32.xlu1 %v7467_v6, %s7331_s29 }
  0xfc   : > { %v466_v62 = vpop.f32.mrf.mxu0 }
  0xfd   : > { %v7110_v2 = vpop.eup %7109  ;;  %v467_v3 = vadd.f32 %v7616_v45, %v466_v62  ;;  %6561 = vrot.lane.b32.xlu0 %v7577_v34, %s7331_s29 }
  0xfe   : > { %6891 = vmatmul.msk.f32.gmra.mxu1 %vm506_vm2, %v7110_v2  ;;  %6557 = vrot.lane.b32.xlu2 %v7546_v25, %s7331_s29 }
  0xff   : > { %7111 = vtanh.f32 %v467_v3 }
 0x102   : > { %6541 = vrot.lane.b32.xlu1 %v7482_v9, %s7331_s29 }
 0x103   : > { %v985_v34 = vpop.xlane.xlu1 %984 }
 0x104   : > { %v469_v14 = vpop.f32.mrf.mxu0  ;;  %vm1038_vm4 = vcmp.eq.f32.partialorder %v985_v34, inf  ;;  %v1041_v58 = vand.u32 2147483648, %v985_v34  ;;  %vm1040_vm5 = vcmp.eq.f32.partialorder %v985_v34, 0.0  ;;  %v7759_v16 = vpop.xlane.xlu0 %990 }
 0x105   : > { %v7112_v17 = vpop.eup %7111  ;;  %v470_v19 = vadd.f32 %v7616_v45, %v469_v14  ;;  %vm1062_vm1 = vcmp.eq.f32.partialorder %v7759_v16, inf }
 0x106   : > { %6892 = vmatmul.msk.f32.gmra.mxu1 %vm506_vm2, %v7112_v17  ;;  %6563 = vrot.lane.b32.xlu2 %v7597_v40, %s7331_s29 }
 0x107   : > { %7113 = vtanh.f32 %v470_v19 }
 0x10a   : > { %6547 = vrot.lane.b32.xlu1 %v7497_v12, %s7331_s29 }
 0x10b   : > { %v988_v44 = vpop.xlane.xlu2 %987 }
 0x10c   : > { %v472_v28 = vpop.f32.mrf.mxu0  ;;  %vm1050_vm8 = vcmp.eq.f32.partialorder %v988_v44, inf  ;;  %vm1052_vm9 = vcmp.eq.f32.partialorder %v988_v44, 0.0 }
 0x10d   : > { %v7114_v30 = vpop.eup %7113  ;;  %v473_v31 = vadd.f32 %v7616_v45, %v472_v28  ;;  %v1053_v28 = vand.u32 2147483648, %v988_v44 }
 0x10e   : > { %6893 = vmatmul.msk.f32.gmra.mxu1 %vm506_vm2, %v7114_v30 }
 0x10f   : > { %7115 = vtanh.f32 %v473_v31 }
 0x112   : > { %6553 = vrot.lane.b32.xlu1 %v7521_v18, %s7331_s29 }
 0x114   : > { %v475_v33 = vpop.f32.mrf.mxu0 }
 0x115   : > { %v7116_v35 = vpop.eup %7115  ;;  %v476_v37 = vadd.f32 %v7616_v45, %v475_v33 }
 0x116   : > { %6894 = vmatmul.msk.f32.gmra.mxu1 %vm506_vm2, %v7116_v35 }
 0x117   : > { %7117 = vtanh.f32 %v476_v37 }
 0x11a   : > { %6559 = vrot.lane.b32.xlu1 %v7554_v27, %s7331_s29 }
 0x11d   : > { %v7118_v38 = vpop.eup %7117 }
 0x11e   : > { %6895 = vmatmul.msk.f32.gmra.mxu1 %vm506_vm2, %v7118_v38 }
 0x122   : > { %6565 = vrot.lane.b32.xlu1 %v7583_v36, %s7331_s29  ;;  %s6860_s29 = sshll.u32 %s324_s28, 7 }
 0x123   : > { %v572_v45 = vpop.f32.mrf.mxu1  ;;  %s8105_s14 = scalar_lea.vmem [#allocation2], %s6860_s29 }
 0x124   : > { %v573_v7 = vadd.f32 %v7706_v8, %v572_v45  ;;  %s6791_s25 = sshll.u32 %s8105_s14, 4  ;;  %s6792_s25 = int_to_ptr.vmem [resolvable:$true] %s6791_s25 }
 0x126   : > { %7119 = vtanh.f32 %v573_v7  ;;  %v11235_v7 = vmov 2475754826  }
 0x12b   : > { %v575_v10 = vpop.f32.mrf.mxu1 }
 0x12c   : > { %v7120_v11 = vpop.eup %7119  ;;  %v576_v39 = vadd.f32 %v7706_v8, %v575_v10 }
 0x12d   : > { %6896 = vmatmul.msk.f32.vlgmr.msra.gmra.mxu2 %vm506_vm2, %v7120_v11  ;;  %v11247_v11 = vmov 2131351028  }
 0x12e   : > { %7121 = vtanh.f32 %v576_v39 }
 0x133   : > { %v578_v6 = vpop.f32.mrf.mxu1 }
 0x134   : > { %v7122_v13 = vpop.eup %7121  ;;  %v579_v15 = vadd.f32 %v7706_v8, %v578_v6 }
 0x135   : > { %6897 = vmatmul.msk.f32.gmra.mxu2 %vm506_vm2, %v7122_v13 }
 0x136   : > { %7123 = vtanh.f32 %v579_v15  ;;  %v11250_v15 = vmov 2102212464  }
 0x13b   : > { %v581_v20 = vpop.f32.mrf.mxu1 }
 0x13c   : > { %v7124_v25 = vpop.eup %7123  ;;  %v582_v9 = vadd.f32 %v7706_v8, %v581_v20 }
 0x13d   : > { %6898 = vmatmul.msk.f32.gmra.mxu2 %vm506_vm2, %v7124_v25 }
 0x13e   : > { %7125 = vtanh.f32 %v582_v9 }
 0x13f   : > { %7127 = vrsqrt.f32 %v985_v34 }
 0x143   : > { %v584_v41 = vpop.f32.mrf.mxu1 }
 0x144   : > { %v7126_v42 = vpop.eup %7125  ;;  %v585_v43 = vadd.f32 %v7706_v8, %v584_v41 }
 0x145   : > { %6899 = vmatmul.msk.f32.gmra.mxu2 %vm506_vm2, %v7126_v42  ;;  %v7128_v12 = vpop.eup %7127 }
 0x146   : > { %7129 = vtanh.f32 %v585_v43  ;;  %v1032_v40 = vmul.f32 %v7128_v12, %v985_v34  ;;  %v11243_v43 = vmov 920167782  }
 0x147   : > { %7131 = vrsqrt.f32 %v988_v44 }
 0x148   : > { %v1033_v47 = vmul.f32 %v7128_v12, %v1032_v40 }
 0x14a   : > { %v1034_v49 = vmul.f32 0.5, %v1033_v47 }
 0x14b   : > { %v587_v46 = vpop.f32.mrf.mxu1 }
 0x14c   : > { %v7130_v48 = vpop.eup %7129  ;;  %v588_v18 = vadd.f32 %v7706_v8, %v587_v46  ;;  %v1035_v50 = vsub.f32 1.5, %v1034_v49 }
 0x14d   : > { %6900 = vmatmul.msk.f32.gmra.mxu2 %vm506_vm2, %v7130_v48  ;;  %v7132_v51 = vpop.eup %7131  ;;  %v11239_v48 = vmov 1326507024  }
 0x14e   : > { %7133 = vtanh.f32 %v588_v18  ;;  %v1036_v52 = vmul.f32 %v7128_v12, %v1035_v50  ;;  %v1044_v53 = vmul.f32 %v7132_v51, %v988_v44 }
 0x150   : > { %v1037_v54 = vmul.f32 %v1036_v52, %v985_v34  ;;  %v1045_v57 = vmul.f32 %v7132_v51, %v1044_v53 }
 0x152   : > { %v1039_v59 = vsel %vm1038_vm4, %v985_v34, %v1037_v54  ;;  %v1046_v60 = vmul.f32 0.5, %v1045_v57  ;;  %v11241_v34 = vmov 683565275  }
 0x153   : > { %v590_v27 = vpop.f32.mrf.mxu1  ;;  %v7745_v61 = vsel %vm1040_vm5, %v1041_v58, %v1039_v59 }
 0x154   : > { %v7134_v55 = vpop.eup %7133  ;;  %v591_v56 = vadd.f32 %v7706_v8, %v590_v27  ;;  %11283 = vst [vmem:[#allocation5_spill] sm:$0xff] %v7745_v61  ;;  %vm11245_vm6 = vcmp.lt.f32.partialorder %v7745_v61, 1e-06  ;;  %v1047_v63 = vsub.f32 1.5, %v1046_v60 }
 0x155   : > { %6901 = vmatmul.msk.f32.gmra.mxu2 %vm506_vm2, %v7134_v55  ;;  %v7751_v36 = vsel %vm11245_vm6, 1.0, %v7745_v61 }
 0x156   : > { %7135 = vtanh.f32 %v591_v56  ;;  %v7754_v62 = vmul.f32 0.5, %v7751_v36  ;;  %v1048_v5 = vmul.f32 %v7132_v51, %v1047_v63 }
 0x158   : > { %v1274_v1 = vand.u32 2139095040, %v7754_v62  ;;  %v1049_v19 = vmul.f32 %v1048_v5, %v988_v44  ;;  %v1271_v35 = vand.u32 2147483647, %v7754_v62 }
 0x15a   : > { %v1275_v4 = vshrl.u32 %v1274_v1, 23  ;;  %v1051_v29 = vsel %vm1050_vm8, %v988_v44, %v1049_v19  ;;  %v1278_v9 = vand.u32 8388607, %v1271_v35  ;;  %vm1064_vm8 = vcmp.eq.f32.partialorder %v7759_v16, 0.0 }
 0x15b   : > { %v593_v0 = vpop.f32.mrf.mxu1  ;;  %v7768_v32 = vsel %vm1052_vm9, %v1053_v28, %v1051_v29 }
 0x15c   : > { %v7136_v2 = vpop.eup %7135  ;;  %v594_v3 = vadd.f32 %v7706_v8, %v593_v0  ;;  %v6928_v14 = vadd.s32 4294967169, %v1275_v4  ;;  %11284 = vst [vmem:[#allocation6_spill] sm:$0xff] %v7768_v32  ;;  %vm11269_vm10 = vcmp.lt.f32.partialorder %v7768_v32, 1e-06  ;;  %v1279_v51 = vor.u32 8388608, %v1278_v9 }
 0x15d   : > { %6902 = vmatmul.msk.f32.gmra.mxu2 %vm506_vm2, %v7136_v2  ;;  %v7805_v53 = vsel %vm11269_vm10, 1.0, %v7768_v32 }
 0x15e   : > { %7137 = vtanh.f32 %v594_v3  ;;  %v1281_v17 = vadd.s32 1, %v6928_v14  ;;  %v7825_v0 = vshll.u32 %v1279_v51, 8  ;;  %v7828_v1 = vmul.f32 0.5, %v7805_v53 }
 0x15f   : > { %7139 = vrsqrt.f32 %v7759_v16 }
 0x160   : > { %vm1282_vm7 = vcmp.gt.s32.totalorder %v1281_v17, 0  ;;  %v1321_v19 = vshrl.u32 %v7825_v0, 16 }
 0x161   : > { %v1283_v24 = vsel %vm1282_vm7, %v1281_v17, 0  ;;  %v1320_v17 = vand.u32 65535, %v7825_v0 }
 0x162   : > { %v1285_v26 = vand.u32 31, %v1283_v24  ;;  %v7780_v13 = vshrl.u32 %v1283_v24, 5  ;;  %v1429_v24 = vand.u32 2139095040, %v7828_v1 }
 0x163   : > { %v596_v21 = vpop.f32.mrf.mxu1 }
 0x164   : > { %v7138_v22 = vpop.eup %7137  ;;  %v597_v23 = vadd.f32 %v7706_v8, %v596_v21  ;;  %v7766_v31 = vsub.s32 32, %v1285_v26  ;;  %v1291_v10 = vshll.u32 %v11235_v7, %v1285_v26  ;;  %v1294_v6 = vshll.u32 %v11247_v11, %v1285_v26 }
 0x165   : > { %6903 = vmatmul.msk.f32.gmra.mxu2 %vm506_vm2, %v7138_v22  ;;  %v7764_v30 = vpop.eup %7139  ;;  %v1297_v25 = vshll.u32 %v11250_v15, %v1285_v26  ;;  %v1288_v41 = vshll.u32 %v11241_v34, %v1285_v26  ;;  %v1300_v40 = vshll.u32 %v11243_v43, %v1285_v26  ;;  %vm1303_vm11 = vcmp.lt.s32.totalorder %v7780_v13, 1 }
 0x166   : > { %7141 = vtanh.f32 %v597_v23  ;;  %v1056_v38 = vmul.f32 %v7764_v30, %v7759_v16  ;;  %v1292_v39 = vshrl.u32 %v11247_v11, %v7766_v31  ;;  %v1295_v20 = vshrl.u32 %v11250_v15, %v7766_v31 }
 0x167   : > { %v1289_v42 = vshrl.u32 %v11235_v7, %v7766_v31  ;;  %v1298_v12 = vshrl.u32 %v11243_v43, %v7766_v31  ;;  %v1301_v18 = vshrl.u32 %v11239_v48, %v7766_v31  ;;  %vm1305_vm12 = vcmp.lt.s32.totalorder %v7780_v13, 3 }
 0x168   : > { %v1057_v44 = vmul.f32 %v7764_v30, %v1056_v38  ;;  %v7794_v46 = vor.u32 %v1292_v39, %v1291_v10  ;;  %v7796_v47 = vor.u32 %v1295_v20, %v1294_v6  ;;  %vm1304_vm13 = vcmp.lt.s32.totalorder %v7780_v13, 2  ;;  %v784_v10 = vld [vmem:[%s11230_s7 + $0x38] sm:$0xff]  ;;  %v783_v39 = vld [vmem:[%s11230_s7 + $0x30] sm:$0xff] }
 0x169   : > { %v1299_v49 = vor.u32 %v1298_v12, %v1297_v25  ;;  %v1302_v52 = vor.u32 %v1301_v18, %v1300_v40  ;;  %v7808_v55 = vor.u32 %v1289_v42, %v1288_v41  ;;  %vm1306_vm14 = vcmp.lt.s32.totalorder %v7780_v13, 4  ;;  %845 = vmatpush.msra.mxu3 %v784_v10 }
 0x16a   : > { %v1058_v56 = vmul.f32 0.5, %v1057_v44  ;;  %v1315_v58 = vsel %vm1303_vm11, %v7794_v46, %v7796_v47  ;;  %v1430_v41 = vshrl.u32 %v1429_v24, 23  ;;  %v1287_v42 = vshrl.u32 %v11241_v34, %v7766_v31 }
 0x16b   : > { %v599_v33 = vpop.f32.mrf.mxu1  ;;  %v1312_v57 = vsel %vm1306_vm14, %v1299_v49, 920167782  ;;  %v1316_v59 = vsel %vm1306_vm14, %v1302_v52, 1326507024  ;;  %v1311_v2 = vsel %vm1303_vm11, %v7808_v55, %v7794_v46  ;;  %846 = vmatpush.msra.mxu3 %v783_v39  ;;  %v11237_v12 = vmov 0  }
 0x16c   : > { %v7142_v37 = vpop.eup %7141  ;;  %v600_v45 = vadd.f32 %v7706_v8, %v599_v33  ;;  %v1317_v60 = vsel %vm1305_vm12, %v1299_v49, %v1316_v59  ;;  %v1313_v3 = vsel %vm1305_vm12, %v7796_v47, %v1312_v57  ;;  %v1059_v14 = vsub.f32 1.5, %v1058_v56 }
 0x16d   : > { %6904 = vmatmul.msk.f32.gmra.mxu2 %vm506_vm2, %v7142_v37  ;;  %v1318_v63 = vsel %vm1304_vm13, %v1315_v58, %v1317_v60  ;;  %v1314_v22 = vsel %vm1304_vm13, %v1311_v2, %v1313_v3  ;;  %v7845_v37 = vpop.xlane.xlu1 %996  ;;  %v6931_v57 = vadd.s32 4294967169, %v1430_v41  ;;  %v1307_v2 = vsel %vm1303_vm11, %v1287_v42, %v7808_v55 }
 0x16e   : > { %7143 = vtanh.f32 %v600_v45  ;;  %v1322_v4 = vand.u32 65535, %v1318_v63  ;;  %v1323_v5 = vshrl.u32 %v1318_v63, 16  ;;  %v1060_v45 = vmul.f32 %v7764_v30, %v1059_v14  ;;  %v782_v30 = vld [vmem:[%s11230_s7 + $0x28] sm:$0xff] }
 0x16f   : > { %v1344_v20 = vand.u32 65535, %v1314_v22  ;;  %v1345_v25 = vshrl.u32 %v1314_v22, 16  ;;  %847 = vmatpush.msra.mxu3 %v782_v30  ;;  %v1436_v22 = vadd.s32 1, %v6931_v57 }
 0x170   : > { %v1325_v23 = vmul.u32 %v1323_v5, %v1320_v17  ;;  %v1324_v29 = vmul.u32 %v1322_v4, %v1320_v17  ;;  %v7843_v33 = vmul.u32 %v1322_v4, %v1321_v19  ;;  %v1327_v6 = vmul.u32 %v1323_v5, %v1321_v19  ;;  %v7876_v5 = vpop.xlane.xlu2 %993 }
 0x171   : > { %v1061_v18 = vmul.f32 %v1060_v45, %v7759_v16  ;;  %v1347_v51 = vmul.u32 %v1345_v25, %v1320_v17  ;;  %v1348_v52 = vmul.u32 %v1344_v20, %v1321_v19  ;;  %v1349_v60 = vmul.u32 %v1345_v25, %v1321_v19 }
 0x172   : > { %v1328_v38 = vshll.u32 %v1325_v23, 16  ;;  %v1330_v9 = vshll.u32 %v7843_v33, 16  ;;  %v1329_v56 = vshrl.u32 %v1325_v23, 16  ;;  %v1331_v19 = vshrl.u32 %v7843_v33, 16 }
 0x173   : > { %v602_v50 = vpop.f32.mrf.mxu1  ;;  %v1350_v63 = vshll.u32 %v1347_v51, 16  ;;  %v1352_v4 = vshll.u32 %v1348_v52, 16  ;;  %v1351_v23 = vshrl.u32 %v1347_v51, 16  ;;  %vm1437_vm7 = vcmp.gt.s32.totalorder %v1436_v22, 0 }
 0x174   : > { %v7144_v27 = vpop.eup %7143  ;;  %v603_v54 = vadd.f32 %v7706_v8, %v602_v50  ;;  %vm1332_vm15 = vc.u32 %v1324_v29, %v1328_v38  ;;  %v1334_v44 = vadd.s32 %v1328_v38, %v1324_v29  ;;  %v1346_v50 = vmul.u32 %v1344_v20, %v1320_v17 }
 0x175   : > { %6905 = vmatmul.msk.f32.gmra.mxu2 %vm506_vm2, %v7144_v27  ;;  %v1333_v40 = vsel %vm1332_vm15, 1, %v11237_v12  ;;  %v1353_v29 = vshrl.u32 %v1348_v52, 16  ;;  %v1438_v33 = vsel %vm1437_vm7, %v1436_v22, 0  ;;  %v1063_v20 = vsel %vm1062_vm1, %v7759_v16, %v1061_v18 }
 0x176   : > { %7145 = vtanh.f32 %v603_v54  ;;  %v1335_v49 = vadd.s32 %v1333_v40, %v1327_v6  ;;  %v1308_v54 = vsel %vm1306_vm14, %v7796_v47, 2102212464  ;;  %vm1336_vm0 = vc.u32 %v1334_v44, %v1330_v9 }
 0x177   : > { %v1337_v59 = vsel %vm1336_vm0, 1, %v11237_v12  ;;  %v1309_v14 = vsel %vm1305_vm12, %v7794_v46, %v1308_v54  ;;  %vm1354_vm4 = vc.u32 %v1346_v50, %v1350_v63  ;;  %v1356_v17 = vadd.s32 %v1350_v63, %v1346_v50 }
 0x178   : > { %v1339_v3 = vadd.s32 %v1337_v59, %v1335_v49  ;;  %v1355_v55 = vsel %vm1354_vm4, 1, %v11237_v12  ;;  %v1440_v6 = vand.u32 31, %v1438_v33  ;;  %v7904_v50 = vshrl.u32 %v1438_v33, 5 }
 0x179   : > { %v1357_v24 = vadd.s32 %v1355_v55, %v1349_v60  ;;  %vm1358_vm5 = vc.u32 %v1356_v17, %v1352_v4  ;;  %v7891_v39 = vadd.s32 %v1356_v17, %v1352_v4  ;;  %v1065_v59 = vand.u32 2147483648, %v7759_v16  ;;  %v780_v4 = vld [vmem:[%s11230_s7 + $0x18] sm:$0xff]  ;;  %v779_v55 = vld [vmem:[%s11230_s7 + $0x10] sm:$0xff] }
 0x17a   : > { %v1359_v46 = vsel %vm1358_vm5, 1, %v11237_v12  ;;  %v1441_v42 = vsub.s32 32, %v1440_v6  ;;  %v1443_v40 = vshll.u32 %v11241_v34, %v1440_v6  ;;  %v1446_v44 = vshll.u32 %v11235_v7, %v1440_v6 }
 0x17b   : > { %v605_v21 = vpop.f32.mrf.mxu1  ;;  %v1361_v38 = vadd.s32 %v1359_v46, %v1357_v24  ;;  %v1449_v49 = vshll.u32 %v11247_v11, %v1440_v6  ;;  %v1452_v51 = vshll.u32 %v11250_v15, %v1440_v6  ;;  %vm1458_vm11 = vcmp.lt.s32.totalorder %v7904_v50, 1 }
 0x17c   : > { %v7146_v26 = vpop.eup %7145  ;;  %v606_v28 = vadd.f32 %v7706_v8, %v605_v21  ;;  %v1340_v21 = vadd.s32 %v1339_v3, %v1329_v56  ;;  %v1450_v54 = vshrl.u32 %v11250_v15, %v1441_v42  ;;  %v781_v56 = vld [vmem:[%s11230_s7 + $0x20] sm:$0xff]  ;;  %v1456_v3 = vshrl.u32 %v11239_v48, %v1441_v42 }
 0x17d   : > { %6906 = vmatmul.msk.f32.gmra.mxu2 %vm506_vm2, %v7146_v26  ;;  %v1426_v26 = vand.u32 2147483647, %v7828_v1  ;;  %v1362_v9 = vadd.s32 %v1361_v38, %v1351_v23  ;;  %848 = vmatpush.msra.mxu3 %v781_v56  ;;  %vm1460_vm12 = vcmp.lt.s32.totalorder %v7904_v50, 3  ;;  %vm1459_vm14 = vcmp.lt.s32.totalorder %v7904_v50, 2 }
 0x17e   : > { %7147 = vtanh.f32 %v606_v28  ;;  %v1310_v28 = vsel %vm1304_vm13, %v1307_v2, %v1309_v14  ;;  %v7889_v10 = vadd.s32 %v1340_v21, %v1331_v19  ;;  %v1451_v2 = vor.u32 %v1450_v54, %v1449_v49 }
 0x17f   : > { %7149 = vrsqrt.f32 %v7845_v37  ;;  %v1364_v41 = vmul.u32 %v7825_v0, %v1310_v28  ;;  %v1433_v30 = vand.u32 8388607, %v1426_v26  ;;  %v1363_v18 = vadd.s32 %v1362_v9, %v1353_v29  ;;  %849 = vmatpush.msra.mxu3 %v780_v4  ;;  %v778_v29 = vld [vmem:[%s11230_s7 + $0x8] sm:$0xff] }
 0x180   : > { %vm1366_vm9 = vc.u32 %v7889_v10, %v7891_v39  ;;  %v1444_v0 = vshrl.u32 %v11235_v7, %v1441_v42  ;;  %vm1461_vm13 = vcmp.lt.s32.totalorder %v7904_v50, 4 }
 0x181   : > { %v1367_v57 = vadd.s32 1, %v1363_v18  ;;  %v1434_v17 = vor.u32 8388608, %v1433_v30  ;;  %850 = vmatpush.msra.mxu3 %v779_v55 }
 0x182   : > { %v1445_v60 = vor.u32 %v1444_v0, %v1443_v40 }
 0x183   : > { %v608_v27 = vpop.f32.mrf.mxu1  ;;  %v1368_v14 = vsel %vm1366_vm9, %v1367_v57, %v1363_v18  ;;  %851 = vmatpush.msra.mxu3 %v778_v29 }
 0x184   : > { %v7148_v31 = vpop.eup %7147  ;;  %v609_v58 = vadd.f32 %v7706_v8, %v608_v27  ;;  %v1447_v27 = vshrl.u32 %v11247_v11, %v1441_v42  ;;  %v1369_v22 = vadd.s32 %v1368_v14, %v1364_v41 }
 0x185   : > { %6907 = vmatmul.msk.f32.gmra.mxu2 %vm506_vm2, %v7148_v31  ;;  %v7874_v47 = vpop.eup %7149  ;;  %v1453_v31 = vshrl.u32 %v11243_v43, %v1441_v42 }
 0x186   : > { %7151 = vtanh.f32 %v609_v58  ;;  %v1455_v58 = vshll.u32 %v11243_v43, %v1440_v6  ;;  %v1448_v63 = vor.u32 %v1447_v27, %v1446_v44  ;;  %v1080_v28 = vmul.f32 %v7874_v47, %v7845_v37 }
 0x187   : > { %7153 = vrsqrt.f32 %v7876_v5  ;;  %v1454_v19 = vor.u32 %v1453_v31, %v1452_v51  ;;  %v1370_v33 = vadd.s32 536870912, %v1369_v22  ;;  %v1463_v44 = vsel %vm1461_vm13, %v1451_v2, 2102212464 }
 0x188   : > { %v1457_v23 = vor.u32 %v1456_v3, %v1455_v58  ;;  %v1466_v38 = vsel %vm1458_vm11, %v1445_v60, %v1448_v63  ;;  %v1470_v6 = vsel %vm1458_vm11, %v1448_v63, %v1451_v2  ;;  %v7972_v57 = vmul.f32 %v7874_v47, %v1080_v28 }
 0x189   : > { %v7953_v30 = vshrl.u32 %v1370_v33, 30  ;;  %v1464_v4 = vsel %vm1460_vm12, %v1448_v63, %v1463_v44  ;;  %v7987_v63 = vpop.xlane.xlu1 %1005 }
 0x18a   : > { %v1471_v41 = vsel %vm1461_vm13, %v1457_v23, 1326507024  ;;  %11286 = vst [vmem:[#allocation8_spill] sm:$0xff] %v7987_v63 }
 0x18b   : > { %v611_v45 = vpop.f32.mrf.mxu1  ;;  %v1472_v16 = vsel %vm1460_vm12, %v1454_v19, %v1471_v41  ;;  %v1372_v0 = vshll.u32 %v7953_v30, 30 }
 0x18c   : > { %v7152_v13 = vpop.eup %7151  ;;  %v612_v25 = vadd.f32 %v7706_v8, %v611_v45  ;;  %v1467_v45 = vsel %vm1461_vm13, %v1454_v19, 920167782  ;;  %v1473_v49 = vsel %vm1459_vm14, %v1470_v6, %v1472_v16  ;;  %vm1272_vm13 = vcmp.le.f32.partialorder %v1271_v35, 0.7853982 }
 0x18d   : > { %6908 = vmatmul.msk.f32.gmra.mxu2 %vm506_vm2, %v7152_v13  ;;  %v7907_v52 = vpop.eup %7153  ;;  %v7946_v13 = vsel %vm1064_vm8, %v1065_v59, %v1063_v20  ;;  %v1468_v9 = vsel %vm1460_vm12, %v1451_v2, %v1467_v45  ;;  %v7959_v20 = vshll.u32 %v1434_v17, 8  ;;  %v1477_v56 = vand.u32 65535, %v1473_v49 }
 0x18e   : > { %7155 = vtanh.f32 %v612_v25  ;;  %11285 = vst [vmem:[#allocation7_spill] sm:$0xff] %v7946_v13  ;;  %v1442_v25 = vshrl.u32 %v11241_v34, %v1441_v42  ;;  %v1469_v40 = vsel %vm1459_vm14, %v1466_v38, %v1468_v9  ;;  %v777_v42 = vld [vmem:[%s11230_s7] sm:$0xff]  ;;  %v1478_v58 = vshrl.u32 %v1473_v49, 16 }
 0x18f   : > { %v1499_v18 = vand.u32 65535, %v1469_v40  ;;  %v1500_v51 = vshrl.u32 %v1469_v40, 16  ;;  %852 = vmatpush.msra.mxu3 %v777_v42  ;;  %v1475_v27 = vand.u32 65535, %v7959_v20  ;;  %v1476_v54 = vshrl.u32 %v7959_v20, 16 }
 0x190   : > { %v1462_v31 = vsel %vm1458_vm11, %v1442_v25, %v1445_v60  ;;  %vm11234_vm15 = vcmp.lt.f32.partialorder %v7946_v13, 1e-06  ;;  %v1365_v2 = vadd.s32 %v7891_v39, %v7889_v10  ;;  %v7979_v3 = vsub.s32 %v1369_v22, %v1372_v0  ;;  %v7998_v0 = vpop.xlane.xlu2 %999 }
 0x191   : > { %v1481_v14 = vmul.u32 %v1477_v56, %v1476_v54  ;;  %v1480_v55 = vmul.u32 %v1478_v58, %v1475_v27  ;;  %v1502_v23 = vmul.u32 %v1500_v51, %v1475_v27  ;;  %v1501_v10 = vmul.u32 %v1499_v18, %v1475_v27 }
 0x192   : > { %vm1374_vm0 = vcmp.lt.s32.totalorder %v7979_v3, 0  ;;  %v1375_v60 = vsub.s32 0, %v7979_v3  ;;  %v1503_v28 = vmul.u32 %v1499_v18, %v1476_v54  ;;  %v7993_v38 = vsel %vm11234_vm15, 1.0, %v7946_v13 }
 0x193   : > { %v614_v21 = vpop.f32.mrf.mxu1  ;;  %v1483_v39 = vshll.u32 %v1480_v55, 16  ;;  %v1485_v22 = vshll.u32 %v1481_v14, 16  ;;  %v1505_v29 = vshll.u32 %v1502_v23, 16  ;;  %v1484_v25 = vshrl.u32 %v1480_v55, 16 }
 0x194   : > { %v7156_v24 = vpop.eup %7155  ;;  %v615_v46 = vadd.f32 %v7706_v8, %v614_v21  ;;  %v1479_v21 = vmul.u32 %v1477_v56, %v1475_v27  ;;  %v1507_v6 = vshll.u32 %v1503_v28, 16  ;;  %v1506_v49 = vshrl.u32 %v1502_v23, 16 }
 0x195   : > { %6909 = vmatmul.msk.f32.gmra.mxu2 %vm506_vm2, %v7156_v24  ;;  %v1482_v24 = vmul.u32 %v1478_v58, %v1476_v54  ;;  %vm1509_vm4 = vc.u32 %v1501_v10, %v1505_v29  ;;  %v1511_v41 = vadd.s32 %v1505_v29, %v1501_v10  ;;  %v1486_v27 = vshrl.u32 %v1481_v14, 16  ;;  %v8001_v58 = vpop.xlane.xlu0 %1002 }
 0x196   : > { %7157 = vtanh.f32 %v615_v46  ;;  %v1376_v46 = vsel %vm1374_vm0, %v1375_v60, %v7979_v3  ;;  %vm1487_vm1 = vc.u32 %v1479_v21, %v1483_v39  ;;  %v1489_v45 = vadd.s32 %v1483_v39, %v1479_v21 }
 0x197   : > { %v1377_v33 = vclz %v1376_v46  ;;  %v1488_v9 = vsel %vm1487_vm1, 1, %v11237_v12  ;;  %v1510_v42 = vsel %vm1509_vm4, 1, %v11237_v12  ;;  %vm1513_vm7 = vc.u32 %v1511_v41, %v1507_v6 }
 0x198   : > { %v1490_v16 = vadd.s32 %v1488_v9, %v1482_v24  ;;  %vm1491_vm5 = vc.u32 %v1489_v45, %v1485_v22  ;;  %v1514_v56 = vsel %vm1513_vm7, 1, %v11237_v12  ;;  %v8005_v21 = vmul.f32 0.5, %v7993_v38  ;;  %v8017_v45 = vpop.xlane.xlu1 %1014 }
 0x199   : > { %v6929_v40 = vadd.s32 4294967294, %v1377_v33  ;;  %v1492_v44 = vsel %vm1491_vm5, 1, %v11237_v12  ;;  %v1465_v14 = vsel %vm1459_vm14, %v1462_v31, %v1464_v4  ;;  %v8010_v10 = vadd.s32 %v1511_v41, %v1507_v6  ;;  %11287 = vst [vmem:[#allocation9_spill] sm:$0xff] %v8017_v45 }
 0x19a   : > { %v1584_v22 = vand.u32 2139095040, %v8005_v21  ;;  %v1082_v33 = vmul.f32 0.5, %v7972_v57  ;;  %v1519_v31 = vmul.u32 %v7959_v20, %v1465_v14  ;;  %vm1273_vm11 = vcmp.lt.s32.totalorder %v7754_v62, 0 }
 0x19b   : > { %v617_v59 = vpop.f32.mrf.mxu1  ;;  %vm6930_vm8 = vcmp.lt.s32.totalorder %v6929_v40, 0  ;;  %vm1086_vm14 = vcmp.eq.f32.partialorder %v7845_v37, inf  ;;  %vm1428_vm5 = vcmp.lt.s32.totalorder %v7828_v1, 0 }
 0x19c   : > { %v7158_v17 = vpop.eup %7157  ;;  %v618_v19 = vadd.f32 %v7706_v8, %v617_v59  ;;  %v1504_v8 = vmul.u32 %v1500_v51, %v1476_v54  ;;  %v1494_v54 = vadd.s32 %v1492_v44, %v1490_v16  ;;  %v1380_v59 = vsel %vm6930_vm8, 0, %v6929_v40  ;;  %v8027_v40 = vld [vmem:[%s11229_s6] ss:$0 sm:$0xff]  ;;  %v8029_v44 = vpop.xlane.xlu2 %1008 }
 0x19d   : > { %6910 = vmatmul.msk.f32.gmra.mxu2 %vm506_vm2, %v7158_v17  ;;  %v1508_v17 = vshrl.u32 %v1503_v28, 16  ;;  %v1381_v55 = vsub.s32 32, %v1380_v59  ;;  %v1382_v23 = vshll.u32 %v7979_v3, %v1380_v59  ;;  %v1385_v60 = vsub.s32 4294967266, %v1380_v59 }
 0x19e   : > { %7159 = vtanh.f32 %v618_v19  ;;  %v1512_v18 = vadd.s32 %v1510_v42, %v1504_v8  ;;  %v1495_v24 = vadd.s32 %v1494_v54, %v1484_v25  ;;  %v8014_v28 = vadd.f32 1e-08, %v7751_v36 }
 0x19f   : > { %v1383_v46 = vshrl.u32 %v1365_v2, %v1381_v55  ;;  %v1386_v8 = vadd.s32 127, %v1385_v60  ;;  %v1585_v25 = vshrl.u32 %v1584_v22, 23  ;;  %v1068_v2 = vmul.f32 %v7907_v52, %v7876_v5 }
 0x1a0   : > { %v1516_v19 = vadd.s32 %v1514_v56, %v1512_v18  ;;  %v1496_v29 = vadd.s32 %v1495_v24, %v1486_v27  ;;  %7161 = vrcp.f32 %v8014_v28  ;;  %v1083_v57 = vsub.f32 1.5, %v1082_v33  ;;  %v8050_v22 = vpop.xlane.xlu1 %1023 }
 0x1a1   : > { %v1384_v9 = vor.u32 %v1383_v46, %v1382_v23  ;;  %v1387_v50 = vshll.u32 %v1386_v8, 23  ;;  %v6934_v4 = vadd.s32 4294967169, %v1585_v25  ;;  %v1069_v18 = vmul.f32 %v7907_v52, %v1068_v2  ;;  %11288 = vst [vmem:[#allocation10_spill] sm:$0xff] %v8050_v22 }
 0x1a2   : > { %v1517_v39 = vadd.s32 %v1516_v19, %v1506_v49  ;;  %vm1521_vm9 = vc.u32 %v1496_v29, %v8010_v10  ;;  %v1395_v27 = vsub.s32 4, %v7953_v30  ;;  %v11233_v19 = vand.u32 2147483647, %v8005_v21 }
 0x1a3   : > { %v1388_v6 = vor.u32 4788187, %v1387_v50  ;;  %v1391_v41 = vcvt.s32.f32 %v1384_v9  ;;  %v1591_v42 = vadd.s32 1, %v6934_v4  ;;  %v1084_v60 = vmul.f32 %v7874_v47, %v1083_v57 }
 0x1a4   : > { %v7160_v51 = vpop.eup %7159  ;;  %v1518_v3 = vadd.s32 %v1517_v39, %v1508_v17  ;;  %v1396_v23 = vsel %vm1273_vm11, %v1395_v27, %v7953_v30  ;;  %v8048_v39 = vmul.f32 0.5, %v1069_v18  ;;  %v8060_v33 = vand.u32 8388607, %v11233_v19 }
 0x1a5   : > { %6911 = vmatmul.msk.f32.gmra.mxu2 %vm506_vm2, %v7160_v51  ;;  %v1389_v20 = vand.u32 2147483647, %v1388_v6  ;;  %v8032_v51 = vpop.xlane.xlu0 %1011  ;;  %vm1592_vm12 = vcmp.gt.s32.totalorder %v1591_v42, 0  ;;  %v1398_v30 = vsel %vm1272_vm13, 0, %v1396_v23  ;;  %v1085_v25 = vmul.f32 %v1084_v60, %v7845_v37  ;;  %v8078_v6 = vpop.xlane.xlu2 %1017 }
 0x1a6   : > { %v1522_v36 = vadd.s32 1, %v1518_v3  ;;  %v8036_v54 = vpop.eup %7161  ;;  %v1593_v8 = vsel %vm1592_vm12, %v1591_v42, 0  ;;  %v1415_v2 = vadd.s32 3, %v1398_v30  ;;  %v8076_v4 = vadd.s32 %v8010_v10, %v1496_v29 }
 0x1a7   : > { %v1392_v59 = vmul.f32 %v1391_v41, %v1389_v20  ;;  %v6248_v46 = vmul.f32 %v8036_v54, %v8014_v28  ;;  %v8071_v50 = vand.u32 31, %v1593_v8  ;;  %v1089_v10 = vand.u32 2147483648, %v7845_v37 }
 0x1a8   : > { %v1523_v16 = vsel %vm1521_vm9, %v1522_v36, %v1518_v3  ;;  %v6536_v60 = vpop.permute.xlu1 %6535  ;;  %vm6252_vm1 = vweird.f32 %v8014_v28  ;;  %vm6253_vm4 = vweird.f32 %v8036_v54 }
 0x1a9   : > { %v1524_v49 = vadd.s32 %v1523_v16, %v1519_v31  ;;  %v1393_v24 = vxor.u32 2147483648, %v1392_v59  ;;  %v6249_v36 = vsub.f32 1.0, %v6248_v46  ;;  %v8098_v23 = vshll.u32 %v11241_v34, %v8071_v50  ;;  %vm8142_vm9 = vmor %vm6252_vm1, %vm6253_vm4 }
 0x1ab   : > { %v1525_v17 = vadd.s32 536870912, %v1524_v49  ;;  %v1394_v47 = vsel %vm1273_vm11, %v1393_v24, %v1392_v59  ;;  %v8086_v59 = vshrl.u32 %v1593_v8, 5  ;;  %v8100_v24 = vand.u32 3, %v1415_v2 }
 0x1ac   : > { %v8063_v3 = vsel %vm1272_vm13, %v7754_v62, %v1394_v47  ;;  %v6250_v46 = vmul.f32 %v8036_v54, %v6249_v36  ;;  %v7339_v47 = vmov 0.0   ;;  %v8118_v36 = vadd.f32 1e-08, %v7805_v53 }
 0x1ad   : > { %v8046_v14 = vshrl.u32 %v1525_v17, 30  ;;  %v1399_v9 = vmul.f32 %v8063_v3, %v8063_v3  ;;  %v8083_v27 = vpop.xlane.xlu0 %1020  ;;  %v8089_v17 = vsel %vm1086_vm14, %v7845_v37, %v1085_v25  ;;  %6519 = vst [vmem:[%s8105_s14] sm:$0xff] %v7339_v47  ;;  %vm1418_vm7 = vcmp.eq.s32.totalorder %v8100_v24, 0 }
 0x1ae   : > { %6583 = vst.msk [vmem:[%s8105_s14] sm:$0xff] %vm11246_vm3, %v6536_v60  ;;  %vm1421_vm8 = vcmp.eq.s32.totalorder %v8100_v24, 2  ;;  %v6251_v53 = vadd.f32 %v8036_v54, %v6250_v46  ;;  %v6256_v46 = vand.u32 2147483647, %v8014_v28  ;;  %vm1414_vm11 = vweird.f32 %v7754_v62 }
 0x1af   : > { %v1527_v35 = vshll.u32 %v8046_v14, 30  ;;  %v1400_v57 = vmul.f32 -0.001358992, %v1399_v9  ;;  %v1407_v16 = vmul.f32 -0.00019511016, %v1399_v9  ;;  %6520 = vst [vmem:[%s8105_s14 + $0x8] sm:$0xff] %v7339_v47  ;;  %v1604_v62 = vshll.u32 %v11247_v11, %v8071_v50 }
 0x1b0   : > { %v713_v56 = vpop.f32.mrf.mxu2  ;;  %6521 = vst [vmem:[%s8105_s14 + $0x10] sm:$0xff] %v7339_v47  ;;  %vm1417_vm12 = vcmp.lt.s32.totalorder %v8100_v24, 2  ;;  %vm8155_vm14 = vcmp.le.f32.partialorder %v1426_v26, 0.7853982  ;;  %v6255_v26 = vsel %vm8142_vm9, %v8036_v54, %v6251_v53  ;;  %vm6257_vm1 = vcmp.eq.f32.partialorder %v6256_v46, 8.507059e+37  ;;  %v6542_v45 = vpop.permute.xlu1 %6541 }
 0x1b1   : > { %v714_v55 = vadd.f32 %v8027_v40, %v713_v56  ;;  %v8080_v42 = vsub.s32 %v1524_v49, %v1527_v35  ;;  %v1401_v29 = vadd.f32 0.041655596, %v1400_v57  ;;  %v8094_v49 = vsub.s32 32, %v8071_v50  ;;  %6522 = vst [vmem:[%s8105_s14 + $0x18] sm:$0xff] %v7339_v47 }
 0x1b2   : > { %6523 = vst [vmem:[%s8105_s14 + $0x20] sm:$0xff] %v7339_v47 }
 0x1b3   : > { %7163 = vtanh.f32 %v714_v55  ;;  %v1408_v55 = vadd.f32 0.008332121, %v1407_v16  ;;  %v1402_v35 = vmul.f32 %v1401_v29, %v1399_v9  ;;  %vm1529_vm0 = vcmp.lt.s32.totalorder %v8080_v42, 0  ;;  %6524 = vst [vmem:[%s8105_s14 + $0x28] sm:$0xff] %v7339_v47 }
 0x1b4   : > { %7165 = vrsqrt.f32 %v8001_v58  ;;  %v1530_v2 = vsub.s32 0, %v8080_v42  ;;  %6525 = vst [vmem:[%s8105_s14 + $0x30] sm:$0xff] %v7339_v47 }
 0x1b5   : > { %v1409_v25 = vmul.f32 %v1408_v55, %v1399_v9  ;;  %v1403_v57 = vadd.f32 -0.4999988, %v1402_v35  ;;  %6526 = vst [vmem:[%s8105_s14 + $0x38] sm:$0xff] %v7339_v47 }
 0x1b6   : > { %6527 = vst [vmem:[%s8105_s14 + $0x40] sm:$0xff] %v7339_v47 }
 0x1b7   : > { %v1410_v16 = vadd.f32 -0.16666654, %v1409_v25  ;;  %v1404_v55 = vmul.f32 %v1403_v57, %v1399_v9  ;;  %6528 = vst [vmem:[%s8105_s14 + $0x48] sm:$0xff] %v7339_v47 }
 0x1b8   : > { %v716_v41 = vpop.f32.mrf.mxu2  ;;  %6529 = vst [vmem:[%s8105_s14 + $0x50] sm:$0xff] %v7339_v47 }
 0x1b9   : > { %v7164_v18 = vpop.eup %7163  ;;  %v717_v56 = vadd.f32 %v8027_v40, %v716_v41  ;;  %v8109_v41 = vand.u32 3, %v1398_v30  ;;  %v6258_v30 = vand.u32 2147483648, %v8014_v28  ;;  %v1411_v60 = vmul.f32 %v1410_v16, %v1399_v9  ;;  %v8159_v28 = vpop.xlane.xlu2 %1026  ;;  %6530 = vst [vmem:[%s8105_s14 + $0x58] sm:$0xff] %v7339_v47 }
 0x1ba   : > { %6912 = vmatmul.msk.f32.vlgmr.msra.gmra.mxu3 %vm506_vm2, %v7164_v18  ;;  %v8103_v8 = vpop.eup %7165  ;;  %v8126_v18 = vshll.u32 %v11235_v7, %v8071_v50  ;;  %11293 = vst [vmem:[#allocation11_spill] sm:$0xff] %v8159_v28  ;;  %v1405_v57 = vadd.f32 1.0, %v1404_v55 }
 0x1bb   : > { %7167 = vtanh.f32 %v717_v56  ;;  %v1531_v56 = vsel %vm1529_vm0, %v1530_v2, %v8080_v42  ;;  %vm3900_vm13 = vcmp.eq.s32.totalorder %v8109_v41, 2  ;;  %v1412_v16 = vadd.f32 1.0, %v1411_v60  ;;  %6531 = vst [vmem:[%s8105_s14 + $0x60] sm:$0xff] %v7339_v47 }
 0x1bc   : > { %v1532_v25 = vclz %v1531_v56  ;;  %7169 = vrcp.f32 %v8118_v36  ;;  %v6259_v31 = vor.u32 1.1754944e-38, %v6258_v30  ;;  %vm1088_vm0 = vcmp.eq.f32.partialorder %v7845_v37, 0.0  ;;  %6532 = vst [vmem:[%s8105_s14 + $0x68] sm:$0xff] %v7339_v47 }
 0x1bd   : > { %v1413_v55 = vmul.f32 %v1412_v16, %v8063_v3  ;;  %v1422_v60 = vxor.u32 2147483648, %v1405_v57  ;;  %vm3896_vm15 = vcmp.lt.s32.totalorder %v8109_v41, 2  ;;  %vm3897_vm9 = vcmp.eq.s32.totalorder %v8109_v41, 0  ;;  %6533 = vst [vmem:[%s8105_s14 + $0x70] sm:$0xff] %v7339_v47 }
 0x1be   : > { %v6932_v56 = vadd.s32 4294967294, %v1532_v25  ;;  %v1599_v30 = vshrl.u32 %v11235_v7, %v8094_v49  ;;  %v6260_v25 = vsel %vm6257_vm1, %v6259_v31, %v6255_v26  ;;  %6534 = vst [vmem:[%s8105_s14 + $0x78] sm:$0xff] %v7339_v47  ;;  %v1611_v37 = vshrl.u32 %v11239_v48, %v8094_v49 }
 0x1bf   : > { %v1419_v53 = vxor.u32 2147483648, %v1413_v55  ;;  %v1423_v3 = vsel %vm1421_vm8, %v1422_v60, %v1413_v55  ;;  %v3902_v35 = vsel %vm3900_vm13, %v1422_v60, %v1413_v55  ;;  %vm1616_vm8 = vcmp.lt.s32.totalorder %v8086_v59, 4 }
 0x1c0   : > { %v719_v29 = vpop.f32.mrf.mxu2  ;;  %vm6933_vm4 = vcmp.lt.s32.totalorder %v6932_v56, 0 }
 0x1c1   : > { %v7168_v19 = vpop.eup %7167  ;;  %v720_v2 = vadd.f32 %v8027_v40, %v719_v29  ;;  %v8165_v29 = vpop.xlane.xlu0 %1029  ;;  %v1535_v54 = vsel %vm6933_vm4, 0, %v6932_v56  ;;  %v1420_v55 = vsel %vm1418_vm7, %v1405_v57, %v1419_v53  ;;  %v3899_v60 = vsel %vm3897_vm9, %v1405_v57, %v1419_v53 }
 0x1c2   : > { %6913 = vmatmul.msk.f32.gmra.mxu3 %vm506_vm2, %v7168_v19  ;;  %11294 = vst [vmem:[#allocation12_spill] sm:$0xff] %v8165_v29  ;;  %v1550_v19 = vsub.s32 4, %v8046_v14  ;;  %v1536_v46 = vsub.s32 32, %v1535_v54  ;;  %v1540_v16 = vsub.s32 4294967266, %v1535_v54  ;;  %v8195_v7 = vpop.eup %7169  ;;  %v6538_v57 = vpop.permute.xlu2 %6537  ;;  %vm1615_vm7 = vcmp.lt.s32.totalorder %v8086_v59, 3 }
 0x1c3   : > { %7171 = vtanh.f32 %v720_v2  ;;  %v1537_v2 = vshll.u32 %v8080_v42, %v1535_v54  ;;  %v1602_v42 = vshrl.u32 %v11247_v11, %v8094_v49  ;;  %v3903_v54 = vsel %vm3896_vm15, %v3899_v60, %v3902_v35  ;;  %6584 = vst.msk [vmem:[%s8105_s14 + $0x8] sm:$0xff] %vm11246_vm3, %v6538_v57  ;;  %v7247_v60 = vld [vmem:[%s7461_s23] sm:$0xff] }
 0x1c4   : > { %v1551_v56 = vsel %vm1428_vm5, %v1550_v19, %v8046_v14  ;;  %v1538_v31 = vshrl.u32 %v8076_v4, %v1536_v46  ;;  %v1424_v19 = vsel %vm1417_vm12, %v1420_v55, %v1423_v3  ;;  %v1541_v20 = vadd.s32 127, %v1540_v16 }
 0x1c5   : > { %v1425_v4 = vsel %vm1414_vm11, nan, %v1424_v19  ;;  %v1553_v41 = vsel %vm8155_vm14, 0, %v1551_v56  ;;  %v6263_v46 = vmul.f32 %v8195_v7, %v8118_v36  ;;  %v1607_v16 = vshll.u32 %v11250_v15, %v8071_v50 }
 0x1c6   : > { %v1539_v24 = vor.u32 %v1538_v31, %v1537_v2  ;;  %v6261_v53 = vmul.f32 %v6260_v25, %v1425_v4  ;;  %v1542_v35 = vshll.u32 %v1541_v20, 23  ;;  %v1605_v2 = vshrl.u32 %v11250_v15, %v8094_v49 }
 0x1c7   : > { %v1608_v25 = vshrl.u32 %v11243_v43, %v8094_v49  ;;  %v1570_v47 = vadd.s32 3, %v1553_v41  ;;  %vm1613_vm15 = vcmp.lt.s32.totalorder %v8086_v59, 1  ;;  %v1597_v4 = vshrl.u32 %v11241_v34, %v8094_v49 }
 0x1c8   : > { %v722_v12 = vpop.f32.mrf.mxu2  ;;  %v6487_v20 = vsel %vm11245_vm6, 0.5, %v6261_v53  ;;  %v1543_v56 = vor.u32 4788187, %v1542_v35  ;;  %v1546_v55 = vcvt.s32.f32 %v1539_v24  ;;  %v1600_v57 = vor.u32 %v1599_v30, %v8098_v23 }
 0x1c9   : > { %v7172_v26 = vpop.eup %7171  ;;  %v723_v14 = vadd.f32 %v8027_v40, %v722_v12  ;;  %v8220_v12 = vsel %vm1414_vm11, nan, %v3903_v54  ;;  %v6540_v3 = vpop.permute.xlu0 %6539  ;;  %v6503_v31 = vmul.f32 %v7247_v60, %v6487_v20  ;;  %v6264_v54 = vsub.f32 1.0, %v6263_v46 }
 0x1ca   : > { %6914 = vmatmul.msk.f32.gmra.mxu3 %vm506_vm2, %v7172_v26  ;;  %11295 = vst [vmem:[#allocation13_spill] sm:$0xff] %v8220_v12  ;;  %v1610_v26 = vshll.u32 %v11243_v43, %v8071_v50  ;;  %v1544_v19 = vand.u32 2147483647, %v1543_v56  ;;  %v8260_v50 = vor.u32 %v1602_v42, %v8126_v18  ;;  %v1606_v53 = vor.u32 %v1605_v2, %v1604_v62 }
 0x1cb   : > { %7173 = vtanh.f32 %v723_v14  ;;  %6585 = vst.msk [vmem:[%s8105_s14 + $0x10] sm:$0xff] %vm11246_vm3, %v6540_v3  ;;  %v8253_v14 = vsel %vm1088_vm0, %v1089_v10, %v8089_v17  ;;  %6632 = vrot.lane.b32.xlu0 %v6503_v31, %s7340_s16  ;;  %v1609_v3 = vor.u32 %v1608_v25, %v1607_v16  ;;  %v8265_v46 = vand.u32 3, %v1570_v47 }
 0x1cc   : > { %11296 = vst [vmem:[#allocation14_spill] sm:$0xff] %v8253_v14  ;;  %v1547_v35 = vmul.f32 %v1546_v55, %v1544_v19  ;;  %v6273_v23 = vand.u32 2147483648, %v8118_v36  ;;  %v8269_v30 = vand.u32 3, %v1553_v41  ;;  %v1612_v20 = vor.u32 %v1611_v37, %v1610_v26 }
 0x1cd   : > { %v6265_v49 = vmul.f32 %v8195_v7, %v6264_v54  ;;  %vm1614_vm11 = vcmp.lt.s32.totalorder %v8086_v59, 2  ;;  %vm6267_vm12 = vweird.f32 %v8118_v36  ;;  %vm6268_vm13 = vweird.f32 %v8195_v7 }
 0x1ce   : > { %v1548_v18 = vxor.u32 2147483648, %v1547_v35  ;;  %v1621_v42 = vsel %vm1613_vm15, %v1600_v57, %v8260_v50  ;;  %v1622_v41 = vsel %vm1616_vm8, %v1609_v3, 920167782  ;;  %v6271_v2 = vand.u32 2147483647, %v8118_v36 }
 0x1cf   : > { %v8285_v16 = vor.u32 1.1754944e-38, %v6273_v23  ;;  %v1623_v25 = vsel %vm1615_vm7, %v1606_v53, %v1622_v41  ;;  %v1625_v47 = vsel %vm1613_vm15, %v8260_v50, %v1606_v53  ;;  %v1626_v60 = vsel %vm1616_vm8, %v1612_v20, 1326507024 }
 0x1d0   : > { %v725_v24 = vpop.f32.mrf.mxu2  ;;  %v1549_v62 = vsel %vm1428_vm5, %v1548_v18, %v1547_v35  ;;  %v1624_v55 = vsel %vm1614_vm11, %v1621_v42, %v1623_v25  ;;  %v8304_v26 = vadd.f32 %v8195_v7, %v6265_v49  ;;  %v1627_v9 = vsel %vm1615_vm7, %v1609_v3, %v1626_v60  ;;  %vm8316_vm5 = vmor %vm6267_vm12, %vm6268_vm13 }
 0x1d1   : > { %v7174_v17 = vpop.eup %7173  ;;  %v726_v10 = vadd.f32 %v8027_v40, %v725_v24  ;;  %v8292_v56 = vsel %vm8155_vm14, %v7828_v1, %v1549_v62  ;;  %v11297_v19 = vor.u32 8388608, %v8060_v33  ;;  %v1628_v3 = vsel %vm1614_vm11, %v1625_v47, %v1627_v9 }
 0x1d2   : > { %6915 = vmatmul.msk.f32.gmra.mxu3 %vm506_vm2, %v7174_v17  ;;  %v1554_v31 = vmul.f32 %v8292_v56, %v8292_v56  ;;  %v8322_v17 = vsel %vm1613_vm15, %v1597_v4, %v1600_v57  ;;  %v1655_v33 = vshrl.u32 %v1624_v55, 16  ;;  %v1618_v49 = vsel %vm1616_vm8, %v1606_v53, 2102212464 }
 0x1d3   : > { %7175 = vtanh.f32 %v726_v10  ;;  %v8310_v54 = vshll.u32 %v11297_v19, 8  ;;  %v1654_v10 = vand.u32 65535, %v1624_v55  ;;  %v1632_v57 = vand.u32 65535, %v1628_v3 }
 0x1d4   : > { %v1555_v20 = vmul.f32 -0.001358992, %v1554_v31  ;;  %v1562_v18 = vmul.f32 -0.00019511016, %v1554_v31  ;;  %v1633_v42 = vshrl.u32 %v1628_v3, 16  ;;  %v6270_v25 = vsel %vm8316_vm5, %v8195_v7, %v8304_v26 }
 0x1d5   : > { %v1630_v36 = vand.u32 65535, %v8310_v54  ;;  %v1631_v4 = vshrl.u32 %v8310_v54, 16  ;;  %vm1576_vm14 = vcmp.eq.s32.totalorder %v8265_v46, 2  ;;  %vm4054_vm0 = vcmp.eq.s32.totalorder %v8269_v30, 2 }
 0x1d6   : > { %v1556_v41 = vadd.f32 0.041655596, %v1555_v20  ;;  %v1563_v62 = vadd.f32 0.008332121, %v1562_v18  ;;  %vm11262_vm1 = vcmp.lt.f32.partialorder %v8253_v14, 1e-06  ;;  %vm1569_vm13 = vweird.f32 %v7828_v1 }
 0x1d7   : > { %v1634_v55 = vmul.u32 %v1632_v57, %v1630_v36  ;;  %v1635_v47 = vmul.u32 %v1633_v42, %v1630_v36  ;;  %v8338_v60 = vmul.u32 %v1632_v57, %v1631_v4  ;;  %vm8341_vm4 = vcmp.eq.f32.partialorder %v6271_v2, 8.507059e+37 }
 0x1d8   : > { %v728_v24 = vpop.f32.mrf.mxu2  ;;  %v1557_v53 = vmul.f32 %v1556_v41, %v1554_v31  ;;  %v1564_v9 = vmul.f32 %v1563_v62, %v1554_v31  ;;  %v1657_v3 = vmul.u32 %v1655_v33, %v1630_v36  ;;  %vm1573_vm9 = vcmp.eq.s32.totalorder %v8265_v46, 0 }
 0x1d9   : > { %v7176_v35 = vpop.eup %7175  ;;  %v729_v23 = vadd.f32 %v8027_v40, %v728_v24  ;;  %v1656_v24 = vmul.u32 %v1654_v10, %v1630_v36  ;;  %vm4051_vm15 = vcmp.eq.s32.totalorder %v8269_v30, 0  ;;  %v1637_v7 = vmul.u32 %v1633_v42, %v1631_v4 }
 0x1da   : > { %6916 = vmatmul.msk.f32.gmra.mxu3 %vm506_vm2, %v7176_v35  ;;  %v1638_v26 = vshll.u32 %v1635_v47, 16  ;;  %v1640_v37 = vshll.u32 %v8338_v60, 16  ;;  %v8348_v35 = vmul.u32 %v1654_v10, %v1631_v4  ;;  %v1565_v20 = vadd.f32 -0.16666654, %v1564_v9 }
 0x1db   : > { %7177 = vtanh.f32 %v729_v23  ;;  %v1558_v23 = vadd.f32 -0.4999988, %v1557_v53  ;;  %vm1572_vm8 = vcmp.lt.s32.totalorder %v8265_v46, 2  ;;  %vm4050_vm12 = vcmp.lt.s32.totalorder %v8269_v30, 2 }
 0x1dc   : > { %v1639_v2 = vshrl.u32 %v1635_v47, 16  ;;  %v1660_v18 = vshll.u32 %v1657_v3, 16  ;;  %v1641_v36 = vshrl.u32 %v8338_v60, 16  ;;  %vm1642_vm5 = vc.u32 %v1634_v55, %v1638_v26 }
 0x1dd   : > { %v1644_v42 = vadd.s32 %v1638_v26, %v1634_v55  ;;  %v1659_v41 = vmul.u32 %v1655_v33, %v1631_v4  ;;  %v1559_v48 = vmul.f32 %v1558_v23, %v1554_v31  ;;  %v1566_v53 = vmul.f32 %v1565_v20, %v1554_v31 }
 0x1de   : > { %v11302_v9 = vmov 0   ;;  %v1662_v47 = vshll.u32 %v8348_v35, 16  ;;  %vm1664_vm3 = vc.u32 %v1656_v24, %v1660_v18  ;;  %v1666_v26 = vadd.s32 %v1660_v18, %v1656_v24 }
 0x1df   : > { %v1643_v34 = vsel %vm1642_vm5, 1, %v11302_v9  ;;  %vm1646_vm6 = vc.u32 %v1644_v42, %v1640_v37  ;;  %v1560_v11 = vadd.f32 1.0, %v1559_v48  ;;  %v1567_v60 = vadd.f32 1.0, %v1566_v53 }
 0x1e0   : > { %v731_v57 = vpop.f32.mrf.mxu2  ;;  %v1645_v43 = vadd.s32 %v1643_v34, %v1637_v7  ;;  %v1647_v55 = vsel %vm1646_vm6, 1, %v11302_v9  ;;  %v1665_v4 = vsel %vm1664_vm3, 1, %v11302_v9  ;;  %v8363_v31 = vsel %vm11262_vm1, 1.0, %v8253_v14 }
 0x1e1   : > { %v7178_v62 = vpop.eup %7177  ;;  %v732_v10 = vadd.f32 %v8027_v40, %v731_v57  ;;  %v1568_v34 = vmul.f32 %v1567_v60, %v8292_v56  ;;  %v1577_v7 = vxor.u32 2147483648, %v1560_v11  ;;  %v1667_v37 = vadd.s32 %v1665_v4, %v1659_v41  ;;  %v7248_v4 = vld [vmem:[%s7461_s23 + $0x8] sm:$0xff] }
 0x1e2   : > { %6917 = vmatmul.msk.f32.gmra.mxu3 %vm506_vm2, %v7178_v62  ;;  %v1649_v33 = vadd.s32 %v1647_v55, %v1645_v43  ;;  %v8367_v23 = vmul.f32 0.5, %v8363_v31  ;;  %v1619_v48 = vsel %vm1615_vm7, %v8260_v50, %v1618_v49  ;;  %v1661_v20 = vshrl.u32 %v1657_v3, 16 }
 0x1e3   : > { %7179 = vtanh.f32 %v732_v10  ;;  %vm1668_vm3 = vc.u32 %v1666_v26, %v1662_v47  ;;  %v1574_v24 = vxor.u32 2147483648, %v1568_v34  ;;  %v1578_v18 = vsel %vm1576_vm14, %v1577_v7, %v1568_v34 }
 0x1e4   : > { %v1650_v43 = vadd.s32 %v1649_v33, %v1639_v2  ;;  %v4056_v57 = vsel %vm4054_vm0, %v1577_v7, %v1568_v34  ;;  %v1669_v56 = vsel %vm1668_vm3, 1, %v11302_v9  ;;  %v6275_v42 = vsel %vm8341_vm4, %v8285_v16, %v6270_v25 }
 0x1e5   : > { %v1663_v41 = vshrl.u32 %v8348_v35, 16  ;;  %v1671_v62 = vadd.s32 %v1669_v56, %v1667_v37  ;;  %v1894_v50 = vand.u32 2139095040, %v8367_v23  ;;  %v1575_v3 = vsel %vm1573_vm9, %v1560_v11, %v1574_v24 }
 0x1e6   : > { %v4053_v2 = vsel %vm4051_vm15, %v1560_v11, %v1574_v24  ;;  %v8386_v10 = vadd.s32 %v1650_v43, %v1641_v36  ;;  %v8388_v53 = vadd.s32 %v1666_v26, %v1662_v47  ;;  %v1579_v19 = vsel %vm1572_vm8, %v1575_v3, %v1578_v18 }
 0x1e7   : > { %v4057_v16 = vsel %vm4050_vm12, %v4053_v2, %v4056_v57  ;;  %v1620_v25 = vsel %vm1614_vm11, %v8322_v17, %v1619_v48  ;;  %v1672_v35 = vadd.s32 %v1671_v62, %v1661_v20  ;;  %v1580_v11 = vsel %vm1569_vm13, nan, %v1579_v19 }
 0x1e8   : > { %v8402_v36 = vsel %vm1569_vm13, nan, %v4057_v16  ;;  %v1895_v46 = vshrl.u32 %v1894_v50, 23  ;;  %7181 = vrsqrt.f32 %v7998_v0  ;;  %v6276_v30 = vmul.f32 %v6275_v42, %v1580_v11 }
 0x1e9   : > { %v7180_v49 = vpop.eup %7179  ;;  %11303 = vst [vmem:[#allocation15_spill] sm:$0xff] %v8402_v36  ;;  %v1673_v47 = vadd.s32 %v1672_v35, %v1663_v41  ;;  %v11304_v60 = vsub.f32 1.5, %v8048_v39  ;;  %v1674_v17 = vmul.u32 %v8310_v54, %v1620_v25  ;;  %vm1676_vm6 = vc.u32 %v8386_v10, %v8388_v53 }
 0x1ea   : > { %6918 = vmatmul.msk.f32.gmra.mxu3 %vm506_vm2, %v7180_v49  ;;  %v6940_v55 = vadd.s32 4294967169, %v1895_v46  ;;  %v6488_v1 = vsel %vm11269_vm10, 0.5, %v6276_v30  ;;  %vm1074_vm11 = vcmp.eq.f32.partialorder %v7876_v5, inf  ;;  %v1104_v54 = vmul.f32 %v8103_v8, %v8001_v58 }
 0x1eb   : > { %v1072_v59 = vmul.f32 %v7907_v52, %v11304_v60  ;;  %v1677_v33 = vadd.s32 1, %v1673_v47  ;;  %v6504_v26 = vmul.f32 %v7248_v4, %v6488_v1  ;;  %v11249_v48 = vand.u32 2147483647, %v8367_v23 }
 0x1ec   : > { %v1901_v34 = vadd.s32 1, %v6940_v55  ;;  %v1077_v18 = vand.u32 2147483648, %v7876_v5  ;;  %vm1076_vm14 = vcmp.eq.f32.partialorder %v7876_v5, 0.0  ;;  %v1105_v62 = vmul.f32 %v8103_v8, %v1104_v54 }
 0x1ed   : > { %v1678_v7 = vsel %vm1676_vm6, %v1677_v33, %v1673_v47  ;;  %v1073_v37 = vmul.f32 %v1072_v59, %v7876_v5  ;;  %6634 = vrot.lane.b32.xlu2 %v6504_v26, %s7340_s16  ;;  %v1898_v50 = vand.u32 8388607, %v11249_v48  ;;  %v11305_v49 = vmov 2475754826  }
 0x1ee   : > { %v1679_v39 = vadd.s32 %v1678_v7, %v1674_v17  ;;  %vm1902_vm7 = vcmp.gt.s32.totalorder %v1901_v34, 0  ;;  %v8417_v52 = vpop.eup %7181  ;;  %v11306_v16 = vmov 2131351028   ;;  %v11307_v25 = vmov 920167782  }
 0x1ef   : > { %v1903_v43 = vsel %vm1902_vm7, %v1901_v34, 0  ;;  %v1075_v57 = vsel %vm1074_vm11, %v7876_v5, %v1073_v37  ;;  %v1092_v56 = vmul.f32 %v8417_v52, %v7998_v0  ;;  %v11308_v17 = vmov 683565275  }
 0x1f0   : > { %v1680_v20 = vadd.s32 536870912, %v1679_v39  ;;  %v1905_v24 = vand.u32 31, %v1903_v43  ;;  %v8439_v11 = vsel %vm1076_vm14, %v1077_v18, %v1075_v57  ;;  %v8441_v46 = vshrl.u32 %v1903_v43, 5 }
 0x1f1   : > { %v11309_v33 = vmov 1326507024   ;;  %v1093_v26 = vmul.f32 %v8417_v52, %v1092_v56  ;;  %v8457_v34 = vmul.f32 0.5, %v1105_v62  ;;  %vm11264_vm15 = vcmp.lt.f32.partialorder %v8439_v11, 1e-06 }
 0x1f2   : > { %v8427_v42 = vshrl.u32 %v1680_v20, 30  ;;  %v8429_v41 = vsub.s32 32, %v1905_v24  ;;  %v1911_v3 = vshll.u32 %v11305_v49, %v1905_v24  ;;  %v1917_v2 = vshll.u32 %v11250_v15, %v1905_v24 }
 0x1f3   : > { %v1914_v5 = vshll.u32 %v11306_v16, %v1905_v24  ;;  %v1920_v35 = vshll.u32 %v11307_v25, %v1905_v24  ;;  %v1908_v55 = vshll.u32 %v11308_v17, %v1905_v24  ;;  %v1899_v20 = vor.u32 8388608, %v1898_v50 }
 0x1f4   : > { %v1682_v19 = vshll.u32 %v8427_v42, 30  ;;  %v1912_v30 = vshrl.u32 %v11306_v16, %v8429_v41  ;;  %v1915_v47 = vshrl.u32 %v11250_v15, %v8429_v41  ;;  %v1918_v60 = vshrl.u32 %v11307_v25, %v8429_v41 }
 0x1f5   : > { %v1909_v1 = vshrl.u32 %v11305_v49, %v8429_v41  ;;  %v1921_v4 = vshrl.u32 %v11309_v33, %v8429_v41  ;;  %vm1923_vm4 = vcmp.lt.s32.totalorder %v8441_v46, 1  ;;  %vm1926_vm9 = vcmp.lt.s32.totalorder %v8441_v46, 4 }
 0x1f6   : > { %v8449_v59 = vsub.s32 %v1679_v39, %v1682_v19  ;;  %v8459_v7 = vor.u32 %v1912_v30, %v1911_v3  ;;  %v1919_v37 = vor.u32 %v1918_v60, %v1917_v2  ;;  %v1916_v54 = vor.u32 %v1915_v47, %v1914_v5 }
 0x1f7   : > { %v1922_v43 = vor.u32 %v1921_v4, %v1920_v35  ;;  %v8468_v18 = vadd.f32 1e-08, %v7993_v38  ;;  %v1910_v57 = vor.u32 %v1909_v1, %v1908_v55  ;;  %vm1925_vm8 = vcmp.lt.s32.totalorder %v8441_v46, 3 }
 0x1f8   : > { %vm1684_vm0 = vcmp.lt.s32.totalorder %v8449_v59, 0  ;;  %v1685_v39 = vsub.s32 0, %v8449_v59  ;;  %v8471_v56 = vmul.f32 0.5, %v1093_v26  ;;  %7183 = vrsqrt.f32 %v8032_v51 }
 0x1f9   : > { %v1932_v50 = vsel %vm1926_vm9, %v1919_v37, 920167782  ;;  %7185 = vrsqrt.f32 %v8029_v44  ;;  %vm1924_vm12 = vcmp.lt.s32.totalorder %v8441_v46, 2  ;;  %v1935_v38 = vsel %vm1923_vm4, %v8459_v7, %v1916_v54 }
 0x1fa   : > { %v1686_v24 = vsel %vm1684_vm0, %v1685_v39, %v8449_v59  ;;  %v1936_v3 = vsel %vm1926_vm9, %v1922_v43, 1326507024  ;;  %v8489_v35 = vsel %vm11264_vm15, 1.0, %v8439_v11  ;;  %7187 = vrcp.f32 %v8468_v18 }
 0x1fb   : > { %v1687_v62 = vclz %v1686_v24  ;;  %v1937_v5 = vsel %vm1925_vm8, %v1919_v37, %v1936_v3  ;;  %v1931_v30 = vsel %vm1923_vm4, %v1910_v57, %v8459_v7  ;;  %v1933_v47 = vsel %vm1925_vm8, %v1916_v54, %v1932_v50 }
 0x1fc   : > { %v8497_v60 = vshll.u32 %v1899_v20, 8  ;;  %v1675_v1 = vadd.s32 %v8388_v53, %v8386_v10  ;;  %v1938_v4 = vsel %vm1924_vm12, %v1935_v38, %v1937_v5  ;;  %vm1583_vm5 = vcmp.lt.s32.totalorder %v8005_v21, 0 }
 0x1fd   : > { %v6935_v19 = vadd.s32 4294967294, %v1687_v62  ;;  %v1705_v37 = vsub.s32 4, %v8427_v42  ;;  %v8507_v39 = vmul.f32 0.5, %v8489_v35  ;;  %v1934_v10 = vsel %vm1924_vm12, %v1931_v30, %v1933_v47 }
 0x1fe   : > { %v8509_v43 = vpop.eup %7183  ;;  %v1907_v50 = vshrl.u32 %v11308_v17, %v8429_v41  ;;  %v1940_v38 = vand.u32 65535, %v8497_v60  ;;  %v1942_v3 = vand.u32 65535, %v1938_v4  ;;  %v1928_v55 = vsel %vm1926_vm9, %v1916_v54, 2102212464 }
 0x1ff   : > { %vm6936_vm13 = vcmp.lt.s32.totalorder %v6935_v19, 0  ;;  %v8514_v53 = vpop.eup %7185  ;;  %v11310_v30 = vand.u32 2147483647, %v8005_v21  ;;  %v1965_v41 = vshrl.u32 %v1934_v10, 16  ;;  %v1706_v54 = vsel %vm1583_vm5, %v1705_v37, %v8427_v42 }
 0x200   : > { %v1690_v26 = vsel %vm6936_vm13, 0, %v6935_v19  ;;  %v1943_v19 = vshrl.u32 %v1938_v4, 16  ;;  %v1739_v4 = vand.u32 2139095040, %v8507_v39  ;;  %v1927_v15 = vsel %vm1923_vm4, %v1907_v50, %v1910_v57 }
 0x201   : > { %v1691_v20 = vsub.s32 32, %v1690_v26  ;;  %v1692_v24 = vshll.u32 %v8449_v59, %v1690_v26  ;;  %v1695_v62 = vsub.s32 4294967266, %v1690_v26  ;;  %v1941_v59 = vshrl.u32 %v8497_v60, 16  ;;  %v8522_v26 = vpop.eup %7187 }
 0x202   : > { %vm8526_vm3 = vcmp.le.f32.partialorder %v11310_v30, 0.7853982  ;;  %v1929_v30 = vsel %vm1925_vm8, %v8459_v7, %v1928_v55  ;;  %v1944_v32 = vmul.u32 %v1942_v3, %v1940_v38  ;;  %v1945_v36 = vmul.u32 %v1943_v19, %v1940_v38 }
 0x203   : > { %v1693_v5 = vshrl.u32 %v1675_v1, %v1691_v20  ;;  %v1696_v2 = vadd.s32 127, %v1695_v62  ;;  %v1964_v62 = vand.u32 65535, %v1934_v10  ;;  %v1947_v42 = vmul.u32 %v1943_v19, %v1941_v59 }
 0x204   : > { %v1948_v37 = vshll.u32 %v1945_v36, 16  ;;  %v1967_v10 = vmul.u32 %v1965_v41, %v1940_v38  ;;  %v8548_v7 = vsel %vm1924_vm12, %v1927_v15, %v1929_v30  ;;  %v1949_v19 = vshrl.u32 %v1945_v36, 16  ;;  %v6544_v15 = vpop.permute.xlu0 %6543 }
 0x205   : > { %v1694_v1 = vor.u32 %v1693_v5, %v1692_v24  ;;  %v1697_v20 = vshll.u32 %v1696_v2, 23  ;;  %v6278_v24 = vmul.f32 %v8522_v26, %v8468_v18  ;;  %v1946_v2 = vmul.u32 %v1942_v3, %v1941_v59 }
 0x206   : > { %v8544_v5 = vsel %vm8526_vm3, 0, %v1706_v54  ;;  %v1968_v50 = vmul.u32 %v1964_v62, %v1941_v59  ;;  %vm1952_vm6 = vc.u32 %v1944_v32, %v1948_v37  ;;  %v1970_v3 = vshll.u32 %v1967_v10, 16  ;;  %v734_v54 = vpop.f32.mrf.mxu2 }
 0x207   : > { %v1698_v61 = vor.u32 4788187, %v1697_v20  ;;  %v1701_v48 = vcvt.s32.f32 %v1694_v1  ;;  %v1950_v55 = vshll.u32 %v1946_v2, 16  ;;  %v1954_v1 = vadd.s32 %v1948_v37, %v1944_v32 }
 0x208   : > { %v1966_v20 = vmul.u32 %v1964_v62, %v1940_v38  ;;  %v6279_v22 = vsub.f32 1.0, %v6278_v24  ;;  %v1953_v29 = vsel %vm1952_vm6, 1, %v11302_v9  ;;  %vm11313_vm7 = vcmask 23552  }
 0x209   : > { %v1699_v57 = vand.u32 2147483647, %v1698_v61  ;;  %v735_v61 = vadd.f32 %v8027_v40, %v734_v54  ;;  %6586 = vst.msk [vmem:[%s8105_s14 + $0x18] sm:$0xff] %vm11313_vm7, %v6542_v45  ;;  %v1955_v46 = vadd.s32 %v1953_v29, %v1947_v42  ;;  %vm1956_vm11 = vc.u32 %v1954_v1, %v1950_v55  ;;  %vm11314_vm14 = vmmov %vm11313_vm7 }
 0x20a   : > { %v1969_v30 = vmul.u32 %v1965_v41, %v1941_v59  ;;  %6587 = vst.msk [vmem:[%s8105_s14 + $0x20] sm:$0xff] %vm11314_vm14, %v6544_v15  ;;  %v1951_v32 = vshrl.u32 %v1946_v2, 16  ;;  %v1972_v38 = vshll.u32 %v1968_v50, 16  ;;  %vm1974_vm0 = vc.u32 %v1966_v20, %v1970_v3 }
 0x20b   : > { %v1702_v12 = vmul.f32 %v1701_v48, %v1699_v57  ;;  %v1957_v48 = vsel %vm1956_vm11, 1, %v11302_v9  ;;  %7189 = vtanh.f32 %v735_v61  ;;  %v1976_v36 = vadd.s32 %v1970_v3, %v1966_v20 }
 0x20c   : > { %v1959_v62 = vadd.s32 %v1957_v48, %v1955_v46  ;;  %v1971_v24 = vshrl.u32 %v1967_v10, 16  ;;  %v1975_v45 = vsel %vm1974_vm0, 1, %v11302_v9  ;;  %v1740_v29 = vshrl.u32 %v1739_v4, 23 }
 0x20d   : > { %v1703_v28 = vxor.u32 2147483648, %v1702_v12  ;;  %v1977_v2 = vadd.s32 %v1975_v45, %v1969_v30  ;;  %vm1978_vm4 = vc.u32 %v1976_v36, %v1972_v38  ;;  %v1725_v37 = vadd.s32 3, %v8544_v5 }
 0x20e   : > { %v1960_v41 = vadd.s32 %v1959_v62, %v1949_v19  ;;  %v1979_v57 = vsel %vm1978_vm4, 1, %v11302_v9  ;;  %v1973_v10 = vshrl.u32 %v1968_v50, 16  ;;  %v8570_v4 = vadd.s32 %v1976_v36, %v1972_v38 }
 0x20f   : > { %v1704_v40 = vsel %vm1583_vm5, %v1703_v28, %v1702_v12  ;;  %v6937_v28 = vadd.s32 4294967169, %v1740_v29  ;;  %v6280_v12 = vmul.f32 %v8522_v26, %v6279_v22  ;;  %v1981_v55 = vadd.s32 %v1979_v57, %v1977_v2 }
 0x210   : > { %v8563_v59 = vsel %vm8526_vm3, %v8005_v21, %v1704_v40  ;;  %v8572_v20 = vadd.s32 %v1960_v41, %v1951_v32  ;;  %vm6282_vm9 = vweird.f32 %v8468_v18  ;;  %vm6283_vm8 = vweird.f32 %v8522_v26 }
 0x211   : > { %v1709_v42 = vmul.f32 %v8563_v59, %v8563_v59  ;;  %v1746_v3 = vadd.s32 1, %v6937_v28  ;;  %v7190_v54 = vpop.eup %7189  ;;  %v1982_v19 = vadd.s32 %v1981_v55, %v1971_v24  ;;  %v1984_v61 = vmul.u32 %v8497_v60, %v8548_v7  ;;  %vm8585_vm13 = vmor %vm6282_vm9, %vm6283_vm8 }
 0x212   : > { %v8578_v50 = vand.u32 3, %v1725_v37  ;;  %6919 = vmatmul.msk.f32.gmra.mxu3 %vm506_vm2, %v7190_v54  ;;  %v6281_v46 = vadd.f32 %v8522_v26, %v6280_v12  ;;  %v6288_v30 = vand.u32 2147483648, %v8468_v18  ;;  %v6286_v60 = vand.u32 2147483647, %v8468_v18 }
 0x213   : > { %v1710_v47 = vmul.f32 -0.001358992, %v1709_v42  ;;  %v1717_v1 = vmul.f32 -0.00019511016, %v1709_v42  ;;  %vm1747_vm12 = vcmp.gt.s32.totalorder %v1746_v3, 0  ;;  %v1983_v32 = vadd.s32 %v1982_v19, %v1973_v10 }
 0x214   : > { %v1748_v48 = vsel %vm1747_vm12, %v1746_v3, 0  ;;  %vm1986_vm5 = vc.u32 %v8572_v20, %v8570_v4  ;;  %v8594_v7 = vmul.f32 %v8509_v43, %v8032_v51  ;;  %v4203_v40 = vand.u32 3, %v8544_v5 }
 0x215   : > { %v1711_v15 = vadd.f32 0.041655596, %v1710_v47  ;;  %v1718_v22 = vadd.f32 0.008332121, %v1717_v1  ;;  %v1987_v24 = vadd.s32 1, %v1983_v32  ;;  %v1750_v45 = vand.u32 31, %v1748_v48 }
 0x216   : > { %v8599_v29 = vmul.f32 %v8514_v53, %v8029_v44  ;;  %vm1727_vm3 = vcmp.lt.s32.totalorder %v8578_v50, 2  ;;  %vm1724_vm6 = vweird.f32 %v8005_v21  ;;  %v6285_v18 = vsel %vm8585_vm13, %v8522_v26, %v6281_v46 }
 0x217   : > { %v1712_v38 = vmul.f32 %v1711_v15, %v1709_v42  ;;  %v1719_v62 = vmul.f32 %v1718_v22, %v1709_v42  ;;  %v6289_v37 = vor.u32 1.1754944e-38, %v6288_v30  ;;  %v1988_v57 = vsel %vm1986_vm5, %v1987_v24, %v1983_v32 }
 0x218   : > { %v11317_v5 = vand.u32 2147483647, %v8507_v39  ;;  %vm6287_vm7 = vcmp.eq.f32.partialorder %v6286_v60, 8.507059e+37  ;;  %v1989_v55 = vadd.s32 %v1988_v57, %v1984_v61  ;;  %vm1728_vm11 = vcmp.eq.s32.totalorder %v8578_v50, 0 }
 0x219   : > { %v1713_v41 = vadd.f32 -0.4999988, %v1712_v38  ;;  %v1720_v2 = vadd.f32 -0.16666654, %v1719_v62  ;;  %vm1731_vm14 = vcmp.eq.s32.totalorder %v8578_v50, 2  ;;  %vm4205_vm0 = vcmp.eq.s32.totalorder %v4203_v40, 0 }
 0x21a   : > { %v8608_v28 = vand.u32 8388607, %v11317_v5  ;;  %v8612_v47 = vsub.s32 32, %v1750_v45  ;;  %vm4208_vm4 = vcmp.eq.s32.totalorder %v4203_v40, 2  ;;  %v1990_v26 = vadd.s32 536870912, %v1989_v55 }
 0x21b   : > { %v1714_v12 = vmul.f32 %v1713_v41, %v1709_v42  ;;  %v1721_v10 = vmul.f32 %v1720_v2, %v1709_v42  ;;  %vm4204_vm9 = vcmp.lt.s32.totalorder %v4203_v40, 2  ;;  %v6290_v54 = vsel %vm6287_vm7, %v6289_v37, %v6285_v18 }
 0x21c   : > { %v1744_v19 = vor.u32 8388608, %v8608_v28  ;;  %v8615_v15 = vshrl.u32 %v1748_v48, 5  ;;  %v8618_v22 = vshrl.u32 %v1990_v26, 30  ;;  %v1753_v46 = vshll.u32 %v11308_v17, %v1750_v45 }
 0x21d   : > { %v1715_v1 = vadd.f32 1.0, %v1714_v12  ;;  %v1722_v3 = vadd.f32 1.0, %v1721_v10  ;;  %v1756_v30 = vshll.u32 %v11305_v49, %v1750_v45  ;;  %v1759_v32 = vshll.u32 %v11306_v16, %v1750_v45 }
 0x21e   : > { %v11318_v38 = vmov 2102212464   ;;  %v1763_v36 = vshrl.u32 %v11307_v25, %v8612_v47  ;;  %v1992_v24 = vshll.u32 %v8618_v22, 30  ;;  %v1754_v41 = vshrl.u32 %v11305_v49, %v8612_v47 }
 0x21f   : > { %v1723_v42 = vmul.f32 %v1722_v3, %v8563_v59  ;;  %v1732_v61 = vxor.u32 2147483648, %v1715_v1  ;;  %v1762_v62 = vshll.u32 %v11318_v38, %v1750_v45  ;;  %v1757_v2 = vshrl.u32 %v11306_v16, %v8612_v47 }
 0x220   : > { %v1765_v18 = vshll.u32 %v11307_v25, %v1750_v45  ;;  %v1766_v37 = vshrl.u32 %v11309_v33, %v8612_v47  ;;  %v1993_v28 = vsub.s32 %v1989_v55, %v1992_v24  ;;  %v1760_v12 = vshrl.u32 %v11318_v38, %v8612_v47 }
 0x221   : > { %v1729_v60 = vxor.u32 2147483648, %v1723_v42  ;;  %v1733_v48 = vsel %vm1731_vm14, %v1732_v61, %v1723_v42  ;;  %v4210_v59 = vsel %vm4208_vm4, %v1732_v61, %v1723_v42  ;;  %v1764_v26 = vor.u32 %v1763_v36, %v1762_v62 }
 0x222   : > { %vm1771_vm8 = vcmp.lt.s32.totalorder %v8615_v15, 4  ;;  %vm1994_vm12 = vcmp.lt.s32.totalorder %v1993_v28, 0  ;;  %v1995_v55 = vsub.s32 0, %v1993_v28  ;;  %v8653_v61 = vadd.f32 1e-08, %v8363_v31 }
 0x223   : > { %v1730_v57 = vsel %vm1728_vm11, %v1715_v1, %v1729_v60  ;;  %v4207_v5 = vsel %vm4205_vm0, %v1715_v1, %v1729_v60  ;;  %v1755_v50 = vor.u32 %v1754_v41, %v1753_v46  ;;  %v1767_v40 = vor.u32 %v1766_v37, %v1765_v18 }
 0x224   : > { %v1734_v10 = vsel %vm1727_vm3, %v1730_v57, %v1733_v48  ;;  %v4211_v3 = vsel %vm4204_vm9, %v4207_v5, %v4210_v59  ;;  %v1996_v60 = vsel %vm1994_vm12, %v1995_v55, %v1993_v28  ;;  %v1758_v62 = vor.u32 %v1757_v2, %v1756_v30 }
 0x225   : > { %v1735_v45 = vsel %vm1724_vm6, nan, %v1734_v10  ;;  %v8650_v42 = vsel %vm1724_vm6, nan, %v4211_v3  ;;  %v1761_v36 = vor.u32 %v1760_v12, %v1759_v32  ;;  %vm1768_vm13 = vcmp.lt.s32.totalorder %v8615_v15, 1 }
 0x226   : > { %11319 = vst [vmem:[#allocation16_spill] sm:$0xff] %v8650_v42  ;;  %v6291_v1 = vmul.f32 %v6290_v54, %v1735_v45  ;;  %vm11320_vm5 = vcmp.lt.f32.partialorder %v7946_v13, 1e-06  ;;  %v1997_v21 = vclz %v1996_v60  ;;  %vm1770_vm3 = vcmp.lt.s32.totalorder %v8615_v15, 3  ;;  %v7249_v54 = vld [vmem:[%s7461_s23 + $0x10] sm:$0xff] }
 0x227   : > { %v1777_v59 = vsel %vm1771_vm8, %v1764_v26, 920167782  ;;  %v11321_v31 = vand.u32 2147483647, %v8367_v23  ;;  %vm1893_vm7 = vcmp.lt.s32.totalorder %v8367_v23, 0  ;;  %v11324_v30 = vsub.f32 1.5, %v8471_v56 }
 0x228   : > { %v6489_v48 = vsel %vm11320_vm5, 0.5, %v6291_v1  ;;  %v6941_v41 = vadd.s32 4294967294, %v1997_v21  ;;  %7191 = vrcp.f32 %v8653_v61  ;;  %v1781_v2 = vsel %vm1771_vm8, %v1767_v40, 1326507024 }
 0x229   : > { %v6505_v24 = vmul.f32 %v7249_v54, %v6489_v48  ;;  %vm8664_vm6 = vcmp.le.f32.partialorder %v11321_v31, 0.7853982  ;;  %v1096_v32 = vmul.f32 %v8417_v52, %v11324_v30  ;;  %v8675_v18 = vshll.u32 %v1744_v19, 8 }
 0x22a   : > { %v2015_v37 = vsub.s32 4, %v8618_v22  ;;  %vm1769_vm11 = vcmp.lt.s32.totalorder %v8615_v15, 2  ;;  %v1776_v57 = vsel %vm1768_vm13, %v1755_v50, %v1758_v62  ;;  %v1778_v52 = vsel %vm1770_vm3, %v1761_v36, %v1777_v59 }
 0x22b   : > { %6636 = vrot.lane.b32.xlu1 %v6505_v24, %s7340_s16  ;;  %v1985_v56 = vadd.s32 %v8570_v4, %v8572_v20  ;;  %vm6942_vm14 = vcmp.lt.s32.totalorder %v6941_v41, 0  ;;  %v1780_v19 = vsel %vm1768_vm13, %v1758_v62, %v1761_v36  ;;  %v1782_v5 = vsel %vm1770_vm3, %v1764_v26, %v1781_v2 }
 0x22c   : > { %v2000_v12 = vsel %vm6942_vm14, 0, %v6941_v41  ;;  %v1786_v10 = vshrl.u32 %v8675_v18, 16  ;;  %v1097_v3 = vmul.f32 %v1096_v32, %v7998_v0  ;;  %vm1098_vm0 = vcmp.eq.f32.partialorder %v7998_v0, inf }
 0x22d   : > { %v2001_v45 = vsub.s32 32, %v2000_v12  ;;  %v2002_v55 = vshll.u32 %v1993_v28, %v2000_v12  ;;  %v2005_v1 = vsub.s32 4294967266, %v2000_v12  ;;  %v1779_v4 = vsel %vm1769_vm11, %v1776_v57, %v1778_v52 }
 0x22e   : > { %v2016_v20 = vsel %vm1893_vm7, %v2015_v37, %v8618_v22  ;;  %v1752_v26 = vshrl.u32 %v11308_v17, %v8612_v47  ;;  %v1773_v40 = vsel %vm1771_vm8, %v1761_v36, 2102212464  ;;  %v1783_v60 = vsel %vm1769_vm11, %v1780_v19, %v1782_v5  ;;  %v8704_v48 = vpop.eup %7191 }
 0x22f   : > { %v2003_v28 = vshrl.u32 %v1985_v56, %v2001_v45  ;;  %v2006_v21 = vadd.s32 127, %v2005_v1  ;;  %v1787_v59 = vand.u32 65535, %v1783_v60  ;;  %v1809_v54 = vand.u32 65535, %v1779_v4 }
 0x230   : > { %v1785_v24 = vand.u32 65535, %v8675_v18  ;;  %v1810_v31 = vshrl.u32 %v1779_v4, 16  ;;  %v1099_v22 = vsel %vm1098_vm0, %v7998_v0, %v1097_v3  ;;  %vm1100_vm4 = vcmp.eq.f32.partialorder %v7998_v0, 0.0 }
 0x231   : > { %v2004_v47 = vor.u32 %v2003_v28, %v2002_v55  ;;  %v2007_v36 = vshll.u32 %v2006_v21, 23  ;;  %v8713_v30 = vsel %vm8664_vm6, 0, %v2016_v20  ;;  %v1101_v32 = vand.u32 2147483648, %v7998_v0 }
 0x232   : > { %v8718_v41 = vmul.f32 %v8704_v48, %v8653_v61  ;;  %v1772_v2 = vsel %vm1768_vm13, %v1752_v26, %v1755_v50  ;;  %v1774_v37 = vsel %vm1770_vm3, %v1758_v62, %v1773_v40  ;;  %v1788_v57 = vshrl.u32 %v1783_v60, 16 }
 0x233   : > { %v2008_v52 = vor.u32 4788187, %v2007_v36  ;;  %v2011_v56 = vcvt.s32.f32 %v2004_v47  ;;  %v1791_v19 = vmul.u32 %v1787_v59, %v1786_v10  ;;  %v1811_v5 = vmul.u32 %v1809_v54, %v1785_v24 }
 0x234   : > { %v1789_v12 = vmul.u32 %v1787_v59, %v1785_v24  ;;  %v1790_v3 = vmul.u32 %v1788_v57, %v1785_v24  ;;  %v1812_v45 = vmul.u32 %v1810_v31, %v1785_v24  ;;  %v1813_v55 = vmul.u32 %v1809_v54, %v1786_v10 }
 0x235   : > { %v2009_v1 = vand.u32 2147483647, %v2008_v52  ;;  %v8726_v4 = vsel %vm1769_vm11, %v1772_v2, %v1774_v37  ;;  %v1792_v20 = vmul.u32 %v1788_v57, %v1786_v10  ;;  %v1795_v28 = vshll.u32 %v1791_v19, 16 }
 0x236   : > { %v1793_v50 = vshll.u32 %v1790_v3, 16  ;;  %v1796_v26 = vshrl.u32 %v1791_v19, 16  ;;  %v1814_v21 = vmul.u32 %v1810_v31, %v1786_v10  ;;  %v1815_v62 = vshll.u32 %v1812_v45, 16 }
 0x237   : > { %v2012_v40 = vmul.f32 %v2011_v56, %v2009_v1  ;;  %v1794_v60 = vshrl.u32 %v1790_v3, 16  ;;  %v1816_v47 = vshrl.u32 %v1812_v45, 16  ;;  %v1817_v36 = vshll.u32 %v1813_v55, 16 }
 0x238   : > { %vm1797_vm9 = vc.u32 %v1789_v12, %v1793_v50  ;;  %v1799_v59 = vadd.s32 %v1793_v50, %v1789_v12  ;;  %vm1819_vm8 = vc.u32 %v1811_v5, %v1815_v62  ;;  %v1821_v24 = vadd.s32 %v1815_v62, %v1811_v5 }
 0x239   : > { %v2013_v54 = vxor.u32 2147483648, %v2012_v40  ;;  %v1798_v52 = vsel %vm1797_vm9, 1, %v11302_v9  ;;  %v1820_v15 = vsel %vm1819_vm8, 1, %v11302_v9  ;;  %v8732_v2 = vsel %vm1100_vm4, %v1101_v32, %v1099_v22 }
 0x23a   : > { %11325 = vst [vmem:[#allocation17_spill] sm:$0xff] %v8732_v2  ;;  %v1800_v37 = vadd.s32 %v1798_v52, %v1792_v20  ;;  %vm1801_vm12 = vc.u32 %v1799_v59, %v1795_v28  ;;  %v1822_v10 = vadd.s32 %v1820_v15, %v1814_v21  ;;  %vm1823_vm13 = vc.u32 %v1821_v24, %v1817_v36 }
 0x23b   : > { %v2014_v31 = vsel %vm1893_vm7, %v2013_v54, %v2012_v40  ;;  %v1802_v57 = vsel %vm1801_vm12, 1, %v11302_v9  ;;  %v1818_v56 = vshrl.u32 %v1813_v55, 16  ;;  %v1824_v19 = vsel %vm1823_vm13, 1, %v11302_v9 }
 0x23c   : > { %v8741_v5 = vsel %vm8664_vm6, %v8367_v23, %v2014_v31  ;;  %v1804_v0 = vadd.s32 %v1802_v57, %v1800_v37  ;;  %v1826_v22 = vadd.s32 %v1824_v19, %v1822_v10  ;;  %vm11268_vm5 = vcmp.lt.f32.partialorder %v8732_v2, 1e-06 }
 0x23d   : > { %v2019_v32 = vmul.f32 %v8741_v5, %v8741_v5  ;;  %v2035_v12 = vadd.s32 3, %v8713_v30  ;;  %v6309_v3 = vsub.f32 1.0, %v8718_v41  ;;  %v8751_v45 = vsel %vm11268_vm5, 1.0, %v8732_v2 }
 0x23e   : > { %v1805_v55 = vadd.s32 %v1804_v0, %v1794_v60  ;;  %v8753_v46 = vadd.s32 %v1821_v24, %v1817_v36  ;;  %v1827_v1 = vadd.s32 %v1826_v22, %v1816_v47  ;;  %v8756_v20 = vmul.f32 0.5, %v8751_v45 }
 0x23f   : > { %v8760_v28 = vmul.f32 %v8509_v43, %v8594_v7  ;;  %7193 = vrsqrt.f32 %v8083_v27  ;;  %v2020_v50 = vmul.f32 -0.001358992, %v2019_v32  ;;  %v2027_v41 = vmul.f32 -0.00019511016, %v2019_v32 }
 0x240   : > { %v8765_v21 = vmul.f32 %v8514_v53, %v8599_v29  ;;  %v8767_v62 = vadd.s32 %v1805_v55, %v1796_v26  ;;  %v1828_v40 = vadd.s32 %v1827_v1, %v1818_v56  ;;  %v2049_v60 = vand.u32 2139095040, %v8756_v20 }
 0x241   : > { %v2021_v47 = vadd.f32 0.041655596, %v2020_v50  ;;  %v2028_v36 = vadd.f32 0.008332121, %v2027_v41  ;;  %v8770_v59 = vand.u32 3, %v2035_v12  ;;  %v1829_v7 = vmul.u32 %v8675_v18, %v8726_v4 }
 0x242   : > { %v6310_v24 = vmul.f32 %v8704_v48, %v6309_v3  ;;  %vm1831_vm3 = vc.u32 %v8767_v62, %v8753_v46  ;;  %v1832_v54 = vadd.s32 1, %v1828_v40  ;;  %v2050_v29 = vshrl.u32 %v2049_v60, 23 }
 0x243   : > { %v2022_v52 = vmul.f32 %v2021_v47, %v2019_v32  ;;  %v2029_v26 = vmul.f32 %v2028_v36, %v2019_v32  ;;  %v4511_v15 = vand.u32 3, %v8713_v30  ;;  %v6318_v37 = vand.u32 2147483648, %v8653_v61 }
 0x244   : > { %vm6312_vm6 = vweird.f32 %v8653_v61  ;;  %vm6313_vm7 = vweird.f32 %v8704_v48  ;;  %v1833_v10 = vsel %vm1831_vm3, %v1832_v54, %v1828_v40  ;;  %v6943_v31 = vadd.s32 4294967169, %v2050_v29 }
 0x245   : > { %v8781_v18 = vpop.eup %7193  ;;  %v2023_v4 = vadd.f32 -0.4999988, %v2022_v52  ;;  %v2030_v57 = vadd.f32 -0.16666654, %v2029_v26  ;;  %vm2037_vm11 = vcmp.lt.s32.totalorder %v8770_v59, 2  ;;  %v1834_v56 = vadd.s32 %v1833_v10, %v1829_v7  ;;  %vm8795_vm4 = vmor %vm6312_vm6, %vm6313_vm7 }
 0x246   : > { %vm2034_vm14 = vweird.f32 %v8367_v23  ;;  %v6311_v19 = vadd.f32 %v8704_v48, %v6310_v24  ;;  %v6316_v30 = vand.u32 2147483647, %v8653_v61  ;;  %v2056_v0 = vadd.s32 1, %v6943_v31 }
 0x247   : > { %v11326_v22 = vsub.f32 1.5, %v8457_v34  ;;  %v2024_v3 = vmul.f32 %v2023_v4, %v2019_v32  ;;  %v2031_v55 = vmul.f32 %v2030_v57, %v2019_v32  ;;  %vm2038_vm0 = vcmp.eq.s32.totalorder %v8770_v59, 0 }
 0x248   : > { %v1835_v50 = vadd.s32 536870912, %v1834_v56  ;;  %vm2041_vm9 = vcmp.eq.s32.totalorder %v8770_v59, 2  ;;  %vm4513_vm8 = vcmp.eq.s32.totalorder %v4511_v15, 0  ;;  %vm4516_vm12 = vcmp.eq.s32.totalorder %v4511_v15, 2 }
 0x249   : > { %v1108_v12 = vmul.f32 %v8103_v8, %v11326_v22  ;;  %vm2057_vm13 = vcmp.gt.s32.totalorder %v2056_v0, 0  ;;  %v2025_v34 = vadd.f32 1.0, %v2024_v3  ;;  %v2032_v8 = vadd.f32 1.0, %v2031_v55 }
 0x24a   : > { %v6319_v41 = vor.u32 1.1754944e-38, %v6318_v37  ;;  %v1836_v32 = vshrl.u32 %v1835_v50, 30  ;;  %v6315_v40 = vsel %vm8795_vm4, %v8704_v48, %v6311_v19  ;;  %vm6317_vm3 = vcmp.eq.f32.partialorder %v6316_v30, 8.507059e+37 }
 0x24b   : > { %v1109_v61 = vmul.f32 %v1108_v12, %v8001_v58  ;;  %vm1110_vm6 = vcmp.eq.f32.partialorder %v8001_v58, inf  ;;  %v2033_v60 = vmul.f32 %v2032_v8, %v8741_v5  ;;  %v2042_v47 = vxor.u32 2147483648, %v2025_v34 }
 0x24c   : > { %v1837_v36 = vshll.u32 %v1836_v32, 30  ;;  %v2058_v7 = vsel %vm2057_vm13, %v2056_v0, 0  ;;  %vm4512_vm7 = vcmp.lt.s32.totalorder %v4511_v15, 2  ;;  %v8807_v24 = vadd.f32 1e-08, %v8489_v35 }
 0x24d   : > { %v11258_v54 = vand.u32 2147483647, %v8756_v20  ;;  %v1113_v29 = vand.u32 2147483648, %v8001_v58  ;;  %v2039_v52 = vxor.u32 2147483648, %v2033_v60  ;;  %v2043_v48 = vsel %vm2041_vm9, %v2042_v47, %v2033_v60 }
 0x24e   : > { %v4518_v26 = vsel %vm4516_vm12, %v2042_v47, %v2033_v60  ;;  %v1838_v37 = vsub.s32 %v1834_v56, %v1837_v36  ;;  %v6320_v10 = vsel %vm6317_vm3, %v6319_v41, %v6315_v40  ;;  %v2060_v5 = vand.u32 31, %v2058_v7  ;;  %v7250_v41 = vld [vmem:[%s7461_s23 + $0x20] sm:$0xff] }
 0x24f   : > { %v1111_v31 = vsel %vm1110_vm6, %v8001_v58, %v1109_v61  ;;  %vm1112_vm4 = vcmp.eq.f32.partialorder %v8001_v58, 0.0  ;;  %v2040_v35 = vsel %vm2038_vm0, %v2025_v34, %v2039_v52  ;;  %v4515_v4 = vsel %vm4513_vm8, %v2025_v34, %v2039_v52 }
 0x250   : > { %vm1839_vm13 = vcmp.lt.s32.totalorder %v1838_v37, 0  ;;  %v1840_v57 = vsub.s32 0, %v1838_v37  ;;  %v2044_v19 = vsel %vm2037_vm11, %v2040_v35, %v2043_v48  ;;  %v4519_v30 = vsel %vm4512_vm7, %v4515_v4, %v4518_v26 }
 0x251   : > { %7195 = vrcp.f32 %v8807_v24  ;;  %v2053_v56 = vand.u32 8388607, %v11258_v54  ;;  %v2045_v58 = vsel %vm2034_vm14, nan, %v2044_v19  ;;  %v8829_v0 = vsel %vm2034_vm14, nan, %v4519_v30 }
 0x252   : > { %11329 = vst [vmem:[#allocation18_spill] sm:$0xff] %v8829_v0  ;;  %v1841_v22 = vsel %vm1839_vm13, %v1840_v57, %v1838_v37  ;;  %v8831_v12 = vsel %vm1112_vm4, %v1113_v29, %v1111_v31  ;;  %v6321_v59 = vmul.f32 %v6320_v10, %v2045_v58  ;;  %v1860_v15 = vsub.s32 4, %v1836_v32 }
 0x253   : > { %11330 = vst [vmem:[#allocation19_spill] sm:$0xff] %v8831_v12  ;;  %v1842_v3 = vclz %v1841_v22  ;;  %v2061_v55 = vsub.s32 32, %v2060_v5  ;;  %v8834_v1 = vmul.f32 0.5, %v8765_v21  ;;  %7197 = vrsqrt.f32 %v8078_v6 }
 0x254   : > { %vm1738_vm11 = vcmp.lt.s32.totalorder %v8507_v39, 0  ;;  %v1830_v23 = vadd.s32 %v8753_v46, %v8767_v62  ;;  %v6491_v50 = vsel %vm11262_vm1, 0.5, %v6321_v59  ;;  %v2054_v8 = vor.u32 8388608, %v2053_v56 }
 0x255   : > { %v6938_v34 = vadd.s32 4294967294, %v1842_v3  ;;  %vm11267_vm14 = vcmp.lt.f32.partialorder %v8831_v12, 1e-06  ;;  %v6507_v40 = vmul.f32 %v7250_v41, %v6491_v50  ;;  %v8844_v61 = vshrl.u32 %v2058_v7, 5 }
 0x256   : > { %v2063_v21 = vshll.u32 %v11308_v17, %v2060_v5  ;;  %v2066_v60 = vshll.u32 %v11305_v49, %v2060_v5  ;;  %v1861_v46 = vsel %vm1738_vm11, %v1860_v15, %v1836_v32  ;;  %v2064_v62 = vshrl.u32 %v11305_v49, %v2061_v55 }
 0x257   : > { %v8848_v47 = vpop.eup %7195  ;;  %vm6939_vm0 = vcmp.lt.s32.totalorder %v6938_v34, 0  ;;  %v2067_v36 = vshrl.u32 %v11306_v16, %v2061_v55  ;;  %6640 = vrot.lane.b32.xlu2 %v6507_v40, %s7340_s16  ;;  %v2069_v7 = vshll.u32 %v11306_v16, %v2060_v5  ;;  %v2072_v52 = vshll.u32 %v11318_v38, %v2060_v5 }
 0x258   : > { %v1845_v29 = vsel %vm6939_vm0, 0, %v6938_v34  ;;  %v2073_v48 = vshrl.u32 %v11307_v25, %v2061_v55  ;;  %v2070_v35 = vshrl.u32 %v11318_v38, %v2061_v55  ;;  %v11331_v32 = vand.u32 2147483647, %v8507_v39 }
 0x259   : > { %v1846_v26 = vsub.s32 32, %v1845_v29  ;;  %v1847_v10 = vshll.u32 %v1838_v37, %v1845_v29  ;;  %v1850_v31 = vsub.s32 4294967266, %v1845_v29  ;;  %v8859_v4 = vpop.eup %7197  ;;  %v6293_v19 = vmul.f32 %v8848_v47, %v8807_v24 }
 0x25a   : > { %vm8863_vm9 = vcmp.le.f32.partialorder %v11331_v32, 0.7853982  ;;  %v2075_v30 = vshll.u32 %v11307_v25, %v2060_v5  ;;  %v2076_v56 = vshrl.u32 %v11309_v33, %v2061_v55  ;;  %v8876_v59 = vsel %vm11267_vm14, 1.0, %v8831_v12 }
 0x25b   : > { %v1848_v58 = vshrl.u32 %v1830_v23, %v1846_v26  ;;  %v1851_v37 = vadd.s32 127, %v1850_v31  ;;  %v1863_v22 = vsel %vm8863_vm9, 0, %v1861_v46  ;;  %v2065_v3 = vor.u32 %v2064_v62, %v2063_v21 }
 0x25c   : > { %v2068_v15 = vor.u32 %v2067_v36, %v2066_v60  ;;  %v2074_v50 = vor.u32 %v2073_v48, %v2072_v52  ;;  %v8878_v34 = vshll.u32 %v2054_v8, 8  ;;  %v2071_v5 = vor.u32 %v2070_v35, %v2069_v7 }
 0x25d   : > { %v1849_v41 = vor.u32 %v1848_v58, %v1847_v10  ;;  %v1852_v40 = vshll.u32 %v1851_v37, 23  ;;  %vm2078_vm8 = vcmp.lt.s32.totalorder %v8844_v61, 1  ;;  %v1880_v23 = vadd.s32 3, %v1863_v22  ;;  %v737_v58 = vpop.f32.mrf.mxu2  ;;  %v6548_v37 = vpop.permute.xlu1 %6547 }
 0x25e   : > { %v6294_v29 = vsub.f32 1.0, %v6293_v19  ;;  %v2077_v26 = vor.u32 %v2076_v56, %v2075_v30  ;;  %vm2080_vm12 = vcmp.lt.s32.totalorder %v8844_v61, 3  ;;  %vm2079_vm3 = vcmp.lt.s32.totalorder %v8844_v61, 2 }
 0x25f   : > { %v1853_v46 = vor.u32 4788187, %v1852_v40  ;;  %v1856_v31 = vcvt.s32.f32 %v1849_v41  ;;  %vm2081_vm6 = vcmp.lt.s32.totalorder %v8844_v61, 4  ;;  %v2086_v8 = vsel %vm2078_vm8, %v2065_v3, %v2068_v15  ;;  %v8913_v40 = vld [vmem:[%s11229_s6] ss:$0 sm:$0xff] }
 0x260   : > { %v2087_v21 = vsel %vm2081_vm6, %v2074_v50, 920167782  ;;  %v2095_v60 = vand.u32 65535, %v8878_v34  ;;  %v8890_v62 = vmul.f32 0.5, %v8876_v59  ;;  %v2062_v7 = vshrl.u32 %v11308_v17, %v2061_v55 }
 0x261   : > { %v1854_v36 = vand.u32 2147483647, %v1853_v46  ;;  %v2088_v52 = vsel %vm2080_vm12, %v2071_v5, %v2087_v21  ;;  %v2090_v48 = vsel %vm2078_vm8, %v2068_v15, %v2071_v5  ;;  %v8897_v10 = vand.u32 3, %v1880_v23 }
 0x262   : > { %v2089_v35 = vsel %vm2079_vm3, %v2086_v8, %v2088_v52  ;;  %v2091_v32 = vsel %vm2081_vm6, %v2077_v26, 1326507024  ;;  %v2096_v19 = vshrl.u32 %v8878_v34, 16  ;;  %v8905_v55 = vmul.f32 %v8848_v47, %v6294_v29  ;;  %v6546_v26 = vpop.permute.xlu2 %6545 }
 0x263   : > { %v1857_v30 = vmul.f32 %v1856_v31, %v1854_v36  ;;  %v2092_v41 = vsel %vm2080_vm12, %v2074_v50, %v2091_v32  ;;  %v738_v23 = vadd.f32 %v8913_v40, %v737_v58  ;;  %vm11334_vm7 = vcmask 23552  }
 0x264   : > { %6589 = vst.msk [vmem:[%s8105_s14 + $0x30] sm:$0xff] %vm11334_vm7, %v6548_v37  ;;  %v2093_v29 = vsel %vm2079_vm3, %v2090_v48, %v2092_v41  ;;  %v2119_v46 = vand.u32 65535, %v2089_v35  ;;  %v2120_v31 = vshrl.u32 %v2089_v35, 16  ;;  %v8920_v21 = vand.u32 3, %v1863_v22  ;;  %vm11335_vm4 = vmmov %vm11334_vm7 }
 0x265   : > { %v1858_v8 = vxor.u32 2147483648, %v1857_v30  ;;  %6588 = vst.msk [vmem:[%s8105_s14 + $0x28] sm:$0xff] %vm11335_vm4, %v6546_v26  ;;  %v2097_v50 = vand.u32 65535, %v2093_v29  ;;  %v2098_v36 = vshrl.u32 %v2093_v29, 16  ;;  %7199 = vtanh.f32 %v738_v23 }
 0x266   : > { %v2083_v52 = vsel %vm2081_vm6, %v2071_v5, 2102212464  ;;  %v2122_v32 = vmul.u32 %v2120_v31, %v2095_v60  ;;  %v8926_v58 = vmul.u32 %v2119_v46, %v2096_v19  ;;  %v2082_v23 = vsel %vm2078_vm8, %v2062_v7, %v2065_v3 }
 0x267   : > { %v1859_v37 = vsel %vm1738_vm11, %v1858_v8, %v1857_v30  ;;  %v2099_v48 = vmul.u32 %v2097_v50, %v2095_v60  ;;  %v2100_v41 = vmul.u32 %v2098_v36, %v2095_v60  ;;  %v2101_v35 = vmul.u32 %v2097_v50, %v2096_v19 }
 0x268   : > { %v8933_v22 = vsel %vm8863_vm9, %v8507_v39, %v1859_v37  ;;  %v2121_v26 = vmul.u32 %v2119_v46, %v2095_v60  ;;  %v2125_v29 = vshll.u32 %v2122_v32, 16  ;;  %v2102_v54 = vmul.u32 %v2098_v36, %v2096_v19 }
 0x269   : > { %v1864_v5 = vmul.f32 %v8933_v22, %v8933_v22  ;;  %v2103_v56 = vshll.u32 %v2100_v41, 16  ;;  %v2105_v14 = vshll.u32 %v2101_v35, 16  ;;  %v2084_v30 = vsel %vm2080_vm12, %v2068_v15, %v2083_v52 }
 0x26a   : > { %v2104_v8 = vshrl.u32 %v2100_v41, 16  ;;  %v2124_v50 = vmul.u32 %v2120_v31, %v2096_v19  ;;  %v2127_v57 = vshll.u32 %v8926_v58, 16  ;;  %v2106_v60 = vshrl.u32 %v2101_v35, 16 }
 0x26b   : > { %v1865_v37 = vmul.f32 -0.001358992, %v1864_v5  ;;  %v1872_v0 = vmul.f32 -0.00019511016, %v1864_v5  ;;  %vm2107_vm13 = vc.u32 %v2099_v48, %v2103_v56  ;;  %v2109_v13 = vadd.s32 %v2103_v56, %v2099_v48  ;;  %v7200_v3 = vpop.eup %7199 }
 0x26c   : > { %v2108_v7 = vsel %vm2107_vm13, 1, %v11302_v9  ;;  %vm2129_vm11 = vc.u32 %v2121_v26, %v2125_v29  ;;  %v2131_v46 = vadd.s32 %v2125_v29, %v2121_v26  ;;  %6920 = vmatmul.msk.f32.gmra.mxu3 %vm506_vm2, %v7200_v3  ;;  %v2126_v19 = vshrl.u32 %v2122_v32, 16 }
 0x26d   : > { %v1866_v36 = vadd.f32 0.041655596, %v1865_v37  ;;  %v1873_v42 = vadd.f32 0.008332121, %v1872_v0  ;;  %v2110_v63 = vadd.s32 %v2108_v7, %v2102_v54  ;;  %vm2111_vm0 = vc.u32 %v2109_v13, %v2105_v14 }
 0x26e   : > { %v2112_v15 = vsel %vm2111_vm0, 1, %v11302_v9  ;;  %v2130_v31 = vsel %vm2129_vm11, 1, %v11302_v9  ;;  %vm2133_vm9 = vc.u32 %v2131_v46, %v2127_v57  ;;  %vm1883_vm8 = vcmp.eq.s32.totalorder %v8897_v10, 0 }
 0x26f   : > { %v1867_v52 = vmul.f32 %v1866_v36, %v1864_v5  ;;  %v1874_v56 = vmul.f32 %v1873_v42, %v1864_v5  ;;  %v2114_v48 = vadd.s32 %v2112_v15, %v2110_v63  ;;  %v2132_v41 = vadd.s32 %v2130_v31, %v2124_v50 }
 0x270   : > { %vm6297_vm12 = vweird.f32 %v8807_v24  ;;  %v2128_v0 = vshrl.u32 %v8926_v58, 16  ;;  %v2134_v13 = vsel %vm2133_vm9, 1, %v11302_v9  ;;  %v2204_v14 = vand.u32 2139095040, %v8890_v62 }
 0x271   : > { %v1868_v54 = vadd.f32 -0.4999988, %v1867_v52  ;;  %v1875_v35 = vadd.f32 -0.16666654, %v1874_v56  ;;  %vm1882_vm6 = vcmp.lt.s32.totalorder %v8897_v10, 2  ;;  %v2115_v32 = vadd.s32 %v2114_v48, %v2104_v8 }
 0x272   : > { %v2136_v26 = vadd.s32 %v2134_v13, %v2132_v41  ;;  %vm6298_vm7 = vweird.f32 %v8848_v47  ;;  %v2085_v63 = vsel %vm2079_vm3, %v2082_v23, %v2084_v30  ;;  %v8955_v42 = vadd.s32 %v2131_v46, %v2127_v57 }
 0x273   : > { %v2205_v29 = vshrl.u32 %v2204_v14, 23  ;;  %v1869_v50 = vmul.f32 %v1868_v54, %v1864_v5  ;;  %v1876_v58 = vmul.f32 %v1875_v35, %v1864_v5  ;;  %v8957_v37 = vadd.s32 %v2115_v32, %v2106_v60  ;;  %vm8968_vm13 = vmor %vm6297_vm12, %vm6298_vm7 }
 0x274   : > { %v2137_v3 = vadd.s32 %v2136_v26, %v2126_v19  ;;  %vm1886_vm4 = vcmp.eq.s32.totalorder %v8897_v10, 2  ;;  %v6296_v7 = vadd.f32 %v8848_v47, %v8905_v55  ;;  %v6301_v8 = vand.u32 2147483647, %v8807_v24 }
 0x275   : > { %v6946_v36 = vadd.s32 4294967169, %v2205_v29  ;;  %v1870_v15 = vadd.f32 1.0, %v1869_v50  ;;  %v1877_v31 = vadd.f32 1.0, %v1876_v58  ;;  %vm4359_vm3 = vcmp.eq.s32.totalorder %v8920_v21, 0 }
 0x276   : > { %v2138_v23 = vadd.s32 %v2137_v3, %v2128_v0  ;;  %vm4362_vm11 = vcmp.eq.s32.totalorder %v8920_v21, 2  ;;  %v2139_v55 = vmul.u32 %v8878_v34, %v2085_v63  ;;  %vm2141_vm0 = vc.u32 %v8957_v37, %v8955_v42 }
 0x277   : > { %v2211_v5 = vadd.s32 1, %v6946_v36  ;;  %v1878_v30 = vmul.f32 %v1877_v31, %v8933_v22  ;;  %v1887_v57 = vxor.u32 2147483648, %v1870_v15  ;;  %v11338_v60 = vand.u32 2147483648, %v8807_v24 }
 0x278   : > { %v2142_v19 = vadd.s32 1, %v2138_v23  ;;  %vm4358_vm9 = vcmp.lt.s32.totalorder %v8920_v21, 2  ;;  %v6300_v52 = vsel %vm8968_vm13, %v8848_v47, %v6296_v7  ;;  %vm6302_vm12 = vcmp.eq.f32.partialorder %v6301_v8, 8.507059e+37 }
 0x279   : > { %v6304_v46 = vor.u32 1.1754944e-38, %v11338_v60  ;;  %vm2212_vm7 = vcmp.gt.s32.totalorder %v2211_v5, 0  ;;  %v1884_v34 = vxor.u32 2147483648, %v1878_v30  ;;  %v1888_v56 = vsel %vm1886_vm4, %v1887_v57, %v1878_v30 }
 0x27a   : > { %v4364_v48 = vsel %vm4362_vm11, %v1887_v57, %v1878_v30  ;;  %v2143_v41 = vsel %vm2141_vm0, %v2142_v19, %v2138_v23  ;;  %v8986_v22 = vmul.f32 0.5, %v8760_v28  ;;  %vm1879_vm1 = vweird.f32 %v8507_v39 }
 0x27b   : > { %v2144_v24 = vadd.s32 %v2143_v41, %v2139_v55  ;;  %v2213_v0 = vsel %vm2212_vm7, %v2211_v5, 0  ;;  %v1885_v13 = vsel %vm1883_vm8, %v1870_v15, %v1884_v34  ;;  %v4361_v47 = vsel %vm4359_vm3, %v1870_v15, %v1884_v34  ;;  %v7252_v15 = vld [vmem:[%s7461_s23 + $0x18] sm:$0xff] }
 0x27c   : > { %v6305_v14 = vsel %vm6302_vm12, %v6304_v46, %v6300_v52  ;;  %v2215_v54 = vand.u32 31, %v2213_v0  ;;  %v1131_v35 = vsub.f32 1.5, %v8834_v1  ;;  %v1889_v32 = vsel %vm1882_vm6, %v1885_v13, %v1888_v56 }
 0x27d   : > { %v4365_v28 = vsel %vm4358_vm9, %v4361_v47, %v4364_v48  ;;  %v2145_v39 = vadd.s32 536870912, %v2144_v24  ;;  %v1890_v26 = vsel %vm1879_vm1, nan, %v1889_v32  ;;  %v1143_v3 = vsub.f32 1.5, %v8986_v22 }
 0x27e   : > { %v8998_v63 = vsel %vm1879_vm1, nan, %v4365_v28  ;;  %v9000_v29 = vsub.s32 32, %v2215_v54  ;;  %v6306_v50 = vmul.f32 %v6305_v14, %v1890_v26  ;;  %v1176_v1 = vmul.f32 %v8781_v18, %v8083_v27 }
 0x27f   : > { %v2146_v58 = vshrl.u32 %v2145_v39, 30  ;;  %v11263_v10 = vand.u32 2147483647, %v8890_v62  ;;  %v9008_v8 = vshrl.u32 %v2213_v0, 5  ;;  %v1132_v36 = vmul.f32 %v8514_v53, %v1131_v35 }
 0x280   : > { %v6490_v7 = vsel %vm11264_vm15, 0.5, %v6306_v50  ;;  %v2218_v61 = vshll.u32 %v11308_v17, %v2215_v54  ;;  %v2219_v23 = vshrl.u32 %v11305_v49, %v9000_v29  ;;  %v2221_v55 = vshll.u32 %v11305_v49, %v2215_v54 }
 0x281   : > { %v2147_v21 = vshll.u32 %v2146_v58, 30  ;;  %v6506_v31 = vmul.f32 %v7252_v15, %v6490_v7  ;;  %v2222_v30 = vshrl.u32 %v11306_v16, %v9000_v29  ;;  %v2224_v57 = vshll.u32 %v11306_v16, %v2215_v54 }
 0x282   : > { %v2227_v60 = vshll.u32 %v11318_v38, %v2215_v54  ;;  %v2225_v53 = vshrl.u32 %v11318_v38, %v9000_v29  ;;  %v2228_v46 = vshrl.u32 %v11307_v25, %v9000_v29  ;;  %v2230_v19 = vshll.u32 %v11307_v25, %v2215_v54 }
 0x283   : > { %v9016_v5 = vsub.s32 %v2144_v24, %v2147_v21  ;;  %6638 = vrot.lane.b32.xlu0 %v6506_v31, %s7340_s16  ;;  %v2231_v52 = vshrl.u32 %v11309_v33, %v9000_v29  ;;  %v9032_v34 = vmul.f32 %v8859_v4, %v8078_v6  ;;  %v2208_v48 = vand.u32 8388607, %v11263_v10 }
 0x284   : > { %vm2048_vm8 = vcmp.lt.s32.totalorder %v8756_v20, 0  ;;  %v9040_v41 = vadd.f32 1e-08, %v8751_v45  ;;  %v2229_v24 = vor.u32 %v2228_v46, %v2227_v60  ;;  %v1133_v0 = vmul.f32 %v1132_v36, %v8029_v44 }
 0x285   : > { %vm2149_vm1 = vcmp.lt.s32.totalorder %v9016_v5, 0  ;;  %v2150_v56 = vsub.s32 0, %v9016_v5  ;;  %v2232_v47 = vor.u32 %v2231_v52, %v2230_v19  ;;  %vm2236_vm6 = vcmp.lt.s32.totalorder %v9008_v8, 4 }
 0x286   : > { %vm1134_vm4 = vcmp.eq.f32.partialorder %v8029_v44, inf  ;;  %v2220_v54 = vor.u32 %v2219_v23, %v2218_v61  ;;  %v2223_v35 = vor.u32 %v2222_v30, %v2221_v55  ;;  %v2226_v32 = vor.u32 %v2225_v53, %v2224_v57 }
 0x287   : > { %v2151_v13 = vsel %vm2149_vm1, %v2150_v56, %v9016_v5  ;;  %v2209_v28 = vor.u32 8388608, %v2208_v48  ;;  %vm2233_vm3 = vcmp.lt.s32.totalorder %v9008_v8, 1  ;;  %vm2235_vm13 = vcmp.lt.s32.totalorder %v9008_v8, 3 }
 0x288   : > { %v2152_v14 = vclz %v2151_v13  ;;  %v2242_v45 = vsel %vm2236_vm6, %v2229_v24, 920167782  ;;  %v2170_v26 = vsub.s32 4, %v2146_v58  ;;  %7201 = vrcp.f32 %v9040_v41 }
 0x289   : > { %v1135_v50 = vsel %vm1134_vm4, %v8029_v44, %v1133_v0  ;;  %v2140_v7 = vadd.s32 %v8955_v42, %v8957_v37  ;;  %v2246_v21 = vsel %vm2236_vm6, %v2232_v47, 1326507024  ;;  %vm1136_vm11 = vcmp.eq.f32.partialorder %v8029_v44, 0.0 }
 0x28a   : > { %v6944_v39 = vadd.s32 4294967294, %v2152_v14  ;;  %v1137_v36 = vand.u32 2147483648, %v8029_v44  ;;  %vm2234_vm9 = vcmp.lt.s32.totalorder %v9008_v8, 2  ;;  %v2241_v15 = vsel %vm2233_vm3, %v2220_v54, %v2223_v35 }
 0x28b   : > { %v2243_v31 = vsel %vm2235_vm13, %v2226_v32, %v2242_v45  ;;  %v2245_v42 = vsel %vm2233_vm3, %v2223_v35, %v2226_v32  ;;  %v2247_v37 = vsel %vm2235_vm13, %v2229_v24, %v2246_v21  ;;  %v9067_v23 = vshll.u32 %v2209_v28, 8 }
 0x28c   : > { %vm6945_vm0 = vcmp.lt.s32.totalorder %v6944_v39, 0  ;;  %v2171_v60 = vsel %vm2048_vm8, %v2170_v26, %v2146_v58  ;;  %v9073_v53 = vmul.f32 %v8781_v18, %v1176_v1  ;;  %v11339_v46 = vand.u32 2147483647, %v8756_v20 }
 0x28d   : > { %v2155_v61 = vsel %vm6945_vm0, 0, %v6944_v39  ;;  %v2244_v52 = vsel %vm2234_vm9, %v2241_v15, %v2243_v31  ;;  %v9085_v56 = vsel %vm1136_vm11, %v1137_v36, %v1135_v50  ;;  %v2217_v1 = vshrl.u32 %v11308_v17, %v9000_v29 }
 0x28e   : > { %v2156_v55 = vsub.s32 32, %v2155_v61  ;;  %v2157_v30 = vshll.u32 %v9016_v5, %v2155_v61  ;;  %v2160_v57 = vsub.s32 4294967266, %v2155_v61  ;;  %vm9077_vm12 = vcmp.le.f32.partialorder %v11339_v46, 0.7853982  ;;  %11342 = vst [vmem:[#allocation20_spill] sm:$0xff] %v9085_v56  ;;  %v9087_v5 = vpop.eup %7201 }
 0x28f   : > { %v2248_v24 = vsel %vm2234_vm9, %v2245_v42, %v2247_v37  ;;  %v9095_v0 = vsel %vm9077_vm12, 0, %v2171_v60  ;;  %v2238_v13 = vsel %vm2236_vm6, %v2226_v32, 2102212464  ;;  %v2250_v44 = vand.u32 65535, %v9067_v23 }
 0x290   : > { %v2158_v48 = vshrl.u32 %v2140_v7, %v2156_v55  ;;  %v2161_v58 = vadd.s32 127, %v2160_v57  ;;  %v2251_v47 = vshrl.u32 %v9067_v23, 16  ;;  %v2274_v45 = vand.u32 65535, %v2244_v52 }
 0x291   : > { %v2275_v39 = vshrl.u32 %v2244_v52, 16  ;;  %v6323_v29 = vmul.f32 %v9087_v5, %v9040_v41  ;;  %v2252_v26 = vand.u32 65535, %v2248_v24  ;;  %v2253_v50 = vshrl.u32 %v2248_v24, 16 }
 0x292   : > { %v2159_v14 = vor.u32 %v2158_v48, %v2157_v30  ;;  %v2162_v28 = vshll.u32 %v2161_v58, 23  ;;  %vm11274_vm7 = vcmp.lt.f32.partialorder %v9085_v56, 1e-06  ;;  %v2237_v32 = vsel %vm2233_vm3, %v2217_v1, %v2220_v54 }
 0x293   : > { %v2239_v36 = vsel %vm2235_vm13, %v2223_v35, %v2238_v13  ;;  %v2190_v15 = vadd.s32 3, %v9095_v0  ;;  %v2254_v31 = vmul.u32 %v2252_v26, %v2250_v44  ;;  %v2255_v61 = vmul.u32 %v2253_v50, %v2250_v44 }
 0x294   : > { %v2163_v7 = vor.u32 4788187, %v2162_v28  ;;  %v2166_v21 = vcvt.s32.f32 %v2159_v14  ;;  %v2256_v42 = vmul.u32 %v2252_v26, %v2251_v47  ;;  %v2276_v55 = vmul.u32 %v2274_v45, %v2250_v44 }
 0x295   : > { %v2277_v30 = vmul.u32 %v2275_v39, %v2250_v44  ;;  %v2278_v57 = vmul.u32 %v2274_v45, %v2251_v47  ;;  %v6324_v60 = vsub.f32 1.0, %v6323_v29  ;;  %v2257_v46 = vmul.u32 %v2253_v50, %v2251_v47 }
 0x296   : > { %v2164_v37 = vand.u32 2147483647, %v2163_v7  ;;  %v2258_v52 = vshll.u32 %v2255_v61, 16  ;;  %v2260_v48 = vshll.u32 %v2256_v42, 16  ;;  %v2279_v24 = vmul.u32 %v2275_v39, %v2251_v47 }
 0x297   : > { %v2280_v14 = vshll.u32 %v2277_v30, 16  ;;  %v2282_v54 = vshll.u32 %v2278_v57, 16  ;;  %v2259_v1 = vshrl.u32 %v2255_v61, 16  ;;  %v2281_v13 = vshrl.u32 %v2277_v30, 16 }
 0x298   : > { %v2167_v58 = vmul.f32 %v2166_v21, %v2164_v37  ;;  %vm2262_vm1 = vc.u32 %v2254_v31, %v2258_v52  ;;  %v2264_v35 = vadd.s32 %v2258_v52, %v2254_v31  ;;  %v9114_v45 = vsel %vm11274_vm7, 1.0, %v9085_v56 }
 0x299   : > { %v2263_v10 = vsel %vm2262_vm1, 1, %v11302_v9  ;;  %vm2284_vm6 = vc.u32 %v2276_v55, %v2280_v14  ;;  %v2286_v26 = vadd.s32 %v2280_v14, %v2276_v55  ;;  %v2283_v37 = vshrl.u32 %v2278_v57, 16 }
 0x29a   : > { %v2168_v28 = vxor.u32 2147483648, %v2167_v58  ;;  %v2265_v7 = vadd.s32 %v2263_v10, %v2257_v46  ;;  %vm2266_vm4 = vc.u32 %v2264_v35, %v2260_v48  ;;  %v2285_v44 = vsel %vm2284_vm6, 1, %v11302_v9 }
 0x29b   : > { %v2267_v39 = vsel %vm2266_vm4, 1, %v11302_v9  ;;  %v2287_v29 = vadd.s32 %v2285_v44, %v2279_v24  ;;  %vm2288_vm3 = vc.u32 %v2286_v26, %v2282_v54  ;;  %v2261_v10 = vshrl.u32 %v2256_v42, 16 }
 0x29c   : > { %v2169_v47 = vsel %vm2048_vm8, %v2168_v28, %v2167_v58  ;;  %v2269_v21 = vadd.s32 %v2267_v39, %v2265_v7  ;;  %v2289_v31 = vsel %vm2288_vm3, 1, %v11302_v9  ;;  %v9128_v30 = vmul.f32 0.5, %v9114_v45 }
 0x29d   : > { %v9122_v50 = vsel %vm9077_vm12, %v8756_v20, %v2169_v47  ;;  %v2291_v55 = vadd.s32 %v2289_v31, %v2287_v29  ;;  %v9132_v46 = vmul.f32 %v8859_v4, %v9032_v34  ;;  %v2240_v19 = vsel %vm2234_vm9, %v2237_v32, %v2239_v36 }
 0x29e   : > { %v2174_v61 = vmul.f32 %v9122_v50, %v9122_v50  ;;  %v2270_v52 = vadd.s32 %v2269_v21, %v2259_v1  ;;  %v9136_v42 = vadd.s32 %v2286_v26, %v2282_v54  ;;  %v9138_v24 = vand.u32 3, %v2190_v15 }
 0x29f   : > { %v2292_v14 = vadd.s32 %v2291_v55, %v2281_v13  ;;  %v6325_v57 = vmul.f32 %v9087_v5, %v6324_v60  ;;  %v6333_v35 = vand.u32 2147483648, %v9040_v41  ;;  %v2514_v34 = vand.u32 2139095040, %v9128_v30 }
 0x2a0   : > { %v2175_v48 = vmul.f32 -0.001358992, %v2174_v61  ;;  %v2182_v58 = vmul.f32 -0.00019511016, %v2174_v61  ;;  %v9142_v28 = vadd.s32 %v2270_v52, %v2261_v10  ;;  %v2294_v32 = vmul.u32 %v9067_v23, %v2240_v19 }
 0x2a1   : > { %v2293_v8 = vadd.s32 %v2292_v14, %v2283_v37  ;;  %v11265_v36 = vand.u32 2147483647, %v9128_v30  ;;  %v2515_v15 = vshrl.u32 %v2514_v34, 23  ;;  %v1144_v60 = vmul.f32 %v8509_v43, %v1143_v3 }
 0x2a2   : > { %v2176_v7 = vadd.f32 0.041655596, %v2175_v48  ;;  %v2183_v44 = vadd.f32 0.008332121, %v2182_v58  ;;  %vm2296_vm8 = vc.u32 %v9142_v28, %v9136_v42  ;;  %v4665_v13 = vand.u32 3, %v9095_v0 }
 0x2a3   : > { %v2297_v26 = vadd.s32 1, %v2293_v8  ;;  %vm2193_vm13 = vcmp.eq.s32.totalorder %v9138_v24, 0  ;;  %vm2196_vm11 = vcmp.eq.s32.totalorder %v9138_v24, 2  ;;  %v6326_v23 = vadd.f32 %v9087_v5, %v6325_v57 }
 0x2a4   : > { %v2177_v54 = vmul.f32 %v2176_v7, %v2174_v61  ;;  %v2184_v1 = vmul.f32 %v2183_v44, %v2174_v61  ;;  %vm6327_vm0 = vweird.f32 %v9040_v41  ;;  %v6952_v47 = vadd.s32 4294967169, %v2515_v15 }
 0x2a5   : > { %vm2192_vm9 = vcmp.lt.s32.totalorder %v9138_v24, 2  ;;  %vm6328_vm12 = vweird.f32 %v9087_v5  ;;  %v2298_v43 = vsel %vm2296_vm8, %v2297_v26, %v2293_v8  ;;  %v2518_v3 = vand.u32 8388607, %v11265_v36 }
 0x2a6   : > { %v2178_v39 = vadd.f32 -0.4999988, %v2177_v54  ;;  %v2185_v29 = vadd.f32 -0.16666654, %v2184_v1  ;;  %v2299_v22 = vadd.s32 %v2298_v43, %v2294_v32  ;;  %v2521_v0 = vadd.s32 1, %v6952_v47  ;;  %vm9171_vm8 = vmor %vm6327_vm0, %vm6328_vm12 }
 0x2a7   : > { %v1145_v10 = vmul.f32 %v1144_v60, %v8032_v51  ;;  %vm4667_vm1 = vcmp.eq.s32.totalorder %v4665_v13, 0  ;;  %vm1146_vm6 = vcmp.eq.f32.partialorder %v8032_v51, inf  ;;  %vm4670_vm4 = vcmp.eq.s32.totalorder %v4665_v13, 2 }
 0x2a8   : > { %v2179_v21 = vmul.f32 %v2178_v39, %v2174_v61  ;;  %v2186_v31 = vmul.f32 %v2185_v29, %v2174_v61  ;;  %v6331_v37 = vand.u32 2147483647, %v9040_v41  ;;  %v2300_v55 = vadd.s32 536870912, %v2299_v22 }
 0x2a9   : > { %vm2522_vm3 = vcmp.gt.s32.totalorder %v2521_v0, 0  ;;  %v6334_v58 = vor.u32 1.1754944e-38, %v6333_v35  ;;  %vm1148_vm15 = vcmp.eq.f32.partialorder %v8032_v51, 0.0  ;;  %v2519_v14 = vor.u32 8388608, %v2518_v3 }
 0x2aa   : > { %v2180_v19 = vadd.f32 1.0, %v2179_v21  ;;  %v2187_v52 = vadd.f32 1.0, %v2186_v31  ;;  %v2301_v61 = vshrl.u32 %v2300_v55, 30  ;;  %v1147_v57 = vsel %vm1146_vm6, %v8032_v51, %v1145_v10 }
 0x2ab   : > { %v1149_v34 = vand.u32 2147483648, %v8032_v51  ;;  %v9180_v8 = vadd.f32 1e-08, %v8876_v59  ;;  %v2523_v41 = vsel %vm2522_vm3, %v2521_v0, 0  ;;  %vm4666_vm0 = vcmp.lt.s32.totalorder %v4665_v13, 2 }
 0x2ac   : > { %v2188_v7 = vmul.f32 %v2187_v52, %v9122_v50  ;;  %v2197_v44 = vxor.u32 2147483648, %v2180_v19  ;;  %v6330_v35 = vsel %vm9171_vm8, %v9087_v5, %v6326_v23  ;;  %vm6332_vm12 = vcmp.eq.f32.partialorder %v6331_v37, 8.507059e+37 }
 0x2ad   : > { %v2302_v32 = vshll.u32 %v2301_v61, 30  ;;  %7203 = vrcp.f32 %v9180_v8  ;;  %vm2189_vm6 = vweird.f32 %v8756_v20  ;;  %v2525_v50 = vand.u32 31, %v2523_v41 }
 0x2ae   : > { %v2194_v15 = vxor.u32 2147483648, %v2188_v7  ;;  %v2198_v60 = vsel %vm2196_vm11, %v2197_v44, %v2188_v7  ;;  %v4672_v54 = vsel %vm4670_vm4, %v2197_v44, %v2188_v7  ;;  %v9194_v1 = vsel %vm1148_vm15, %v1149_v34, %v1147_v57 }
 0x2af   : > { %v9190_v59 = vsub.s32 %v2299_v22, %v2302_v32  ;;  %v6335_v23 = vsel %vm6332_vm12, %v6334_v58, %v6330_v35  ;;  %v9199_v47 = vshll.u32 %v2519_v14, 8  ;;  %v2325_v22 = vsub.s32 4, %v2301_v61  ;;  %v7253_v14 = vld [vmem:[%s7461_s23 + $0x28] sm:$0xff] }
 0x2b0   : > { %v2195_v5 = vsel %vm2193_vm13, %v2180_v19, %v2194_v15  ;;  %v4669_v26 = vsel %vm4667_vm1, %v2180_v19, %v2194_v15  ;;  %vm11273_vm15 = vcmp.lt.f32.partialorder %v9194_v1, 1e-06  ;;  %vm2203_vm13 = vcmp.lt.s32.totalorder %v8890_v62, 0 }
 0x2b1   : > { %v2199_v39 = vsel %vm2192_vm9, %v2195_v5, %v2198_v60  ;;  %v4673_v20 = vsel %vm4666_vm0, %v4669_v26, %v4672_v54  ;;  %vm2304_vm11 = vcmp.lt.s32.totalorder %v9190_v59, 0  ;;  %v2305_v29 = vsub.s32 0, %v9190_v59 }
 0x2b2   : > { %v2200_v51 = vsel %vm2189_vm6, nan, %v2199_v39  ;;  %v9206_v43 = vsel %vm2189_vm6, nan, %v4673_v20  ;;  %v2526_v24 = vsub.s32 32, %v2525_v50  ;;  %v11346_v13 = vand.u32 2147483647, %v8890_v62 }
 0x2b3   : > { %11345 = vst [vmem:[#allocation21_spill] sm:$0xff] %v9206_v43  ;;  %v6336_v3 = vmul.f32 %v6335_v23, %v2200_v51  ;;  %v2306_v0 = vsel %vm2304_vm11, %v2305_v29, %v9190_v59  ;;  %v9211_v10 = vpop.eup %7203  ;;  %v2295_v31 = vadd.s32 %v9136_v42, %v9142_v28  ;;  %v9222_v55 = vand.u32 65535, %v9199_v47 }
 0x2b4   : > { %vm9215_vm9 = vcmp.le.f32.partialorder %v11346_v13, 0.7853982  ;;  %v2307_v37 = vclz %v2306_v0  ;;  %v6338_v52 = vmul.f32 %v9211_v10, %v9180_v8  ;;  %v9228_v48 = vshrl.u32 %v2523_v41, 5 }
 0x2b5   : > { %v6492_v19 = vsel %vm11268_vm5, 0.5, %v6336_v3  ;;  %v9233_v58 = vsel %vm11273_vm15, 1.0, %v9194_v1  ;;  %v2326_v28 = vsel %vm2203_vm13, %v2325_v22, %v2301_v61  ;;  %v2528_v34 = vshll.u32 %v11308_v17, %v2525_v50 }
 0x2b6   : > { %v6508_v57 = vmul.f32 %v7253_v14, %v6492_v19  ;;  %v6947_v42 = vadd.s32 4294967294, %v2307_v37  ;;  %v2529_v7 = vshrl.u32 %v11305_v49, %v2526_v24  ;;  %v2531_v44 = vshll.u32 %v11305_v49, %v2525_v50 }
 0x2b7   : > { %v2532_v41 = vshrl.u32 %v11306_v16, %v2526_v24  ;;  %v2534_v35 = vshll.u32 %v11306_v16, %v2525_v50  ;;  %v6339_v32 = vsub.f32 1.0, %v6338_v52  ;;  %v2535_v15 = vshrl.u32 %v11318_v38, %v2526_v24 }
 0x2b8   : > { %6642 = vrot.lane.b32.xlu1 %v6508_v57, %s7340_s16  ;;  %vm6948_vm1 = vcmp.lt.s32.totalorder %v6947_v42, 0  ;;  %v2537_v60 = vshll.u32 %v11318_v38, %v2525_v50  ;;  %v2538_v61 = vshrl.u32 %v11307_v25, %v2526_v24  ;;  %v2540_v5 = vshll.u32 %v11307_v25, %v2525_v50 }
 0x2b9   : > { %v2310_v54 = vsel %vm6948_vm1, 0, %v6947_v42  ;;  %v2541_v26 = vshrl.u32 %v11309_v33, %v2526_v24  ;;  %v2328_v29 = vsel %vm9215_vm9, 0, %v2326_v28  ;;  %v2530_v51 = vor.u32 %v2529_v7, %v2528_v34 }
 0x2ba   : > { %v2311_v23 = vsub.s32 32, %v2310_v54  ;;  %v2312_v39 = vshll.u32 %v9190_v59, %v2310_v54  ;;  %v2315_v20 = vsub.s32 4294967266, %v2310_v54  ;;  %v9252_v22 = vor.u32 %v2532_v41, %v2531_v44 }
 0x2bb   : > { %v9255_v3 = vshrl.u32 %v9199_v47, 16  ;;  %v9258_v0 = vmul.f32 0.5, %v9233_v58  ;;  %v6340_v37 = vmul.f32 %v9211_v10, %v6339_v32  ;;  %v2536_v19 = vor.u32 %v2535_v15, %v2534_v35 }
 0x2bc   : > { %v2313_v13 = vshrl.u32 %v2295_v31, %v2311_v23  ;;  %v2316_v50 = vadd.s32 127, %v2315_v20  ;;  %v2345_v52 = vadd.s32 3, %v2328_v29  ;;  %v2539_v59 = vor.u32 %v2538_v61, %v2537_v60 }
 0x2bd   : > { %v2542_v14 = vor.u32 %v2541_v26, %v2540_v5  ;;  %vm2543_vm4 = vcmp.lt.s32.totalorder %v9228_v48, 1  ;;  %vm6342_vm3 = vweird.f32 %v9180_v8  ;;  %vm6343_vm8 = vweird.f32 %v9211_v10 }
 0x2be   : > { %v2314_v57 = vor.u32 %v2313_v13, %v2312_v39  ;;  %v2317_v42 = vshll.u32 %v2316_v50, 23  ;;  %vm2544_vm0 = vcmp.lt.s32.totalorder %v9228_v48, 2  ;;  %vm2545_vm12 = vcmp.lt.s32.totalorder %v9228_v48, 3  ;;  %vm9272_vm11 = vmor %vm6342_vm3, %vm6343_vm8 }
 0x2bf   : > { %vm2546_vm6 = vcmp.lt.s32.totalorder %v9228_v48, 4  ;;  %v9269_v7 = vadd.f32 %v9211_v10, %v6340_v37  ;;  %v6348_v44 = vand.u32 2147483648, %v9180_v8  ;;  %v2527_v35 = vshrl.u32 %v11308_v17, %v2526_v24 }
 0x2c0   : > { %v2318_v28 = vor.u32 4788187, %v2317_v42  ;;  %v2321_v34 = vcvt.s32.f32 %v2314_v57  ;;  %v2551_v32 = vsel %vm2543_vm4, %v2530_v51, %v9252_v22  ;;  %v2552_v15 = vsel %vm2546_vm6, %v2539_v59, 920167782  ;;  %v6552_v57 = vpop.permute.xlu2 %6551 }
 0x2c1   : > { %v2555_v60 = vsel %vm2543_vm4, %v9252_v22, %v2536_v19  ;;  %v9285_v61 = vand.u32 3, %v2345_v52  ;;  %v2553_v5 = vsel %vm2545_vm12, %v2536_v19, %v2552_v15  ;;  %v2556_v24 = vsel %vm2546_vm6, %v2542_v14, 1326507024  ;;  %v740_v52 = vpop.f32.mrf.mxu2 }
 0x2c2   : > { %v2319_v54 = vand.u32 2147483647, %v2318_v28  ;;  %v9291_v26 = vand.u32 3, %v2328_v29  ;;  %v6346_v23 = vand.u32 2147483647, %v9180_v8  ;;  %v2554_v39 = vsel %vm2544_vm0, %v2551_v32, %v2553_v5  ;;  %v6554_v29 = vpop.permute.xlu1 %6553 }
 0x2c3   : > { %v2557_v20 = vsel %vm2545_vm12, %v2539_v59, %v2556_v24  ;;  %v9302_v37 = vor.u32 1.1754944e-38, %v6348_v44  ;;  %v741_v14 = vadd.f32 %v8913_v40, %v740_v52  ;;  %vm11351_vm1 = vcmask 23552  }
 0x2c4   : > { %v2322_v13 = vmul.f32 %v2321_v34, %v2319_v54  ;;  %v2558_v8 = vsel %vm2544_vm0, %v2555_v60, %v2557_v20  ;;  %6592 = vst.msk [vmem:[%s8105_s14 + $0x48] sm:$0xff] %vm11351_vm1, %v6554_v29  ;;  %v2584_v28 = vand.u32 65535, %v2554_v39  ;;  %vm11352_vm3 = vmmov %vm11351_vm1  ;;  %v2548_v44 = vsel %vm2546_vm6, %v2536_v19, 2102212464 }
 0x2c5   : > { %v2562_v42 = vand.u32 65535, %v2558_v8  ;;  %v2563_v59 = vshrl.u32 %v2558_v8, 16  ;;  %6591 = vst.msk [vmem:[%s8105_s14 + $0x40] sm:$0xff] %vm11352_vm3, %v6552_v57  ;;  %v2585_v32 = vshrl.u32 %v2554_v39, 16  ;;  %v2669_v15 = vand.u32 2139095040, %v9258_v0 }
 0x2c6   : > { %v2323_v34 = vxor.u32 2147483648, %v2322_v13  ;;  %7205 = vtanh.f32 %v741_v14  ;;  %v2547_v24 = vsel %vm2543_vm4, %v2527_v35, %v2530_v51  ;;  %v2586_v8 = vmul.u32 %v2584_v28, %v9222_v55 }
 0x2c7   : > { %v2564_v60 = vmul.u32 %v2562_v42, %v9222_v55  ;;  %v2565_v40 = vmul.u32 %v2563_v59, %v9222_v55  ;;  %v2566_v54 = vmul.u32 %v2562_v42, %v9255_v3  ;;  %v2567_v20 = vmul.u32 %v2563_v59, %v9255_v3 }
 0x2c8   : > { %v2324_v5 = vsel %vm2203_vm13, %v2323_v34, %v2322_v13  ;;  %v2587_v19 = vmul.u32 %v2585_v32, %v9222_v55  ;;  %v2549_v51 = vsel %vm2545_vm12, %v9252_v22, %v2548_v44  ;;  %v2588_v35 = vmul.u32 %v2584_v28, %v9255_v3 }
 0x2c9   : > { %v9326_v39 = vsel %vm9215_vm9, %v8890_v62, %v2324_v5  ;;  %v2568_v52 = vshll.u32 %v2565_v40, 16  ;;  %v2570_v29 = vshll.u32 %v2566_v54, 16  ;;  %v2670_v13 = vshrl.u32 %v2669_v15, 23 }
 0x2ca   : > { %v2329_v14 = vmul.f32 %v9326_v39, %v9326_v39  ;;  %v2589_v21 = vmul.u32 %v2585_v32, %v9255_v3  ;;  %v2590_v42 = vshll.u32 %v2587_v19, 16  ;;  %v2569_v5 = vshrl.u32 %v2565_v40, 16 }
 0x2cb   : > { %vm2572_vm13 = vc.u32 %v2564_v60, %v2568_v52  ;;  %v2574_v57 = vadd.s32 %v2568_v52, %v2564_v60  ;;  %v2592_v50 = vshll.u32 %v2588_v35, 16  ;;  %v6955_v60 = vadd.s32 4294967169, %v2670_v13 }
 0x2cc   : > { %v2330_v59 = vmul.f32 -0.001358992, %v2329_v14  ;;  %v2337_v34 = vmul.f32 -0.00019511016, %v2329_v14  ;;  %v2573_v55 = vsel %vm2572_vm13, 1, %v11302_v9  ;;  %v7206_v36 = vpop.eup %7205  ;;  %vm2594_vm4 = vc.u32 %v2586_v8, %v2590_v42 }
 0x2cd   : > { %v2575_v31 = vadd.s32 %v2573_v55, %v2567_v20  ;;  %vm2576_vm9 = vc.u32 %v2574_v57, %v2570_v29  ;;  %v2595_v44 = vsel %vm2594_vm4, 1, %v11302_v9  ;;  %6921 = vmatmul.msk.f32.gmra.mxu3 %vm506_vm2, %v7206_v36  ;;  %v2596_v32 = vadd.s32 %v2590_v42, %v2586_v8 }
 0x2ce   : > { %v2331_v2 = vadd.f32 0.041655596, %v2330_v59  ;;  %v2338_v22 = vadd.f32 0.008332121, %v2337_v34  ;;  %v2577_v28 = vsel %vm2576_vm9, 1, %v11302_v9  ;;  %v2597_v15 = vadd.s32 %v2595_v44, %v2589_v21 }
 0x2cf   : > { %v2579_v3 = vadd.s32 %v2577_v28, %v2575_v31  ;;  %vm9340_vm8 = vcmp.eq.f32.partialorder %v6346_v23, 8.507059e+37  ;;  %v2571_v20 = vshrl.u32 %v2566_v54, 16  ;;  %v2591_v57 = vshrl.u32 %v2587_v19, 16 }
 0x2d0   : > { %v2332_v40 = vmul.f32 %v2331_v2, %v2329_v14  ;;  %v2339_v52 = vmul.f32 %v2338_v22, %v2329_v14  ;;  %vm2598_vm12 = vc.u32 %v2596_v32, %v2592_v50  ;;  %v2676_v59 = vadd.s32 1, %v6955_v60 }
 0x2d1   : > { %v2580_v29 = vadd.s32 %v2579_v3, %v2569_v5  ;;  %vm2347_vm6 = vcmp.lt.s32.totalorder %v9285_v61, 2  ;;  %v2550_v36 = vsel %vm2544_vm0, %v2547_v24, %v2549_v51  ;;  %v2599_v31 = vsel %vm2598_vm12, 1, %v11302_v9 }
 0x2d2   : > { %v2333_v34 = vadd.f32 -0.4999988, %v2332_v40  ;;  %v2340_v55 = vadd.f32 -0.16666654, %v2339_v52  ;;  %vm2344_vm1 = vweird.f32 %v8890_v62  ;;  %v2593_v2 = vshrl.u32 %v2588_v35, 16 }
 0x2d3   : > { %v9349_v23 = vadd.s32 %v2596_v32, %v2592_v50  ;;  %v2601_v8 = vadd.s32 %v2599_v31, %v2597_v15  ;;  %vm2677_vm3 = vcmp.gt.s32.totalorder %v2676_v59, 0  ;;  %v9351_v13 = vadd.s32 %v2580_v29, %v2571_v20 }
 0x2d4   : > { %v2334_v54 = vmul.f32 %v2333_v34, %v2329_v14  ;;  %v2341_v19 = vmul.f32 %v2340_v55, %v2329_v14  ;;  %v2678_v21 = vsel %vm2677_vm3, %v2676_v59, 0  ;;  %vm2348_vm13 = vcmp.eq.s32.totalorder %v9285_v61, 0 }
 0x2d5   : > { %vm2351_vm9 = vcmp.eq.s32.totalorder %v9285_v61, 2  ;;  %vm4821_vm0 = vcmp.eq.s32.totalorder %v9291_v26, 0  ;;  %v2602_v48 = vadd.s32 %v2601_v8, %v2591_v57  ;;  %vm4824_vm4 = vcmp.eq.s32.totalorder %v9291_v26, 2 }
 0x2d6   : > { %v2335_v24 = vadd.f32 1.0, %v2334_v54  ;;  %v2342_v51 = vadd.f32 1.0, %v2341_v19  ;;  %v2680_v50 = vand.u32 31, %v2678_v21  ;;  %vm4820_vm12 = vcmp.lt.s32.totalorder %v9291_v26, 2 }
 0x2d7   : > { %v11355_v14 = vsel %vm9272_vm11, %v9211_v10, %v9269_v7  ;;  %v2603_v42 = vadd.s32 %v2602_v48, %v2593_v2  ;;  %v2604_v5 = vmul.u32 %v9199_v47, %v2550_v36  ;;  %vm2606_vm3 = vc.u32 %v9351_v13, %v9349_v23 }
 0x2d8   : > { %v6350_v35 = vsel %vm9340_vm8, %v9302_v37, %v11355_v14  ;;  %v2343_v22 = vmul.f32 %v2342_v51, %v9326_v39  ;;  %v2352_v28 = vxor.u32 2147483648, %v2335_v24  ;;  %v9370_v44 = vsub.s32 32, %v2680_v50 }
 0x2d9   : > { %v2607_v3 = vadd.s32 1, %v2603_v42  ;;  %v11356_v41 = vand.u32 2147483647, %v9258_v0  ;;  %v2683_v10 = vshll.u32 %v11308_v17, %v2680_v50  ;;  %v2686_v43 = vshll.u32 %v11305_v49, %v2680_v50 }
 0x2da   : > { %v2349_v7 = vxor.u32 2147483648, %v2343_v22  ;;  %v2353_v47 = vsel %vm2351_vm9, %v2352_v28, %v2343_v22  ;;  %v4826_v37 = vsel %vm4824_vm4, %v2352_v28, %v2343_v22  ;;  %v2689_v39 = vshll.u32 %v11306_v16, %v2680_v50 }
 0x2db   : > { %v2673_v32 = vand.u32 8388607, %v11356_v41  ;;  %v2608_v15 = vsel %vm2606_vm3, %v2607_v3, %v2603_v42  ;;  %v2684_v60 = vshrl.u32 %v11305_v49, %v9370_v44  ;;  %v2687_v40 = vshrl.u32 %v11306_v16, %v9370_v44 }
 0x2dc   : > { %v2690_v52 = vshrl.u32 %v11318_v38, %v9370_v44  ;;  %v2350_v20 = vsel %vm2348_vm13, %v2335_v24, %v2349_v7  ;;  %v4823_v29 = vsel %vm4821_vm0, %v2335_v24, %v2349_v7  ;;  %v2609_v57 = vadd.s32 %v2608_v15, %v2604_v5  ;;  %v7254_v5 = vld [vmem:[%s7461_s23 + $0x30] sm:$0xff] }
 0x2dd   : > { %v9391_v59 = vshrl.u32 %v2678_v21, 5  ;;  %v2354_v34 = vsel %vm2347_vm6, %v2350_v20, %v2353_v47  ;;  %v4827_v55 = vsel %vm4820_vm12, %v4823_v29, %v4826_v37  ;;  %v2674_v36 = vor.u32 8388608, %v2673_v32  ;;  %v11357_v20 = vld [vmem:[#allocation8_spill] sm:$0xff] }
 0x2de   : > { %v2692_v31 = vshll.u32 %v11318_v38, %v2680_v50  ;;  %v2355_v2 = vsel %vm2344_vm1, nan, %v2354_v34  ;;  %v9402_v8 = vsel %vm2344_vm1, nan, %v4827_v55  ;;  %v2610_v54 = vadd.s32 536870912, %v2609_v57  ;;  %v11358_v55 = vld [vmem:[#allocation11_spill] sm:$0xff] }
 0x2df   : > { %v9404_v19 = vor.u32 %v2684_v60, %v2683_v10  ;;  %v6351_v21 = vmul.f32 %v6350_v35, %v2355_v2  ;;  %v9406_v61 = vor.u32 %v2687_v40, %v2686_v43  ;;  %v2691_v48 = vor.u32 %v2690_v52, %v2689_v39 }
 0x2e0   : > { %v2693_v26 = vshrl.u32 %v11307_v25, %v9370_v44  ;;  %v2611_v24 = vshrl.u32 %v2610_v54, 30  ;;  %v2695_v51 = vshll.u32 %v11307_v25, %v2680_v50  ;;  %v2696_v14 = vshrl.u32 %v11309_v33, %v9370_v44 }
 0x2e1   : > { %vm2701_vm11 = vcmp.lt.s32.totalorder %v9391_v59, 4  ;;  %v6493_v62 = vsel %vm11267_vm14, 0.5, %v6351_v21  ;;  %vm2698_vm8 = vcmp.lt.s32.totalorder %v9391_v59, 1  ;;  %vm2700_vm6 = vcmp.lt.s32.totalorder %v9391_v59, 3 }
 0x2e2   : > { %v2694_v42 = vor.u32 %v2693_v26, %v2692_v31  ;;  %v1166_v35 = vmul.f32 0.5, %v9132_v46  ;;  %v6509_v22 = vmul.f32 %v7254_v5, %v6493_v62  ;;  %v2612_v28 = vshll.u32 %v2611_v24, 30 }
 0x2e3   : > { %v2697_v3 = vor.u32 %v2696_v14, %v2695_v51  ;;  %v9422_v41 = vshll.u32 %v2674_v36, 8  ;;  %vm2699_vm1 = vcmp.lt.s32.totalorder %v9391_v59, 2  ;;  %v2706_v10 = vsel %vm2698_vm8, %v9404_v19, %v9406_v61 }
 0x2e4   : > { %v2707_v50 = vsel %vm2701_vm11, %v2694_v42, 920167782  ;;  %6644 = vrot.lane.b32.xlu0 %v6509_v22, %s7340_s16  ;;  %v2613_v32 = vsub.s32 %v2609_v57, %v2612_v28  ;;  %v9433_v43 = vmul.f32 0.5, %v9073_v53  ;;  %v2710_v7 = vsel %vm2698_vm8, %v9406_v61, %v2691_v48 }
 0x2e5   : > { %v2708_v46 = vsel %vm2700_vm6, %v2691_v48, %v2707_v50  ;;  %v1167_v47 = vsub.f32 1.5, %v1166_v35  ;;  %v2711_v39 = vsel %vm2701_vm11, %v2697_v3, 1326507024  ;;  %v2715_v52 = vand.u32 65535, %v9422_v41 }
 0x2e6   : > { %vm2614_vm13 = vcmp.lt.s32.totalorder %v2613_v32, 0  ;;  %v2615_v37 = vsub.s32 0, %v2613_v32  ;;  %v2709_v15 = vsel %vm2699_vm1, %v2706_v10, %v2708_v46  ;;  %v2712_v60 = vsel %vm2700_vm6, %v2694_v42, %v2711_v39 }
 0x2e7   : > { %v2713_v53 = vsel %vm2699_vm1, %v2710_v7, %v2712_v60  ;;  %7207 = vrsqrt.f32 %v11357_v20  ;;  %v1179_v34 = vsub.f32 1.5, %v9433_v43  ;;  %v2740_v36 = vshrl.u32 %v2709_v15, 16 }
 0x2e8   : > { %v2616_v40 = vsel %vm2614_vm13, %v2615_v37, %v2613_v32  ;;  %v2718_v57 = vshrl.u32 %v2713_v53, 16  ;;  %7209 = vrsqrt.f32 %v11358_v55  ;;  %v1168_v31 = vmul.f32 %v8859_v4, %v1167_v47 }
 0x2e9   : > { %v2617_v29 = vclz %v2616_v40  ;;  %v11359_v2 = vand.u32 2147483647, %v9128_v30  ;;  %vm2513_vm0 = vcmp.lt.s32.totalorder %v9128_v30, 0  ;;  %v2635_v26 = vsub.s32 4, %v2611_v24 }
 0x2ea   : > { %v2716_v51 = vshrl.u32 %v9422_v41, 16  ;;  %v2717_v14 = vand.u32 65535, %v2713_v53  ;;  %v9459_v62 = vmul.u32 %v2718_v57, %v2715_v52  ;;  %v2739_v42 = vand.u32 65535, %v2709_v15 }
 0x2eb   : > { %vm9453_vm9 = vcmp.le.f32.partialorder %v11359_v2, 0.7853982  ;;  %v6953_v21 = vadd.s32 4294967294, %v2617_v29  ;;  %v2605_v35 = vadd.s32 %v9349_v23, %v9351_v13  ;;  %v9464_v4 = vadd.f32 1e-08, %v9114_v45 }
 0x2ec   : > { %v2682_v5 = vshrl.u32 %v11308_v17, %v9370_v44  ;;  %v2703_v28 = vsel %vm2701_vm11, %v2691_v48, 2102212464  ;;  %v9470_v3 = vmul.u32 %v2740_v36, %v2715_v52  ;;  %v1169_v50 = vmul.f32 %v1168_v31, %v8078_v6 }
 0x2ed   : > { %vm6954_vm4 = vcmp.lt.s32.totalorder %v6953_v21, 0  ;;  %v9473_v10 = vpop.eup %7207  ;;  %v2636_v45 = vsel %vm2513_vm0, %v2635_v26, %v2611_v24  ;;  %v2719_v47 = vmul.u32 %v2717_v14, %v2715_v52  ;;  %v2721_v44 = vmul.u32 %v2717_v14, %v2716_v51 }
 0x2ee   : > { %v2620_v22 = vsel %vm6954_vm4, 0, %v6953_v21  ;;  %v9477_v13 = vpop.eup %7209  ;;  %v2723_v37 = vshll.u32 %v9459_v62, 16  ;;  %v2743_v39 = vmul.u32 %v2739_v42, %v2716_v51  ;;  %7211 = vrcp.f32 %v9464_v4 }
 0x2ef   : > { %v2621_v46 = vsub.s32 32, %v2620_v22  ;;  %v2622_v7 = vshll.u32 %v2613_v32, %v2620_v22  ;;  %v2625_v23 = vsub.s32 4294967266, %v2620_v22  ;;  %v2702_v60 = vsel %vm2698_vm8, %v2682_v5, %v9404_v19 }
 0x2f0   : > { %v2704_v32 = vsel %vm2700_vm6, %v9406_v61, %v2703_v28  ;;  %v2722_v24 = vmul.u32 %v2718_v57, %v2716_v51  ;;  %v2741_v40 = vmul.u32 %v2739_v42, %v2715_v52  ;;  %v2745_v53 = vshll.u32 %v9470_v3, 16 }
 0x2f1   : > { %v2623_v48 = vshrl.u32 %v2605_v35, %v2621_v46  ;;  %v2626_v15 = vadd.s32 127, %v2625_v23  ;;  %v9490_v2 = vsel %vm9453_vm9, 0, %v2636_v45  ;;  %vm1170_vm12 = vcmp.eq.f32.partialorder %v8078_v6, inf }
 0x2f2   : > { %v2725_v21 = vshll.u32 %v2721_v44, 16  ;;  %vm2727_vm3 = vc.u32 %v2719_v47, %v2723_v37  ;;  %v2744_v26 = vmul.u32 %v2740_v36, %v2716_v51  ;;  %v2747_v19 = vshll.u32 %v2743_v39, 16 }
 0x2f3   : > { %v2624_v29 = vor.u32 %v2623_v48, %v2622_v7  ;;  %v2627_v31 = vshll.u32 %v2626_v15, 23  ;;  %v2724_v61 = vshrl.u32 %v9459_v62, 16  ;;  %v2728_v52 = vsel %vm2727_vm3, 1, %v11302_v9 }
 0x2f4   : > { %v2726_v57 = vshrl.u32 %v2721_v44, 16  ;;  %v2729_v42 = vadd.s32 %v2723_v37, %v2719_v47  ;;  %v2730_v5 = vadd.s32 %v2728_v52, %v2722_v24  ;;  %vm2749_vm11 = vc.u32 %v2741_v40, %v2745_v53  ;;  %v9495_v22 = vpop.eup %7211 }
 0x2f5   : > { %v2628_v14 = vor.u32 4788187, %v2627_v31  ;;  %v2631_v35 = vcvt.s32.f32 %v2624_v29  ;;  %v2750_v46 = vsel %vm2749_vm11, 1, %v11302_v9  ;;  %v2751_v7 = vadd.s32 %v2745_v53, %v2741_v40 }
 0x2f6   : > { %v1171_v36 = vsel %vm1170_vm12, %v8078_v6, %v1169_v50  ;;  %vm2731_vm8 = vc.u32 %v2729_v42, %v2725_v21  ;;  %v2752_v51 = vadd.s32 %v2750_v46, %v2744_v26  ;;  %vm1172_vm6 = vcmp.eq.f32.partialorder %v8078_v6, 0.0 }
 0x2f7   : > { %v2629_v28 = vand.u32 2147483647, %v2628_v14  ;;  %v1173_v62 = vand.u32 2147483648, %v8078_v6  ;;  %v2732_v45 = vsel %vm2731_vm8, 1, %v11302_v9  ;;  %v2746_v47 = vshrl.u32 %v9470_v3, 16 }
 0x2f8   : > { %vm2753_vm13 = vc.u32 %v2751_v7, %v2747_v19  ;;  %v2734_v44 = vadd.s32 %v2732_v45, %v2730_v5  ;;  %v1180_v50 = vmul.f32 %v8781_v18, %v1179_v34  ;;  %v2748_v24 = vshrl.u32 %v2743_v39, 16 }
 0x2f9   : > { %v2632_v23 = vmul.f32 %v2631_v35, %v2629_v28  ;;  %v2754_v37 = vsel %vm2753_vm13, 1, %v11302_v9  ;;  %v9506_v48 = vsel %vm1172_vm6, %v1173_v62, %v1171_v36  ;;  %v6368_v6 = vmul.f32 %v9495_v22, %v9464_v4 }
 0x2fa   : > { %v2756_v40 = vadd.s32 %v2754_v37, %v2752_v51  ;;  %vm1234_vm4 = vcmp.lt.f32.partialorder %v9506_v48, 1e-06  ;;  %v2735_v53 = vadd.s32 %v2734_v44, %v2724_v61  ;;  %v9514_v3 = vadd.s32 %v2751_v7, %v2747_v19 }
 0x2fb   : > { %v2633_v15 = vxor.u32 2147483648, %v2632_v23  ;;  %v9519_v29 = vsel %vm1234_vm4, 1.0, %v9506_v48  ;;  %v2705_v18 = vsel %vm2699_vm1, %v2702_v60, %v2704_v32  ;;  %v2655_v21 = vadd.s32 3, %v9490_v2 }
 0x2fc   : > { %v2757_v34 = vadd.s32 %v2756_v40, %v2746_v47  ;;  %v9526_v39 = vmul.f32 0.5, %v9519_v29  ;;  %v9534_v26 = vadd.s32 %v2735_v53, %v2726_v57  ;;  %v1181_v19 = vmul.f32 %v1180_v50, %v8083_v27 }
 0x2fd   : > { %v2634_v43 = vsel %vm2513_vm0, %v2633_v15, %v2632_v23  ;;  %vm1182_vm1 = vcmp.eq.f32.partialorder %v8083_v27, inf  ;;  %v9543_v32 = vmul.f32 %v9473_v10, %v11357_v20  ;;  %v6369_v54 = vsub.f32 1.0, %v6368_v6 }
 0x2fe   : > { %v9531_v31 = vsel %vm9453_vm9, %v9128_v30, %v2634_v43  ;;  %v2758_v59 = vadd.s32 %v2757_v34, %v2748_v24  ;;  %v2979_v60 = vand.u32 2139095040, %v9526_v39  ;;  %v2759_v35 = vmul.u32 %v9422_v41, %v2705_v18 }
 0x2ff   : > { %v2639_v14 = vmul.f32 %v9531_v31, %v9531_v31  ;;  %vm2761_vm9 = vc.u32 %v9534_v26, %v9514_v3  ;;  %v9548_v5 = vand.u32 3, %v2655_v21  ;;  %v1183_v28 = vsel %vm1182_vm1, %v8083_v27, %v1181_v19 }
 0x300   : > { %v2762_v57 = vadd.s32 1, %v2758_v59  ;;  %v2980_v42 = vshrl.u32 %v2979_v60, 23  ;;  %vm1184_vm0 = vcmp.eq.f32.partialorder %v8083_v27, 0.0  ;;  %v1185_v46 = vand.u32 2147483648, %v8083_v27 }
 0x301   : > { %v2640_v61 = vmul.f32 -0.001358992, %v2639_v14  ;;  %v2647_v52 = vmul.f32 -0.00019511016, %v2639_v14  ;;  %v9554_v41 = vand.u32 3, %v9490_v2  ;;  %v6370_v23 = vmul.f32 %v9495_v22, %v6369_v54 }
 0x302   : > { %v2763_v51 = vsel %vm2761_vm9, %v2762_v57, %v2758_v59  ;;  %v6961_v62 = vadd.s32 4294967169, %v2980_v42  ;;  %v6378_v45 = vand.u32 2147483648, %v9464_v4  ;;  %vm6372_vm12 = vweird.f32 %v9464_v4 }
 0x303   : > { %v2641_v7 = vadd.f32 0.041655596, %v2640_v61  ;;  %v2648_v36 = vadd.f32 0.008332121, %v2647_v52  ;;  %v2764_v47 = vadd.s32 %v2763_v51, %v2759_v35  ;;  %vm6373_vm3 = vweird.f32 %v9495_v22 }
 0x304   : > { %v2986_v50 = vadd.s32 1, %v6961_v62  ;;  %v11270_v24 = vand.u32 2147483647, %v9526_v39  ;;  %v9563_v40 = vsel %vm1184_vm0, %v1185_v46, %v1183_v28  ;;  %vm2657_vm11 = vcmp.lt.s32.totalorder %v9548_v5, 2  ;;  %vm9575_vm9 = vmor %vm6372_vm12, %vm6373_vm3 }
 0x305   : > { %v2642_v44 = vmul.f32 %v2641_v7, %v2639_v14  ;;  %v2649_v37 = vmul.f32 %v2648_v36, %v2639_v14  ;;  %v2765_v15 = vadd.s32 536870912, %v2764_v47  ;;  %11362 = vst [vmem:[#allocation8_spill] sm:$0xff] %v9563_v40  ;;  %vm2658_vm8 = vcmp.eq.s32.totalorder %v9548_v5, 0 }
 0x306   : > { %vm2987_vm6 = vcmp.gt.s32.totalorder %v2986_v50, 0  ;;  %vm2654_vm13 = vweird.f32 %v9128_v30  ;;  %vm2661_vm1 = vcmp.eq.s32.totalorder %v9548_v5, 2  ;;  %v6371_v53 = vadd.f32 %v9495_v22, %v6370_v23 }
 0x307   : > { %v2643_v2 = vadd.f32 -0.4999988, %v2642_v44  ;;  %v2650_v6 = vadd.f32 -0.16666654, %v2649_v37  ;;  %v6376_v43 = vand.u32 2147483647, %v9464_v4 }
 0x308   : > { %v2766_v18 = vshrl.u32 %v2765_v15, 30  ;;  %v9580_v19 = vadd.f32 1e-08, %v9233_v58  ;;  %vm1235_vm0 = vcmp.lt.f32.partialorder %v9563_v40, 1e-06  ;;  %vm5129_vm14 = vcmp.eq.s32.totalorder %v9554_v41, 0 }
 0x309   : > { %v2644_v34 = vmul.f32 %v2643_v2, %v2639_v14  ;;  %v2651_v27 = vmul.f32 %v2650_v6, %v2639_v14  ;;  %v2983_v60 = vand.u32 8388607, %v11270_v24  ;;  %v9586_v14 = vsel %vm2987_vm6, %v2986_v50, 0 }
 0x30a   : > { %v2767_v59 = vshll.u32 %v2766_v18, 30  ;;  %vm5132_vm12 = vcmp.eq.s32.totalorder %v9554_v41, 2  ;;  %vm2668_vm3 = vcmp.lt.s32.totalorder %v9258_v0, 0  ;;  %7213 = vrcp.f32 %v9580_v19 }
 0x30b   : > { %v2645_v54 = vadd.f32 1.0, %v2644_v34  ;;  %v2652_v35 = vadd.f32 1.0, %v2651_v27  ;;  %v6375_v58 = vsel %vm9575_vm9, %v9495_v22, %v6371_v53  ;;  %v6379_v4 = vor.u32 1.1754944e-38, %v6378_v45 }
 0x30c   : > { %v9594_v61 = vsub.s32 %v2764_v47, %v2767_v59  ;;  %v9599_v52 = vsel %vm1235_vm0, 1.0, %v9563_v40  ;;  %vm6377_vm6 = vcmp.eq.f32.partialorder %v6376_v43, 8.507059e+37  ;;  %v2990_v28 = vand.u32 31, %v9586_v14 }
 0x30d   : > { %v2653_v57 = vmul.f32 %v2652_v35, %v9531_v31  ;;  %v2662_v42 = vxor.u32 2147483648, %v2645_v54  ;;  %vm5128_vm5 = vcmp.lt.s32.totalorder %v9554_v41, 2  ;;  %v2984_v46 = vor.u32 8388608, %v2983_v60 }
 0x30e   : > { %vm2769_vm10 = vcmp.lt.s32.totalorder %v9594_v61, 0  ;;  %v2770_v22 = vsub.s32 0, %v9594_v61  ;;  %v11365_v31 = vand.u32 2147483647, %v9258_v0  ;;  %v9617_v23 = vmul.f32 0.5, %v9599_v52 }
 0x30f   : > { %v2659_v7 = vxor.u32 2147483648, %v2653_v57  ;;  %v2663_v36 = vsel %vm2661_vm1, %v2662_v42, %v2653_v57  ;;  %v5134_v51 = vsel %vm5132_vm12, %v2662_v42, %v2653_v57  ;;  %v6380_v45 = vsel %vm6377_vm6, %v6379_v4, %v6375_v58 }
 0x310   : > { %vm9612_vm9 = vcmp.le.f32.partialorder %v11365_v31, 0.7853982  ;;  %v2760_v47 = vadd.s32 %v9514_v3, %v9534_v26  ;;  %v2771_v44 = vsel %vm2769_vm10, %v2770_v22, %v9594_v61  ;;  %v2790_v37 = vsub.s32 4, %v2766_v18  ;;  %v9622_v50 = vpop.eup %7213 }
 0x311   : > { %v2660_v15 = vsel %vm2658_vm8, %v2645_v54, %v2659_v7  ;;  %v5131_v2 = vsel %vm5129_vm14, %v2645_v54, %v2659_v7  ;;  %v2772_v6 = vclz %v2771_v44  ;;  %v2991_v53 = vsub.s32 32, %v2990_v28  ;;  %v7255_v7 = vld [vmem:[%s7461_s23 + $0x40] sm:$0xff] }
 0x312   : > { %v2664_v43 = vsel %vm2657_vm11, %v2660_v15, %v2663_v36  ;;  %v5135_v34 = vsel %vm5128_vm5, %v5131_v2, %v5134_v51  ;;  %v6383_v3 = vmul.f32 %v9622_v50, %v9580_v19  ;;  %v9634_v26 = vshll.u32 %v2984_v46, 8 }
 0x313   : > { %v2665_v27 = vsel %vm2654_vm13, nan, %v2664_v43  ;;  %v9640_v21 = vsel %vm2654_vm13, nan, %v5135_v34  ;;  %v6956_v59 = vadd.s32 4294967294, %v2772_v6  ;;  %v3134_v5 = vand.u32 2139095040, %v9617_v23 }
 0x314   : > { %11368 = vst [vmem:[#allocation11_spill] sm:$0xff] %v9640_v21  ;;  %v6381_v60 = vmul.f32 %v6380_v45, %v2665_v27  ;;  %v2791_v41 = vsel %vm2668_vm3, %v2790_v37, %v2766_v18  ;;  %v2993_v54 = vshll.u32 %v11308_v17, %v2990_v28  ;;  %v2996_v35 = vshll.u32 %v11305_v49, %v2990_v28 }
 0x315   : > { %vm6957_vm10 = vcmp.lt.s32.totalorder %v6956_v59, 0  ;;  %v2994_v58 = vshrl.u32 %v11305_v49, %v2991_v53  ;;  %v2997_v4 = vshrl.u32 %v11306_v16, %v2991_v53  ;;  %v2999_v30 = vshll.u32 %v11306_v16, %v2990_v28 }
 0x316   : > { %v6495_v57 = vsel %vm11274_vm7, 0.5, %v6381_v60  ;;  %v2775_v42 = vsel %vm6957_vm10, 0, %v6956_v59  ;;  %v6384_v22 = vsub.f32 1.0, %v6383_v3  ;;  %v3000_v46 = vshrl.u32 %v11318_v38, %v2991_v53 }
 0x317   : > { %v6511_v18 = vmul.f32 %v7255_v7, %v6495_v57  ;;  %v2776_v36 = vsub.s32 32, %v2775_v42  ;;  %v2777_v51 = vshll.u32 %v9594_v61, %v2775_v42  ;;  %v2780_v31 = vsub.s32 4294967266, %v2775_v42 }
 0x318   : > { %v2793_v45 = vsel %vm9612_vm9, 0, %v2791_v41  ;;  %v3002_v44 = vshll.u32 %v11318_v38, %v2990_v28  ;;  %v3003_v37 = vshrl.u32 %v11307_v25, %v2991_v53  ;;  %v9660_v15 = vand.u32 65535, %v9634_v26 }
 0x319   : > { %6648 = vrot.lane.b32.xlu1 %v6511_v18, %s7340_s16  ;;  %v2778_v2 = vshrl.u32 %v2760_v47, %v2776_v36  ;;  %v2781_v6 = vadd.s32 127, %v2780_v31  ;;  %v9664_v43 = vshrl.u32 %v9586_v14, 5  ;;  %v9667_v61 = vshrl.u32 %v9634_v26, 16 }
 0x31a   : > { %v6385_v34 = vmul.f32 %v9622_v50, %v6384_v22  ;;  %v2995_v3 = vor.u32 %v2994_v58, %v2993_v54  ;;  %v2998_v27 = vor.u32 %v2997_v4, %v2996_v35  ;;  %v3005_v59 = vshll.u32 %v11307_v25, %v2990_v28 }
 0x31b   : > { %v2779_v60 = vor.u32 %v2778_v2, %v2777_v51  ;;  %v2782_v41 = vshll.u32 %v2781_v6, 23  ;;  %v2810_v57 = vadd.s32 3, %v2793_v45  ;;  %v3001_v42 = vor.u32 %v3000_v46, %v2999_v30  ;;  %v743_v6 = vpop.f32.mrf.mxu2 }
 0x31c   : > { %vm6387_vm5 = vweird.f32 %v9580_v19  ;;  %vm6388_vm14 = vweird.f32 %v9622_v50  ;;  %v3004_v47 = vor.u32 %v3003_v37, %v3002_v44  ;;  %v3006_v14 = vshrl.u32 %v11309_v33, %v2991_v53 }
 0x31d   : > { %v2783_v7 = vor.u32 4788187, %v2782_v41  ;;  %v2786_v18 = vcvt.s32.f32 %v2779_v60  ;;  %vm3008_vm11 = vcmp.lt.s32.totalorder %v9664_v43, 1  ;;  %v9677_v35 = vadd.f32 %v9622_v50, %v6385_v34  ;;  %vm9683_vm13 = vmor %vm6387_vm5, %vm6388_vm14  ;;  %v6560_v34 = vpop.permute.xlu1 %6559  ;;  %v9708_v60 = vld [vmem:[%s11229_s6] ss:$0 sm:$0xff] }
 0x31e   : > { %v2992_v28 = vshrl.u32 %v11308_v17, %v2991_v53  ;;  %v3007_v58 = vor.u32 %v3006_v14, %v3005_v59  ;;  %vm3011_vm8 = vcmp.lt.s32.totalorder %v9664_v43, 4  ;;  %v9681_v30 = vand.u32 3, %v2810_v57 }
 0x31f   : > { %v2784_v4 = vand.u32 2147483647, %v2783_v7  ;;  %vm3009_vm1 = vcmp.lt.s32.totalorder %v9664_v43, 2  ;;  %vm3010_vm12 = vcmp.lt.s32.totalorder %v9664_v43, 3  ;;  %v3016_v46 = vsel %vm3008_vm11, %v2995_v3, %v2998_v27 }
 0x320   : > { %v3017_v53 = vsel %vm3011_vm8, %v3004_v47, 920167782  ;;  %v3020_v36 = vsel %vm3008_vm11, %v2998_v27, %v3001_v42  ;;  %v3021_v51 = vsel %vm3011_vm8, %v3007_v58, 1326507024  ;;  %v9697_v44 = vand.u32 3, %v2793_v45  ;;  %v6558_v45 = vpop.permute.xlu2 %6557 }
 0x321   : > { %v2787_v31 = vmul.f32 %v2786_v18, %v2784_v4  ;;  %v6391_v37 = vand.u32 2147483647, %v9580_v19  ;;  %v6393_v2 = vand.u32 2147483648, %v9580_v19  ;;  %v744_v41 = vadd.f32 %v9708_v60, %v743_v6 }
 0x322   : > { %vm11371_vm6 = vcmask 23552   ;;  %v3018_v19 = vsel %vm3010_vm12, %v3001_v42, %v3017_v53  ;;  %v3022_v57 = vsel %vm3010_vm12, %v3004_v47, %v3021_v51  ;;  %v3013_v7 = vsel %vm3011_vm8, %v3001_v42, 2102212464 }
 0x323   : > { %6595 = vst.msk [vmem:[%s8105_s14 + $0x60] sm:$0xff] %vm11371_vm6, %v6560_v34  ;;  %v2788_v14 = vxor.u32 2147483648, %v2787_v31  ;;  %vm11372_vm10 = vmmov %vm11371_vm6  ;;  %v3019_v18 = vsel %vm3009_vm1, %v3016_v46, %v3018_v19  ;;  %v3023_v58 = vsel %vm3009_vm1, %v3020_v36, %v3022_v57  ;;  %7215 = vtanh.f32 %v744_v41 }
 0x324   : > { %6594 = vst.msk [vmem:[%s8105_s14 + $0x58] sm:$0xff] %vm11372_vm10, %v6558_v45  ;;  %v3027_v4 = vand.u32 65535, %v3023_v58  ;;  %v3028_v6 = vshrl.u32 %v3023_v58, 16  ;;  %v3049_v34 = vand.u32 65535, %v3019_v18  ;;  %v9727_v47 = vor.u32 1.1754944e-38, %v6393_v2 }
 0x325   : > { %v2789_v53 = vsel %vm2668_vm3, %v2788_v14, %v2787_v31  ;;  %v3050_v51 = vshrl.u32 %v3019_v18, 16  ;;  %v3135_v45 = vshrl.u32 %v3134_v5, 23  ;;  %v3012_v2 = vsel %vm3008_vm11, %v2992_v28, %v2995_v3 }
 0x326   : > { %v9734_v42 = vsel %vm9612_vm9, %v9258_v0, %v2789_v53  ;;  %v3029_v46 = vmul.u32 %v3027_v4, %v9660_v15  ;;  %v3030_v36 = vmul.u32 %v3028_v6, %v9660_v15  ;;  %v3031_v41 = vmul.u32 %v3027_v4, %v9667_v61 }
 0x327   : > { %v2794_v31 = vmul.f32 %v9734_v42, %v9734_v42  ;;  %v3014_v5 = vsel %vm3010_vm12, %v2998_v27, %v3013_v7  ;;  %v3052_v19 = vmul.u32 %v3050_v51, %v9660_v15  ;;  %v3032_v62 = vmul.u32 %v3028_v6, %v9667_v61 }
 0x328   : > { %v3033_v57 = vshll.u32 %v3030_v36, 16  ;;  %v3035_v14 = vshll.u32 %v3031_v41, 16  ;;  %v3051_v18 = vmul.u32 %v3049_v34, %v9660_v15  ;;  %vm9748_vm3 = vcmp.eq.f32.partialorder %v6391_v37, 8.507059e+37 }
 0x329   : > { %v2795_v58 = vmul.f32 -0.001358992, %v2794_v31  ;;  %v2802_v53 = vmul.f32 -0.00019511016, %v2794_v31  ;;  %v3053_v24 = vmul.u32 %v3049_v34, %v9667_v61  ;;  %v6964_v3 = vadd.s32 4294967169, %v3135_v45  ;;  %v7216_v28 = vpop.eup %7215 }
 0x32a   : > { %vm3037_vm9 = vc.u32 %v3029_v46, %v3033_v57  ;;  %v3039_v27 = vadd.s32 %v3033_v57, %v3029_v46  ;;  %v3054_v7 = vmul.u32 %v3050_v51, %v9667_v61  ;;  %v3055_v54 = vshll.u32 %v3052_v19, 16  ;;  %6922 = vmatmul.msk.f32.gmra.mxu3 %vm506_vm2, %v7216_v28 }
 0x32b   : > { %v2796_v6 = vadd.f32 0.041655596, %v2795_v58  ;;  %v2803_v59 = vadd.f32 0.008332121, %v2802_v53  ;;  %v3034_v56 = vshrl.u32 %v3030_v36, 16  ;;  %v3038_v15 = vsel %vm3037_vm9, 1, %v11302_v9 }
 0x32c   : > { %vm2816_vm5 = vcmp.eq.s32.totalorder %v9681_v30, 2  ;;  %v3040_v37 = vadd.s32 %v3038_v15, %v3032_v62  ;;  %vm3041_vm14 = vc.u32 %v3039_v27, %v3035_v14  ;;  %v3057_v21 = vshll.u32 %v3053_v24, 16 }
 0x32d   : > { %vm3059_vm11 = vc.u32 %v3051_v18, %v3055_v54  ;;  %v2797_v34 = vmul.f32 %v2796_v6, %v2794_v31  ;;  %v2804_v45 = vmul.f32 %v2803_v59, %v2794_v31  ;;  %v3042_v46 = vsel %vm3041_vm14, 1, %v11302_v9 }
 0x32e   : > { %v3060_v61 = vsel %vm3059_vm11, 1, %v11302_v9  ;;  %vm2813_vm8 = vcmp.eq.s32.totalorder %v9681_v30, 0  ;;  %vm5283_vm12 = vcmp.eq.s32.totalorder %v9697_v44, 0  ;;  %v3036_v51 = vshrl.u32 %v3031_v41, 16 }
 0x32f   : > { %v3044_v36 = vadd.s32 %v3042_v46, %v3040_v37  ;;  %v3061_v57 = vadd.s32 %v3055_v54, %v3051_v18  ;;  %v3062_v58 = vadd.s32 %v3060_v61, %v3054_v7  ;;  %v2798_v53 = vadd.f32 -0.4999988, %v2797_v34 }
 0x330   : > { %v2805_v28 = vadd.f32 -0.16666654, %v2804_v45  ;;  %vm2812_vm6 = vcmp.lt.s32.totalorder %v9681_v30, 2  ;;  %v3015_v62 = vsel %vm3009_vm1, %v3012_v2, %v3014_v5  ;;  %v3141_v59 = vadd.s32 1, %v6964_v3 }
 0x331   : > { %vm2809_vm10 = vweird.f32 %v9258_v0  ;;  %v3045_v14 = vadd.s32 %v3044_v36, %v3034_v56  ;;  %v3056_v27 = vshrl.u32 %v3052_v19, 16  ;;  %v3058_v6 = vshrl.u32 %v3053_v24, 16 }
 0x332   : > { %vm3063_vm9 = vc.u32 %v3061_v57, %v3057_v21  ;;  %v2799_v15 = vmul.f32 %v2798_v53, %v2794_v31  ;;  %v2806_v12 = vmul.f32 %v2805_v28, %v2794_v31  ;;  %vm3142_vm14 = vcmp.gt.s32.totalorder %v3141_v59, 0 }
 0x333   : > { %v3064_v41 = vsel %vm3063_vm9, 1, %v11302_v9  ;;  %v9766_v54 = vadd.s32 %v3045_v14, %v3036_v51  ;;  %v9768_v18 = vadd.s32 %v3061_v57, %v3057_v21  ;;  %v3143_v37 = vsel %vm3142_vm14, %v3141_v59, 0 }
 0x334   : > { %v3066_v7 = vadd.s32 %v3064_v41, %v3062_v58  ;;  %v2800_v43 = vadd.f32 1.0, %v2799_v15  ;;  %v2807_v2 = vadd.f32 1.0, %v2806_v12  ;;  %vm5286_vm1 = vcmp.eq.s32.totalorder %v9697_v44, 2 }
 0x335   : > { %v3145_v5 = vand.u32 31, %v3143_v37  ;;  %vm5282_vm11 = vcmp.lt.s32.totalorder %v9697_v44, 2  ;;  %v11375_v56 = vsel %vm9683_vm13, %v9622_v50, %v9677_v35  ;;  %v3069_v31 = vmul.u32 %v9634_v26, %v3015_v62 }
 0x336   : > { %v6395_v24 = vsel %vm9748_vm3, %v9727_v47, %v11375_v56  ;;  %v3067_v21 = vadd.s32 %v3066_v7, %v3056_v27  ;;  %v2808_v19 = vmul.f32 %v2807_v2, %v9734_v42  ;;  %v2817_v12 = vxor.u32 2147483648, %v2800_v43 }
 0x337   : > { %v11376_v3 = vand.u32 2147483647, %v9617_v23  ;;  %v9784_v45 = vsub.s32 32, %v3145_v5  ;;  %vm3071_vm9 = vc.u32 %v9766_v54, %v9768_v18  ;;  %v9788_v50 = vshrl.u32 %v3143_v37, 5 }
 0x338   : > { %v3068_v46 = vadd.s32 %v3067_v21, %v3058_v6  ;;  %v3148_v35 = vshll.u32 %v11308_v17, %v3145_v5  ;;  %v2814_v22 = vxor.u32 2147483648, %v2808_v19  ;;  %v2818_v26 = vsel %vm2816_vm5, %v2817_v12, %v2808_v19 }
 0x339   : > { %v3138_v34 = vand.u32 8388607, %v11376_v3  ;;  %v5288_v47 = vsel %vm5286_vm1, %v2817_v12, %v2808_v19  ;;  %v3151_v42 = vshll.u32 %v11305_v49, %v3145_v5  ;;  %v3149_v61 = vshrl.u32 %v11305_v49, %v9784_v45 }
 0x33a   : > { %v3072_v4 = vadd.s32 1, %v3068_v46  ;;  %v3154_v51 = vshll.u32 %v11306_v16, %v3145_v5  ;;  %v3157_v36 = vshll.u32 %v11318_v38, %v3145_v5  ;;  %v2815_v57 = vsel %vm2813_vm8, %v2800_v43, %v2814_v22 }
 0x33b   : > { %v5285_v58 = vsel %vm5283_vm12, %v2800_v43, %v2814_v22  ;;  %v3152_v53 = vshrl.u32 %v11306_v16, %v9784_v45  ;;  %v3158_v28 = vshrl.u32 %v11307_v25, %v9784_v45  ;;  %v2819_v62 = vsel %vm2812_vm6, %v2815_v57, %v2818_v26 }
 0x33c   : > { %v5289_v59 = vsel %vm5282_vm11, %v5285_v58, %v5288_v47  ;;  %v3073_v14 = vsel %vm3071_vm9, %v3072_v4, %v3068_v46  ;;  %v3155_v27 = vshrl.u32 %v11318_v38, %v9784_v45  ;;  %v2820_v6 = vsel %vm2809_vm10, nan, %v2819_v62 }
 0x33d   : > { %v9821_v15 = vsel %vm2809_vm10, nan, %v5289_v59  ;;  %v3074_v30 = vadd.s32 %v3073_v14, %v3069_v31  ;;  %v3160_v41 = vshll.u32 %v11307_v25, %v3145_v5  ;;  %v1117_v44 = vmul.f32 %v9473_v10, %v9543_v32  ;;  %v7257_v5 = vld [vmem:[%s7461_s23 + $0x48] sm:$0xff] }
 0x33e   : > { %v1200_v7 = vmul.f32 %v9477_v13, %v11358_v55  ;;  %v6396_v37 = vmul.f32 %v6395_v24, %v2820_v6  ;;  %v3139_v43 = vor.u32 8388608, %v3138_v34  ;;  %v3150_v56 = vor.u32 %v3149_v61, %v3148_v35 }
 0x33f   : > { %v3075_v2 = vadd.s32 536870912, %v3074_v30  ;;  %v3159_v21 = vor.u32 %v3158_v28, %v3157_v36  ;;  %v3161_v0 = vshrl.u32 %v11309_v33, %v9784_v45  ;;  %v3153_v31 = vor.u32 %v3152_v53, %v3151_v42 }
 0x340   : > { %v6496_v19 = vsel %vm11273_vm15, 0.5, %v6396_v37  ;;  %v3156_v12 = vor.u32 %v3155_v27, %v3154_v51  ;;  %vm3163_vm13 = vcmp.lt.s32.totalorder %v9788_v50, 1  ;;  %vm3166_vm3 = vcmp.lt.s32.totalorder %v9788_v50, 4 }
 0x341   : > { %v6512_v32 = vmul.f32 %v7257_v5, %v6496_v19  ;;  %v3076_v3 = vshrl.u32 %v3075_v2, 30  ;;  %v3162_v46 = vor.u32 %v3161_v0, %v3160_v41  ;;  %vm3165_vm5 = vcmp.lt.s32.totalorder %v9788_v50, 3 }
 0x342   : > { %v9836_v24 = vshll.u32 %v3139_v43, 8  ;;  %v1201_v34 = vmul.f32 %v9477_v13, %v1200_v7  ;;  %v3172_v22 = vsel %vm3166_vm3, %v3159_v21, 920167782  ;;  %v1118_v26 = vmul.f32 0.5, %v1117_v44  ;;  %v11377_v43 = vld [vmem:[#allocation12_spill] sm:$0xff] }
 0x343   : > { %6650 = vrot.lane.b32.xlu0 %v6512_v32, %s7340_s16  ;;  %v3077_v35 = vshll.u32 %v3076_v3, 30  ;;  %vm3164_vm8 = vcmp.lt.s32.totalorder %v9788_v50, 2  ;;  %v3175_v47 = vsel %vm3163_vm13, %v3153_v31, %v3156_v12  ;;  %v3171_v4 = vsel %vm3163_vm13, %v3150_v56, %v3153_v31 }
 0x344   : > { %v3173_v61 = vsel %vm3165_vm5, %v3156_v12, %v3172_v22  ;;  %v3176_v51 = vsel %vm3166_vm3, %v3162_v46, 1326507024  ;;  %v3180_v57 = vand.u32 65535, %v9836_v24  ;;  %v9854_v58 = vmul.f32 0.5, %v1201_v34 }
 0x345   : > { %v3078_v42 = vsub.s32 %v3074_v30, %v3077_v35  ;;  %v3177_v36 = vsel %vm3165_vm5, %v3159_v21, %v3176_v51  ;;  %v3174_v62 = vsel %vm3164_vm8, %v3171_v4, %v3173_v61  ;;  %v1119_v27 = vsub.f32 1.5, %v1118_v26 }
 0x346   : > { %v3178_v28 = vsel %vm3164_vm8, %v3175_v47, %v3177_v36  ;;  %v3181_v30 = vshrl.u32 %v9836_v24, 16  ;;  %v3147_v44 = vshrl.u32 %v11308_v17, %v9784_v45  ;;  %v1203_v37 = vsub.f32 1.5, %v9854_v58 }
 0x347   : > { %vm3079_vm12 = vcmp.lt.s32.totalorder %v3078_v42, 0  ;;  %v3080_v53 = vsub.s32 0, %v3078_v42  ;;  %v3182_v59 = vand.u32 65535, %v3178_v28  ;;  %v3183_v14 = vshrl.u32 %v3178_v28, 16 }
 0x348   : > { %7217 = vrsqrt.f32 %v11377_v43  ;;  %v3205_v21 = vshrl.u32 %v3174_v62, 16  ;;  %v3100_v19 = vsub.s32 4, %v3076_v3  ;;  %v3168_v5 = vsel %vm3166_vm3, %v3156_v12, 2102212464 }
 0x349   : > { %v3081_v6 = vsel %vm3079_vm12, %v3080_v53, %v3078_v42  ;;  %v3185_v7 = vmul.u32 %v3183_v14, %v3180_v57  ;;  %v3184_v2 = vmul.u32 %v3182_v59, %v3180_v57  ;;  %vm2978_vm6 = vcmp.lt.s32.totalorder %v9526_v39, 0 }
 0x34a   : > { %v3082_v41 = vclz %v3081_v6  ;;  %v9868_v46 = vmul.u32 %v3182_v59, %v3181_v30  ;;  %v3204_v34 = vand.u32 65535, %v3174_v62  ;;  %v1120_v45 = vmul.f32 %v9473_v10, %v1119_v27 }
 0x34b   : > { %v3188_v32 = vshll.u32 %v3185_v7, 16  ;;  %v3070_v35 = vadd.s32 %v9768_v18, %v9766_v54  ;;  %v9874_v22 = vadd.f32 1e-08, %v9519_v29  ;;  %v3167_v26 = vsel %vm3163_vm13, %v3147_v44, %v3150_v56 }
 0x34c   : > { %v6962_v0 = vadd.s32 4294967294, %v3082_v41  ;;  %v3169_v12 = vsel %vm3165_vm5, %v3153_v31, %v3168_v5  ;;  %v3207_v4 = vmul.u32 %v3205_v21, %v3180_v57  ;;  %v3101_v10 = vsel %vm2978_vm6, %v3100_v19, %v3076_v3 }
 0x34d   : > { %vm3192_vm14 = vc.u32 %v3184_v2, %v3188_v32  ;;  %v3187_v18 = vmul.u32 %v3183_v14, %v3181_v30  ;;  %v3190_v29 = vshll.u32 %v9868_v46, 16  ;;  %v3194_v53 = vadd.s32 %v3188_v32, %v3184_v2 }
 0x34e   : > { %vm6963_vm10 = vcmp.lt.s32.totalorder %v6962_v0, 0  ;;  %v9882_v54 = vpop.eup %7217  ;;  %v3208_v28 = vmul.u32 %v3204_v34, %v3181_v30  ;;  %7219 = vrcp.f32 %v9874_v22  ;;  %v3193_v31 = vsel %vm3192_vm14, 1, %v11302_v9 }
 0x34f   : > { %v3085_v47 = vsel %vm6963_vm10, 0, %v6962_v0  ;;  %v11378_v59 = vand.u32 2147483647, %v9526_v39  ;;  %v9895_v3 = vsel %vm3164_vm8, %v3167_v26, %v3169_v12  ;;  %v3206_v14 = vmul.u32 %v3204_v34, %v3180_v57 }
 0x350   : > { %v3086_v61 = vsub.s32 32, %v3085_v47  ;;  %v3087_v51 = vshll.u32 %v3078_v42, %v3085_v47  ;;  %v3090_v36 = vsub.s32 4294967266, %v3085_v47  ;;  %v3210_v27 = vshll.u32 %v3207_v4, 16 }
 0x351   : > { %vm9889_vm1 = vcmp.le.f32.partialorder %v11378_v59, 0.7853982  ;;  %v3209_v2 = vmul.u32 %v3205_v21, %v3181_v30  ;;  %v3189_v0 = vshrl.u32 %v3185_v7, 16  ;;  %v3195_v19 = vadd.s32 %v3193_v31, %v3187_v18 }
 0x352   : > { %v3088_v56 = vshrl.u32 %v3070_v35, %v3086_v61  ;;  %v3091_v62 = vadd.s32 127, %v3090_v36  ;;  %v9899_v44 = vsel %vm9889_vm1, 0, %v3101_v10  ;;  %vm3196_vm11 = vc.u32 %v3194_v53, %v3190_v29 }
 0x353   : > { %v3212_v5 = vshll.u32 %v3208_v28, 16  ;;  %v3197_v47 = vsel %vm3196_vm11, 1, %v11302_v9  ;;  %v1121_v50 = vmul.f32 %v1120_v45, %v11357_v20  ;;  %v3211_v57 = vshrl.u32 %v3207_v4, 16 }
 0x354   : > { %v3089_v6 = vor.u32 %v3088_v56, %v3087_v51  ;;  %v3092_v41 = vshll.u32 %v3091_v62, 23  ;;  %v3199_v26 = vadd.s32 %v3197_v47, %v3195_v19  ;;  %vm3214_vm9 = vc.u32 %v3206_v14, %v3210_v27  ;;  %v9903_v12 = vpop.eup %7219 }
 0x355   : > { %v3216_v34 = vadd.s32 %v3210_v27, %v3206_v14  ;;  %v3191_v51 = vshrl.u32 %v9868_v46, 16  ;;  %v3215_v30 = vsel %vm3214_vm9, 1, %v11302_v9  ;;  %vm1122_vm13 = vcmp.eq.f32.partialorder %v11357_v20, inf }
 0x356   : > { %v3093_v32 = vor.u32 4788187, %v3092_v41  ;;  %v3096_v35 = vcvt.s32.f32 %v3089_v6  ;;  %v3200_v7 = vadd.s32 %v3199_v26, %v3189_v0  ;;  %v3217_v21 = vadd.s32 %v3215_v30, %v3209_v2 }
 0x357   : > { %vm3218_vm3 = vc.u32 %v3216_v34, %v3212_v5  ;;  %vm1124_vm5 = vcmp.eq.f32.partialorder %v11357_v20, 0.0  ;;  %v1123_v4 = vsel %vm1122_vm13, %v11357_v20, %v1121_v50  ;;  %v1125_v10 = vand.u32 2147483648, %v11357_v20 }
 0x358   : > { %v3094_v61 = vand.u32 2147483647, %v3093_v32  ;;  %v3219_v45 = vsel %vm3218_vm3, 1, %v11302_v9  ;;  %v6413_v18 = vmul.f32 %v9903_v12, %v9874_v22  ;;  %v3213_v46 = vshrl.u32 %v3208_v28, 16  ;;  %v11381_v32 = vld [vmem:[#allocation9_spill] sm:$0xff] }
 0x359   : > { %v3221_v29 = vadd.s32 %v3219_v45, %v3217_v21  ;;  %v1204_v53 = vmul.f32 %v9477_v13, %v1203_v37  ;;  %v9917_v62 = vadd.s32 %v3200_v7, %v3191_v51  ;;  %v9919_v31 = vadd.s32 %v3216_v34, %v3212_v5 }
 0x35a   : > { %v3097_v36 = vmul.f32 %v3096_v35, %v3094_v61  ;;  %v9921_v59 = vsel %vm1124_vm5, %v1125_v10, %v1123_v4  ;;  %v3224_v20 = vmul.u32 %v9836_v24, %v9895_v3  ;;  %vm1206_vm12 = vcmp.eq.f32.partialorder %v11358_v55, inf }
 0x35b   : > { %v3222_v14 = vadd.s32 %v3221_v29, %v3211_v57  ;;  %vm1230_vm8 = vcmp.lt.f32.partialorder %v9921_v59, 1e-06  ;;  %v1205_v58 = vmul.f32 %v1204_v53, %v11358_v55  ;;  %v3120_v24 = vadd.s32 3, %v9899_v44 }
 0x35c   : > { %v3098_v56 = vxor.u32 2147483648, %v3097_v36  ;;  %v9931_v13 = vsel %vm1230_vm8, 1.0, %v9921_v59  ;;  %v6414_v41 = vsub.f32 1.0, %v6413_v18  ;;  %v1209_v2 = vand.u32 2147483648, %v11358_v55 }
 0x35d   : > { %v3223_v3 = vadd.s32 %v3222_v14, %v3213_v46  ;;  %v9942_v27 = vmul.f32 0.5, %v9931_v13  ;;  %v1207_v19 = vsel %vm1206_vm12, %v11358_v55, %v1205_v58  ;;  %vm1208_vm10 = vcmp.eq.f32.partialorder %v11358_v55, 0.0 }
 0x35e   : > { %v3099_v28 = vsel %vm2978_vm6, %v3098_v56, %v3097_v36  ;;  %vm3226_vm6 = vc.u32 %v9917_v62, %v9919_v31  ;;  %v9954_v5 = vmul.f32 %v9882_v54, %v11377_v43  ;;  %7221 = vrsqrt.f32 %v11381_v32 }
 0x35f   : > { %v9938_v37 = vsel %vm9889_vm1, %v9526_v39, %v3099_v28  ;;  %v3227_v0 = vadd.s32 1, %v3223_v3  ;;  %v2359_v42 = vand.u32 2139095040, %v9942_v27  ;;  %v9957_v50 = vand.u32 3, %v3120_v24 }
 0x360   : > { %v3104_v6 = vmul.f32 %v9938_v37, %v9938_v37  ;;  %v11277_v57 = vand.u32 2147483647, %v9942_v27  ;;  %v9960_v7 = vsel %vm1208_vm10, %v1209_v2, %v1207_v19  ;;  %v9963_v55 = vand.u32 3, %v9899_v44 }
 0x361   : > { %v3228_v26 = vsel %vm3226_vm6, %v3227_v0, %v3223_v3  ;;  %v2360_v34 = vshrl.u32 %v2359_v42, 23  ;;  %v6415_v21 = vmul.f32 %v9903_v12, %v6414_v41  ;;  %v6423_v36 = vand.u32 2147483648, %v9874_v22 }
 0x362   : > { %v3105_v35 = vmul.f32 -0.001358992, %v3104_v6  ;;  %v3112_v47 = vmul.f32 -0.00019511016, %v3104_v6  ;;  %v3229_v30 = vadd.s32 %v3228_v26, %v3224_v20  ;;  %vm6417_vm14 = vweird.f32 %v9874_v22 }
 0x363   : > { %v6949_v45 = vadd.s32 4294967169, %v2360_v34  ;;  %vm3123_vm1 = vcmp.eq.s32.totalorder %v9957_v50, 0  ;;  %vm6418_vm11 = vweird.f32 %v9903_v12  ;;  %v2363_v46 = vand.u32 8388607, %v11277_v57 }
 0x364   : > { %v3106_v61 = vadd.f32 0.041655596, %v3105_v35  ;;  %v3113_v51 = vadd.f32 0.008332121, %v3112_v47  ;;  %v3230_v18 = vadd.s32 536870912, %v3229_v30  ;;  %v9973_v44 = vpop.eup %7221  ;;  %vm3122_vm13 = vcmp.lt.s32.totalorder %v9957_v50, 2  ;;  %vm9988_vm10 = vmor %vm6417_vm14, %vm6418_vm11 }
 0x365   : > { %v2366_v29 = vadd.s32 1, %v6949_v45  ;;  %vm11275_vm9 = vcmp.lt.f32.partialorder %v9960_v7, 1e-06  ;;  %vm3126_vm3 = vcmp.eq.s32.totalorder %v9957_v50, 2  ;;  %vm3119_vm5 = vweird.f32 %v9526_v39 }
 0x366   : > { %v3107_v4 = vmul.f32 %v3106_v61, %v3104_v6  ;;  %v3114_v10 = vmul.f32 %v3113_v51, %v3104_v6  ;;  %v3231_v14 = vshrl.u32 %v3230_v18, 30  ;;  %v6416_v20 = vadd.f32 %v9903_v12, %v6415_v21 }
 0x367   : > { %v6421_v28 = vand.u32 2147483647, %v9874_v22  ;;  %vm3133_vm12 = vcmp.lt.s32.totalorder %v9617_v23, 0  ;;  %v9982_v58 = vadd.f32 1e-08, %v9599_v52  ;;  %vm2367_vm6 = vcmp.gt.s32.totalorder %v2366_v29, 0 }
 0x368   : > { %v3108_v53 = vadd.f32 -0.4999988, %v3107_v4  ;;  %v3115_v56 = vadd.f32 -0.16666654, %v3114_v10  ;;  %v3232_v2 = vshll.u32 %v3231_v14, 30  ;;  %v9995_v0 = vsel %vm11275_vm9, 1.0, %v9960_v7 }
 0x369   : > { %vm5594_vm15 = vcmp.eq.s32.totalorder %v9963_v55, 2  ;;  %v6424_v52 = vor.u32 1.1754944e-38, %v6423_v36  ;;  %7223 = vrcp.f32 %v9982_v58  ;;  %v11384_v22 = vand.u32 2147483647, %v9617_v23 }
 0x36a   : > { %v3109_v24 = vmul.f32 %v3108_v53, %v3104_v6  ;;  %v3116_v3 = vmul.f32 %v3115_v56, %v3104_v6  ;;  %v2364_v6 = vor.u32 8388608, %v2363_v46  ;;  %v3233_v47 = vsub.s32 %v3229_v30, %v3232_v2 }
 0x36b   : > { %vm10001_vm14 = vcmp.le.f32.partialorder %v11384_v22, 0.7853982  ;;  %v2368_v26 = vsel %vm2367_vm6, %v2366_v29, 0  ;;  %v6420_v34 = vsel %vm9988_vm10, %v9903_v12, %v6416_v20  ;;  %vm10008_vm11 = vcmp.eq.f32.partialorder %v6421_v28, 8.507059e+37 }
 0x36c   : > { %v3110_v42 = vadd.f32 1.0, %v3109_v24  ;;  %v3117_v19 = vadd.f32 1.0, %v3116_v3  ;;  %v3255_v51 = vsub.s32 4, %v3231_v14  ;;  %v10013_v21 = vmul.f32 0.5, %v9995_v0 }
 0x36d   : > { %vm3234_vm7 = vcmp.lt.s32.totalorder %v3233_v47, 0  ;;  %v3235_v4 = vsub.s32 0, %v3233_v47  ;;  %vm5590_vm9 = vcmp.lt.s32.totalorder %v9963_v55, 2  ;;  %vm5591_vm6 = vcmp.eq.s32.totalorder %v9963_v55, 0 }
 0x36e   : > { %v3118_v36 = vmul.f32 %v3117_v19, %v9938_v37  ;;  %v3127_v45 = vxor.u32 2147483648, %v3110_v42  ;;  %v10018_v30 = vand.u32 31, %v2368_v26  ;;  %v10020_v12 = vshll.u32 %v2364_v6, 8 }
 0x36f   : > { %v3236_v29 = vsel %vm3234_vm7, %v3235_v4, %v3233_v47  ;;  %v10026_v37 = vpop.eup %7223  ;;  %v6425_v53 = vsel %vm10008_vm11, %v6424_v52, %v6420_v34  ;;  %v3225_v56 = vadd.s32 %v9919_v31, %v9917_v62  ;;  %v3444_v28 = vand.u32 2139095040, %v10013_v21 }
 0x370   : > { %v3124_v10 = vxor.u32 2147483648, %v3118_v36  ;;  %v3128_v18 = vsel %vm3126_vm3, %v3127_v45, %v3118_v36  ;;  %v5596_v46 = vsel %vm5594_vm15, %v3127_v45, %v3118_v36  ;;  %v3237_v20 = vclz %v3236_v29 }
 0x371   : > { %v3256_v41 = vsel %vm3133_vm12, %v3255_v51, %v3231_v14  ;;  %v6428_v2 = vmul.f32 %v10026_v37, %v9982_v58  ;;  %v11276_v31 = vand.u32 2147483647, %v10013_v21  ;;  %v2371_v14 = vsub.s32 32, %v10018_v30 }
 0x372   : > { %v3125_v24 = vsel %vm3123_vm1, %v3110_v42, %v3124_v10  ;;  %v5593_v3 = vsel %vm5591_vm6, %v3110_v42, %v3124_v10  ;;  %v6965_v62 = vadd.s32 4294967294, %v3237_v20  ;;  %v10052_v22 = vand.u32 65535, %v10020_v12 }
 0x373   : > { %v3129_v6 = vsel %vm3122_vm13, %v3125_v24, %v3128_v18  ;;  %v5597_v52 = vsel %vm5590_vm9, %v5593_v3, %v5596_v46  ;;  %v3258_v55 = vsel %vm10001_vm14, 0, %v3256_v41  ;;  %v6429_v34 = vsub.f32 1.0, %v6428_v2  ;;  %v7258_v46 = vld [vmem:[%s7461_s23 + $0x58] sm:$0xff] }
 0x374   : > { %v3130_v19 = vsel %vm3119_vm5, nan, %v3129_v6  ;;  %v10048_v42 = vsel %vm3119_vm5, nan, %v5597_v52  ;;  %vm6966_vm7 = vcmp.lt.s32.totalorder %v6965_v62, 0  ;;  %v2373_v51 = vshll.u32 %v11308_v17, %v10018_v30 }
 0x375   : > { %v6426_v50 = vmul.f32 %v6425_v53, %v3130_v19  ;;  %v3240_v61 = vsel %vm6966_vm7, 0, %v6965_v62  ;;  %v2376_v39 = vshll.u32 %v11305_v49, %v10018_v30  ;;  %v3445_v36 = vshrl.u32 %v3444_v28, 23 }
 0x376   : > { %v3241_v4 = vsub.s32 32, %v3240_v61  ;;  %v3242_v10 = vshll.u32 %v3233_v47, %v3240_v61  ;;  %v3245_v18 = vsub.s32 4294967266, %v3240_v61  ;;  %v3275_v53 = vadd.s32 3, %v3258_v55 }
 0x377   : > { %v6498_v45 = vsel %vm1234_vm4, 0.5, %v6426_v50  ;;  %v2374_v20 = vshrl.u32 %v11305_v49, %v2371_v14  ;;  %v2377_v24 = vshrl.u32 %v11306_v16, %v2371_v14  ;;  %v6430_v2 = vmul.f32 %v10026_v37, %v6429_v34 }
 0x378   : > { %v6514_v29 = vmul.f32 %v7258_v46, %v6498_v45  ;;  %v3243_v3 = vshrl.u32 %v3225_v56, %v3241_v4  ;;  %v3246_v41 = vadd.s32 127, %v3245_v18  ;;  %v10067_v6 = vshrl.u32 %v10020_v12, 16 }
 0x379   : > { %v10070_v28 = vshrl.u32 %v2368_v26, 5  ;;  %v2379_v47 = vshll.u32 %v11306_v16, %v10018_v30  ;;  %v6970_v52 = vadd.s32 4294967169, %v3445_v36  ;;  %v10076_v62 = vand.u32 8388607, %v11276_v31 }
 0x37a   : > { %6654 = vrot.lane.b32.xlu1 %v6514_v29, %s7340_s16  ;;  %v3244_v19 = vor.u32 %v3243_v3, %v3242_v10  ;;  %v3247_v56 = vshll.u32 %v3246_v41, 23  ;;  %v2372_v50 = vshrl.u32 %v11308_v17, %v2371_v14  ;;  %v2380_v34 = vshrl.u32 %v11318_v38, %v2371_v14 }
 0x37b   : > { %v10080_v61 = vand.u32 3, %v3275_v53  ;;  %v10082_v45 = vand.u32 3, %v3258_v55  ;;  %v2375_v26 = vor.u32 %v2374_v20, %v2373_v51  ;;  %v2378_v4 = vor.u32 %v2377_v24, %v2376_v39 }
 0x37c   : > { %v3248_v18 = vor.u32 4788187, %v3247_v56  ;;  %v3251_v46 = vcvt.s32.f32 %v3244_v19  ;;  %v10085_v36 = vadd.f32 %v10026_v37, %v6430_v2  ;;  %v2382_v29 = vshll.u32 %v11318_v38, %v10018_v30  ;;  %v6566_v2 = vpop.permute.xlu1 %6565  ;;  %v6564_v56 = vpop.permute.xlu2 %6563 }
 0x37d   : > { %vm6432_vm15 = vweird.f32 %v9982_v58  ;;  %v2383_v10 = vshrl.u32 %v11307_v25, %v2371_v14  ;;  %v2385_v53 = vshll.u32 %v11307_v25, %v10018_v30  ;;  %v2386_v55 = vshrl.u32 %v11309_v33, %v2371_v14  ;;  %v746_v30 = vpop.f32.mrf.mxu2 }
 0x37e   : > { %v3249_v3 = vand.u32 2147483647, %v3248_v18  ;;  %vm6433_vm1 = vweird.f32 %v10026_v37  ;;  %v2381_v51 = vor.u32 %v2380_v34, %v2379_v47  ;;  %vm2388_vm9 = vcmp.lt.s32.totalorder %v10070_v28, 1  ;;  %v6550_v34 = vpop.permute.xlu0 %6549 }
 0x37f   : > { %v2384_v39 = vor.u32 %v2383_v10, %v2382_v29  ;;  %v2387_v20 = vor.u32 %v2386_v55, %v2385_v53  ;;  %vm2390_vm13 = vcmp.lt.s32.totalorder %v10070_v28, 3  ;;  %vm2391_vm3 = vcmp.lt.s32.totalorder %v10070_v28, 4  ;;  %vm10114_vm11 = vmor %vm6432_vm15, %vm6433_vm1 }
 0x380   : > { %v3252_v24 = vmul.f32 %v3251_v46, %v3249_v3  ;;  %v6436_v41 = vand.u32 2147483647, %v9982_v58  ;;  %vm2389_vm5 = vcmp.lt.s32.totalorder %v10070_v28, 2  ;;  %v2393_v14 = vsel %vm2391_vm3, %v2381_v51, 2102212464 }
 0x381   : > { %v6438_v47 = vand.u32 2147483648, %v9982_v58  ;;  %v747_v19 = vadd.f32 %v9708_v60, %v746_v30  ;;  %vm11389_vm10 = vcmask 23552   ;;  %v2396_v18 = vsel %vm2388_vm9, %v2375_v26, %v2378_v4 }
 0x382   : > { %6598 = vst.msk [vmem:[%s8105_s14 + $0x78] sm:$0xff] %vm11389_vm10, %v6566_v2  ;;  %v2397_v46 = vsel %vm2391_vm3, %v2384_v39, 920167782  ;;  %v3253_v29 = vxor.u32 2147483648, %v3252_v24  ;;  %vm11392_vm6 = vmmov %vm11389_vm10  ;;  %v2392_v60 = vsel %vm2388_vm9, %v2372_v50, %v2375_v26  ;;  %v2400_v55 = vsel %vm2388_vm9, %v2378_v4, %v2381_v51 }
 0x383   : > { %6597 = vst.msk [vmem:[%s8105_s14 + $0x70] sm:$0xff] %vm11392_vm6, %v6564_v56  ;;  %v2398_v53 = vsel %vm2390_vm13, %v2381_v51, %v2397_v46  ;;  %7225 = vtanh.f32 %v747_v19  ;;  %vm11393_vm7 = vmmov %vm11392_vm6  ;;  %v2394_v58 = vsel %vm2390_vm13, %v2378_v4, %v2393_v14  ;;  %v2401_v30 = vsel %vm2391_vm3, %v2387_v20, 1326507024 }
 0x384   : > { %6590 = vst.msk [vmem:[%s8105_s14 + $0x38] sm:$0xff] %vm11393_vm7, %v6550_v34  ;;  %v2399_v3 = vsel %vm2389_vm5, %v2396_v18, %v2398_v53  ;;  %v3254_v50 = vsel %vm3133_vm12, %v3253_v29, %v3252_v24  ;;  %v2402_v26 = vsel %vm2390_vm13, %v2384_v39, %v2401_v30  ;;  %v3451_v14 = vadd.s32 1, %v6970_v52 }
 0x385   : > { %v2429_v2 = vand.u32 65535, %v2399_v3  ;;  %v2430_v51 = vshrl.u32 %v2399_v3, 16  ;;  %v10141_v19 = vsel %vm10001_vm14, %v9617_v23, %v3254_v50  ;;  %v2403_v20 = vsel %vm2389_vm5, %v2400_v55, %v2402_v26 }
 0x386   : > { %v3259_v24 = vmul.f32 %v10141_v19, %v10141_v19  ;;  %v6439_v39 = vor.u32 1.1754944e-38, %v6438_v47  ;;  %v2407_v56 = vand.u32 65535, %v2403_v20  ;;  %v2408_v34 = vshrl.u32 %v2403_v20, 16 }
 0x387   : > { %v10153_v35 = vsel %vm2389_vm5, %v2392_v60, %v2394_v58  ;;  %v2431_v18 = vmul.u32 %v2429_v2, %v10052_v22  ;;  %v10157_v46 = vmul.u32 %v2430_v51, %v10052_v22  ;;  %v10160_v29 = vmul.u32 %v2429_v2, %v10067_v6 }
 0x388   : > { %v3260_v53 = vmul.f32 -0.001358992, %v3259_v24  ;;  %v3267_v52 = vmul.f32 -0.00019511016, %v3259_v24  ;;  %vm10162_vm12 = vcmp.eq.f32.partialorder %v6436_v41, 8.507059e+37  ;;  %v2409_v47 = vmul.u32 %v2407_v56, %v10052_v22 }
 0x389   : > { %v2410_v28 = vmul.u32 %v2408_v34, %v10052_v22  ;;  %v7226_v60 = vpop.eup %7225  ;;  %v2411_v58 = vmul.u32 %v2407_v56, %v10067_v6  ;;  %v2434_v3 = vmul.u32 %v2430_v51, %v10067_v6  ;;  %v2435_v30 = vshll.u32 %v10157_v46, 16 }
 0x38a   : > { %vm3452_vm14 = vcmp.gt.s32.totalorder %v3451_v14, 0  ;;  %v3261_v50 = vadd.f32 0.041655596, %v3260_v53  ;;  %v3268_v26 = vadd.f32 0.008332121, %v3267_v52  ;;  %v2412_v2 = vmul.u32 %v2408_v34, %v10067_v6  ;;  %6923 = vmatmul.msk.f32.gmra.mxu3 %vm506_vm2, %v7226_v60 }
 0x38b   : > { %v2413_v41 = vshll.u32 %v2410_v28, 16  ;;  %vm3281_vm15 = vcmp.eq.s32.totalorder %v10080_v61, 2  ;;  %v2414_v20 = vshrl.u32 %v2410_v28, 16  ;;  %v2415_v31 = vshll.u32 %v2411_v58, 16 }
 0x38c   : > { %v2436_v22 = vshrl.u32 %v10157_v46, 16  ;;  %v2437_v56 = vshll.u32 %v10160_v29, 16  ;;  %v3262_v57 = vmul.f32 %v3261_v50, %v3259_v24  ;;  %v3269_v51 = vmul.f32 %v3268_v26, %v3259_v24 }
 0x38d   : > { %vm2417_vm1 = vc.u32 %v2409_v47, %v2413_v41  ;;  %v2419_v4 = vadd.s32 %v2413_v41, %v2409_v47  ;;  %vm3278_vm9 = vcmp.eq.s32.totalorder %v10080_v61, 0  ;;  %vm5745_vm13 = vcmp.eq.s32.totalorder %v10082_v45, 0 }
 0x38e   : > { %v2418_v6 = vsel %vm2417_vm1, 1, %v11302_v9  ;;  %vm2439_vm3 = vc.u32 %v2431_v18, %v2435_v30  ;;  %v2441_v34 = vadd.s32 %v2435_v30, %v2431_v18  ;;  %v3453_v53 = vsel %vm3452_vm14, %v3451_v14, 0 }
 0x38f   : > { %v3263_v52 = vadd.f32 -0.4999988, %v3262_v57  ;;  %v3270_v28 = vadd.f32 -0.16666654, %v3269_v51  ;;  %vm3277_vm5 = vcmp.lt.s32.totalorder %v10080_v61, 2  ;;  %vm5744_vm10 = vcmp.lt.s32.totalorder %v10082_v45, 2 }
 0x390   : > { %v2420_v46 = vadd.s32 %v2418_v6, %v2412_v2  ;;  %vm2421_vm6 = vc.u32 %v2419_v4, %v2415_v31  ;;  %vm3274_vm7 = vweird.f32 %v9617_v23  ;;  %v2416_v47 = vshrl.u32 %v2411_v58, 16 }
 0x391   : > { %v2422_v60 = vsel %vm2421_vm6, 1, %v11302_v9  ;;  %v2440_v50 = vsel %vm2439_vm3, 1, %v11302_v9  ;;  %vm2443_vm1 = vc.u32 %v2441_v34, %v2437_v56  ;;  %v3264_v26 = vmul.f32 %v3263_v52, %v3259_v24 }
 0x392   : > { %v3271_v18 = vmul.f32 %v3270_v28, %v3259_v24  ;;  %v2424_v30 = vadd.s32 %v2422_v60, %v2420_v46  ;;  %v2442_v14 = vadd.s32 %v2440_v50, %v2434_v3  ;;  %vm5748_vm14 = vcmp.eq.s32.totalorder %v10082_v45, 2 }
 0x393   : > { %v2438_v57 = vshrl.u32 %v10160_v29, 16  ;;  %v2444_v41 = vsel %vm2443_vm1, 1, %v11302_v9  ;;  %v3455_v2 = vand.u32 31, %v3453_v53  ;;  %v3265_v31 = vadd.f32 1.0, %v3264_v26 }
 0x394   : > { %v3272_v4 = vadd.f32 1.0, %v3271_v18  ;;  %v2425_v51 = vadd.s32 %v2424_v30, %v2414_v20  ;;  %v2446_v58 = vadd.s32 %v2444_v41, %v2442_v14  ;;  %v11396_v6 = vsel %vm10114_vm11, %v10026_v37, %v10085_v36 }
 0x395   : > { %v6440_v24 = vsel %vm10162_vm12, %v6439_v39, %v11396_v6  ;;  %v10195_v3 = vadd.s32 %v2441_v34, %v2437_v56  ;;  %v2449_v29 = vmul.u32 %v10020_v12, %v10153_v35  ;;  %v10199_v52 = vsub.s32 32, %v3455_v2 }
 0x396   : > { %v3273_v28 = vmul.f32 %v3272_v4, %v10141_v19  ;;  %v3282_v46 = vxor.u32 2147483648, %v3265_v31  ;;  %v10202_v20 = vadd.s32 %v2425_v51, %v2416_v47  ;;  %v2447_v60 = vadd.s32 %v2446_v58, %v2436_v22 }
 0x397   : > { %v3449_v10 = vor.u32 8388608, %v10076_v62  ;;  %v10205_v50 = vshrl.u32 %v3453_v53, 5  ;;  %v3458_v37 = vshll.u32 %v11308_v17, %v3455_v2  ;;  %v3461_v36 = vshll.u32 %v11305_v49, %v3455_v2 }
 0x398   : > { %v3279_v39 = vxor.u32 2147483648, %v3273_v28  ;;  %v3283_v12 = vsel %vm3281_vm15, %v3282_v46, %v3273_v28  ;;  %v5750_v35 = vsel %vm5748_vm14, %v3282_v46, %v3273_v28  ;;  %v2448_v19 = vadd.s32 %v2447_v60, %v2438_v57 }
 0x399   : > { %vm2451_vm11 = vc.u32 %v10202_v20, %v10195_v3  ;;  %v3459_v62 = vshrl.u32 %v11305_v49, %v10199_v52  ;;  %v3462_v55 = vshrl.u32 %v11306_v16, %v10199_v52  ;;  %v3464_v22 = vshll.u32 %v11306_v16, %v3455_v2 }
 0x39a   : > { %v3280_v56 = vsel %vm3278_vm9, %v3265_v31, %v3279_v39  ;;  %v5747_v34 = vsel %vm5745_vm13, %v3265_v31, %v3279_v39  ;;  %v2452_v53 = vadd.s32 1, %v2448_v19  ;;  %v3465_v47 = vshrl.u32 %v11318_v38, %v10199_v52 }
 0x39b   : > { %v3284_v26 = vsel %vm3277_vm5, %v3280_v56, %v3283_v12  ;;  %v5751_v18 = vsel %vm5744_vm10, %v5747_v34, %v5750_v35  ;;  %v3467_v30 = vshll.u32 %v11318_v38, %v3455_v2  ;;  %v3468_v14 = vshrl.u32 %v11307_v25, %v10199_v52 }
 0x39c   : > { %v3285_v57 = vsel %vm3274_vm7, nan, %v3284_v26  ;;  %v10237_v41 = vsel %vm3274_vm7, nan, %v5751_v18  ;;  %v2453_v31 = vsel %vm2451_vm11, %v2452_v53, %v2448_v19  ;;  %v3470_v61 = vshll.u32 %v11307_v25, %v3455_v2 }
 0x39d   : > { %v6441_v4 = vmul.f32 %v6440_v24, %v3285_v57  ;;  %v2454_v51 = vadd.s32 %v2453_v31, %v2449_v29  ;;  %v10240_v45 = vor.u32 %v3459_v62, %v3458_v37  ;;  %v10242_v58 = vor.u32 %v3462_v55, %v3461_v36  ;;  %v7259_v24 = vld [vmem:[%s7461_s23 + $0x60] sm:$0xff] }
 0x39e   : > { %v3466_v6 = vor.u32 %v3465_v47, %v3464_v22  ;;  %v3469_v28 = vor.u32 %v3468_v14, %v3467_v30  ;;  %v3471_v46 = vshrl.u32 %v11309_v33, %v10199_v52  ;;  %vm3473_vm12 = vcmp.lt.s32.totalorder %v10205_v50, 1 }
 0x39f   : > { %v1152_v23 = vmul.f32 %v9973_v44, %v11381_v32  ;;  %v6499_v60 = vsel %vm1235_vm0, 0.5, %v6441_v4  ;;  %v2455_v2 = vadd.s32 536870912, %v2454_v51  ;;  %vm3475_vm15 = vcmp.lt.s32.totalorder %v10205_v50, 3 }
 0x3a0   : > { %v6515_v29 = vmul.f32 %v7259_v24, %v6499_v60  ;;  %v3472_v37 = vor.u32 %v3471_v46, %v3470_v61  ;;  %vm3474_vm9 = vcmp.lt.s32.totalorder %v10205_v50, 2  ;;  %vm3476_vm13 = vcmp.lt.s32.totalorder %v10205_v50, 4 }
 0x3a1   : > { %v2456_v36 = vshrl.u32 %v2455_v2, 30  ;;  %v3481_v39 = vsel %vm3473_vm12, %v10240_v45, %v10242_v58  ;;  %v3482_v12 = vsel %vm3476_vm13, %v3469_v28, 920167782  ;;  %v10261_v35 = vshll.u32 %v3449_v10, 8 }
 0x3a2   : > { %6656 = vrot.lane.b32.xlu0 %v6515_v29, %s7340_s16  ;;  %v3483_v19 = vsel %vm3475_vm15, %v3466_v6, %v3482_v12  ;;  %v3485_v22 = vsel %vm3473_vm12, %v10242_v58, %v3466_v6  ;;  %v1213_v56 = vmul.f32 %v9882_v54, %v9954_v5  ;;  %v1153_v34 = vmul.f32 %v9973_v44, %v1152_v23 }
 0x3a3   : > { %v2457_v62 = vshll.u32 %v2456_v36, 30  ;;  %v3484_v55 = vsel %vm3474_vm9, %v3481_v39, %v3483_v19  ;;  %v3486_v10 = vsel %vm3476_vm13, %v3472_v37, 1326507024  ;;  %v3490_v26 = vand.u32 65535, %v10261_v35 }
 0x3a4   : > { %v3487_v47 = vsel %vm3475_vm15, %v3469_v28, %v3486_v10  ;;  %v10280_v18 = vadd.f32 1e-08, %v9931_v13  ;;  %v3515_v14 = vshrl.u32 %v3484_v55, 16  ;;  %v1214_v61 = vmul.f32 0.5, %v1213_v56 }
 0x3a5   : > { %v2458_v53 = vsub.s32 %v2454_v51, %v2457_v62  ;;  %v3488_v30 = vsel %vm3474_vm9, %v3485_v22, %v3487_v47  ;;  %v10284_v4 = vmul.f32 0.5, %v1153_v34  ;;  %v3491_v46 = vshrl.u32 %v10261_v35, 16 }
 0x3a6   : > { %v3492_v57 = vand.u32 65535, %v3488_v30  ;;  %v3493_v31 = vshrl.u32 %v3488_v30, 16  ;;  %v3514_v2 = vand.u32 65535, %v3484_v55  ;;  %v10287_v13 = vmul.u32 %v3515_v14, %v3490_v26 }
 0x3a7   : > { %vm2459_vm3 = vcmp.lt.s32.totalorder %v2458_v53, 0  ;;  %v2460_v5 = vsub.s32 0, %v2458_v53  ;;  %v2480_v24 = vsub.s32 4, %v2456_v36  ;;  %7227 = vrcp.f32 %v10280_v18 }
 0x3a8   : > { %v3494_v28 = vmul.u32 %v3492_v57, %v3490_v26  ;;  %v3495_v23 = vmul.u32 %v3493_v31, %v3490_v26  ;;  %v1215_v37 = vsub.f32 1.5, %v1214_v61  ;;  %v1155_v39 = vsub.f32 1.5, %v10284_v4 }
 0x3a9   : > { %v2461_v51 = vsel %vm2459_vm3, %v2460_v5, %v2458_v53  ;;  %v11397_v12 = vand.u32 2147483647, %v9942_v27  ;;  %vm2358_vm10 = vcmp.lt.s32.totalorder %v9942_v27, 0  ;;  %v3457_v55 = vshrl.u32 %v11308_v17, %v10199_v52 }
 0x3aa   : > { %v2462_v60 = vclz %v2461_v51  ;;  %v3498_v29 = vshll.u32 %v3495_v23, 16  ;;  %v3496_v22 = vmul.u32 %v3492_v57, %v3491_v46  ;;  %v2450_v56 = vadd.s32 %v10195_v3, %v10202_v20 }
 0x3ab   : > { %vm10293_vm5 = vcmp.le.f32.partialorder %v11397_v12, 0.7853982  ;;  %v3516_v34 = vmul.u32 %v3514_v2, %v3490_v26  ;;  %v3520_v10 = vshll.u32 %v10287_v13, 16  ;;  %v2481_v30 = vsel %vm2358_vm10, %v2480_v24, %v2456_v36 }
 0x3ac   : > { %v6950_v62 = vadd.s32 4294967294, %v2462_v60  ;;  %vm3502_vm6 = vc.u32 %v3494_v28, %v3498_v29  ;;  %v3478_v5 = vsel %vm3476_vm13, %v3466_v6, 2102212464  ;;  %v3497_v61 = vmul.u32 %v3493_v31, %v3491_v46 }
 0x3ad   : > { %v3503_v57 = vsel %vm3502_vm6, 1, %v11302_v9  ;;  %v10308_v60 = vpop.eup %7227  ;;  %v3477_v3 = vsel %vm3473_vm12, %v3457_v55, %v10240_v45  ;;  %v3500_v20 = vshll.u32 %v3496_v22, 16  ;;  %v3504_v26 = vadd.s32 %v3498_v29, %v3494_v28 }
 0x3ae   : > { %vm6951_vm7 = vcmp.lt.s32.totalorder %v6950_v62, 0  ;;  %v3518_v12 = vmul.u32 %v3514_v2, %v3491_v46  ;;  %v3479_v6 = vsel %vm3475_vm15, %v10242_v58, %v3478_v5  ;;  %vm3524_vm1 = vc.u32 %v3516_v34, %v3520_v10 }
 0x3af   : > { %v2465_v47 = vsel %vm6951_vm7, 0, %v6950_v62  ;;  %v3505_v31 = vadd.s32 %v3503_v57, %v3497_v61  ;;  %v3519_v24 = vmul.u32 %v3515_v14, %v3491_v46  ;;  %v6353_v28 = vmul.f32 %v10308_v60, %v10280_v18 }
 0x3b0   : > { %v2466_v4 = vsub.s32 32, %v2465_v47  ;;  %v2467_v51 = vshll.u32 %v2458_v53, %v2465_v47  ;;  %v2470_v52 = vsub.s32 4294967266, %v2465_v47  ;;  %v10318_v53 = vsel %vm10293_vm5, 0, %v2481_v30 }
 0x3b1   : > { %v3521_v47 = vshrl.u32 %v10287_v13, 16  ;;  %v3499_v2 = vshrl.u32 %v3495_v23, 16  ;;  %v3501_v29 = vshrl.u32 %v3496_v22, 16  ;;  %vm3506_vm14 = vc.u32 %v3504_v26, %v3500_v20 }
 0x3b2   : > { %v2468_v62 = vshrl.u32 %v2450_v56, %v2466_v4  ;;  %v2471_v36 = vadd.s32 127, %v2470_v52  ;;  %v3522_v55 = vshll.u32 %v3518_v12, 16  ;;  %v3525_v58 = vsel %vm3524_vm1, 1, %v11302_v9 }
 0x3b3   : > { %v3507_v30 = vsel %vm3506_vm14, 1, %v11302_v9  ;;  %v3523_v4 = vshrl.u32 %v3518_v12, 16  ;;  %v3526_v14 = vadd.s32 %v3520_v10, %v3516_v34  ;;  %v3527_v46 = vadd.s32 %v3525_v58, %v3519_v24 }
 0x3b4   : > { %v2469_v40 = vor.u32 %v2468_v62, %v2467_v51  ;;  %v2472_v45 = vshll.u32 %v2471_v36, 23  ;;  %v3509_v61 = vadd.s32 %v3507_v30, %v3505_v31  ;;  %v1216_v13 = vmul.f32 %v9882_v54, %v1215_v37 }
 0x3b5   : > { %vm1218_vm11 = vcmp.eq.f32.partialorder %v11377_v43, inf  ;;  %vm1220_vm12 = vcmp.eq.f32.partialorder %v11377_v43, 0.0  ;;  %v1221_v23 = vand.u32 2147483648, %v11377_v43  ;;  %vm3528_vm15 = vc.u32 %v3526_v14, %v3522_v55 }
 0x3b6   : > { %v2473_v56 = vor.u32 4788187, %v2472_v45  ;;  %v2476_v5 = vcvt.s32.f32 %v2469_v40  ;;  %v3510_v22 = vadd.s32 %v3509_v61, %v3499_v2  ;;  %v10329_v52 = vadd.s32 %v3526_v14, %v3522_v55  ;;  %v11400_v14 = vld [vmem:[#allocation10_spill] sm:$0xff] }
 0x3b7   : > { %v1217_v40 = vmul.f32 %v1216_v13, %v11377_v43  ;;  %v3529_v20 = vsel %vm3528_vm15, 1, %v11302_v9  ;;  %v1156_v34 = vmul.f32 %v9973_v44, %v1155_v39  ;;  %vm1158_vm13 = vcmp.eq.f32.partialorder %v11381_v32, inf }
 0x3b8   : > { %v2474_v51 = vand.u32 2147483647, %v2473_v56  ;;  %v10335_v54 = vadd.s32 %v3510_v22, %v3501_v29  ;;  %v3531_v37 = vadd.s32 %v3529_v20, %v3527_v46  ;;  %vm1160_vm3 = vcmp.eq.f32.partialorder %v11381_v32, 0.0 }
 0x3b9   : > { %v1219_v10 = vsel %vm1218_vm11, %v11377_v43, %v1217_v40  ;;  %v1157_v62 = vmul.f32 %v1156_v34, %v11381_v32  ;;  %v1161_v36 = vand.u32 2147483648, %v11381_v32  ;;  %v2500_v31 = vadd.s32 3, %v10318_v53 }
 0x3ba   : > { %v2477_v57 = vmul.f32 %v2476_v5, %v2474_v51  ;;  %v10339_v12 = vsel %vm1220_vm12, %v1221_v23, %v1219_v10  ;;  %v3480_v44 = vsel %vm3474_vm9, %v3477_v3, %v3479_v6  ;;  %v3532_v39 = vadd.s32 %v3531_v37, %v3521_v47 }
 0x3bb   : > { %vm1238_vm6 = vcmp.lt.f32.partialorder %v10339_v12, 1e-06  ;;  %v6354_v24 = vsub.f32 1.0, %v6353_v28  ;;  %v1159_v2 = vsel %vm1158_vm13, %v11381_v32, %v1157_v62  ;;  %v3534_v29 = vmul.u32 %v10261_v35, %v3480_v44 }
 0x3bc   : > { %v2478_v26 = vxor.u32 2147483648, %v2477_v57  ;;  %v10352_v45 = vsel %vm1238_vm6, 1.0, %v10339_v12  ;;  %v3533_v3 = vadd.s32 %v3532_v39, %v3523_v4  ;;  %v10367_v47 = vsel %vm1160_vm3, %v1161_v36, %v1159_v2 }
 0x3bd   : > { %v10363_v6 = vmul.f32 0.5, %v10352_v45  ;;  %vm3536_vm9 = vc.u32 %v10335_v54, %v10329_v52  ;;  %v10376_v5 = vand.u32 3, %v2500_v31  ;;  %v6355_v30 = vmul.f32 %v10308_v60, %v6354_v24 }
 0x3be   : > { %v2479_v43 = vsel %vm2358_vm10, %v2478_v26, %v2477_v57  ;;  %vm11279_vm10 = vcmp.lt.f32.partialorder %v10367_v47, 1e-06  ;;  %v3537_v19 = vadd.s32 1, %v3533_v3  ;;  %7229 = vrsqrt.f32 %v11400_v14 }
 0x3bf   : > { %v10360_v50 = vsel %vm10293_vm5, %v9942_v27, %v2479_v43  ;;  %v3599_v55 = vand.u32 2139095040, %v10363_v6  ;;  %v10381_v32 = vsel %vm11279_vm10, 1.0, %v10367_v47  ;;  %v3596_v4 = vand.u32 2147483647, %v10363_v6 }
 0x3c0   : > { %v2484_v28 = vmul.f32 %v10360_v50, %v10360_v50  ;;  %v3538_v35 = vsel %vm3536_vm9, %v3537_v19, %v3533_v3  ;;  %vm6357_vm5 = vweird.f32 %v10280_v18  ;;  %vm6358_vm7 = vweird.f32 %v10308_v60 }
 0x3c1   : > { %v3600_v61 = vshrl.u32 %v3599_v55, 23  ;;  %v3539_v51 = vadd.s32 %v3538_v35, %v3534_v29  ;;  %v10389_v22 = vmul.f32 0.5, %v10381_v32  ;;  %v6363_v20 = vand.u32 2147483648, %v10280_v18  ;;  %vm10403_vm12 = vmor %vm6357_vm5, %vm6358_vm7 }
 0x3c2   : > { %v2485_v58 = vmul.f32 -0.001358992, %v2484_v28  ;;  %v2492_v56 = vmul.f32 -0.00019511016, %v2484_v28  ;;  %vm2503_vm1 = vcmp.eq.s32.totalorder %v10376_v5, 0  ;;  %v6356_v37 = vadd.f32 %v10308_v60, %v6355_v30 }
 0x3c3   : > { %v6973_v23 = vadd.s32 4294967169, %v3600_v61  ;;  %v3540_v34 = vadd.s32 536870912, %v3539_v51  ;;  %v6361_v10 = vand.u32 2147483647, %v10280_v18  ;;  %v3603_v26 = vand.u32 8388607, %v3596_v4 }
 0x3c4   : > { %v2486_v46 = vadd.f32 0.041655596, %v2485_v58  ;;  %v2493_v13 = vadd.f32 0.008332121, %v2492_v56  ;;  %vm2502_vm14 = vcmp.lt.s32.totalorder %v10376_v5, 2  ;;  %vm2506_vm11 = vcmp.eq.s32.totalorder %v10376_v5, 2  ;;  %v10414_v3 = vpop.eup %7229 }
 0x3c5   : > { %v3606_v62 = vadd.s32 1, %v6973_v23  ;;  %vm3443_vm15 = vcmp.lt.s32.totalorder %v10013_v21, 0  ;;  %v3541_v39 = vshrl.u32 %v3540_v34, 30  ;;  %vm2499_vm13 = vweird.f32 %v9942_v27 }
 0x3c6   : > { %v2487_v40 = vmul.f32 %v2486_v46, %v2484_v28  ;;  %v2494_v57 = vmul.f32 %v2493_v13, %v2484_v28  ;;  %v4973_v43 = vand.u32 3, %v10318_v53  ;;  %v10411_v24 = vadd.f32 1e-08, %v9995_v0 }
 0x3c7   : > { %vm3607_vm3 = vcmp.gt.s32.totalorder %v3606_v62, 0  ;;  %v2824_v2 = vand.u32 2139095040, %v10389_v22  ;;  %v6364_v19 = vor.u32 1.1754944e-38, %v6363_v20  ;;  %v3542_v55 = vshll.u32 %v3541_v39, 30 }
 0x3c8   : > { %v2488_v36 = vadd.f32 -0.4999988, %v2487_v40  ;;  %v2495_v31 = vadd.f32 -0.16666654, %v2494_v57  ;;  %v6360_v58 = vsel %vm10403_vm12, %v10308_v60, %v6356_v37  ;;  %7231 = vrcp.f32 %v10411_v24 }
 0x3c9   : > { %v3604_v56 = vor.u32 8388608, %v3603_v26  ;;  %v3608_v53 = vsel %vm3607_vm3, %v3606_v62, 0  ;;  %vm6362_vm9 = vcmp.eq.f32.partialorder %v6361_v10, 8.507059e+37  ;;  %v11403_v35 = vand.u32 2147483647, %v10013_v21 }
 0x3ca   : > { %v2489_v18 = vmul.f32 %v2488_v36, %v2484_v28  ;;  %v2496_v29 = vmul.f32 %v2495_v31, %v2484_v28  ;;  %v3543_v28 = vsub.s32 %v3539_v51, %v3542_v55  ;;  %vm4978_vm7 = vcmp.eq.s32.totalorder %v4973_v43, 2 }
 0x3cb   : > { %vm10422_vm5 = vcmp.le.f32.partialorder %v11403_v35, 0.7853982  ;;  %v3565_v46 = vsub.s32 4, %v3541_v39  ;;  %v10426_v13 = vand.u32 31, %v3608_v53  ;;  %v2825_v23 = vshrl.u32 %v2824_v2, 23 }
 0x3cc   : > { %v2490_v30 = vadd.f32 1.0, %v2489_v18  ;;  %v2497_v0 = vadd.f32 1.0, %v2496_v29  ;;  %vm3544_vm12 = vcmp.lt.s32.totalorder %v3543_v28, 0  ;;  %v3545_v57 = vsub.s32 0, %v3543_v28 }
 0x3cd   : > { %vm4974_vm3 = vcmp.lt.s32.totalorder %v4973_v43, 2  ;;  %vm4975_vm10 = vcmp.eq.s32.totalorder %v4973_v43, 0  ;;  %v6365_v20 = vsel %vm6362_vm9, %v6364_v19, %v6360_v58  ;;  %v10429_v34 = vshll.u32 %v3604_v56, 8 }
 0x3ce   : > { %v2498_v60 = vmul.f32 %v2497_v0, %v10360_v50  ;;  %v2507_v40 = vxor.u32 2147483648, %v2490_v30  ;;  %v3546_v26 = vsel %vm3544_vm12, %v3545_v57, %v3543_v28  ;;  %v10433_v62 = vpop.eup %7231  ;;  %v3535_v36 = vadd.s32 %v10329_v52, %v10335_v54 }
 0x3cf   : > { %v3547_v50 = vclz %v3546_v26  ;;  %v3566_v31 = vsel %vm3443_vm15, %v3565_v46, %v3541_v39  ;;  %v6958_v44 = vadd.s32 4294967169, %v2825_v23  ;;  %v6458_v29 = vmul.f32 %v10433_v62, %v10411_v24 }
 0x3d0   : > { %v2504_v37 = vxor.u32 2147483648, %v2498_v60  ;;  %v2508_v10 = vsel %vm2506_vm11, %v2507_v40, %v2498_v60  ;;  %v4980_v51 = vsel %vm4978_vm7, %v2507_v40, %v2498_v60  ;;  %v3611_v19 = vsub.s32 32, %v10426_v13 }
 0x3d1   : > { %v6971_v52 = vadd.s32 4294967294, %v3547_v50  ;;  %v10448_v54 = vand.u32 65535, %v10429_v34  ;;  %v10457_v0 = vshrl.u32 %v10429_v34, 16  ;;  %v3568_v43 = vsel %vm10422_vm5, 0, %v3566_v31 }
 0x3d2   : > { %v2505_v2 = vsel %vm2503_vm1, %v2490_v30, %v2504_v37  ;;  %v4977_v18 = vsel %vm4975_vm10, %v2490_v30, %v2504_v37  ;;  %v6459_v30 = vsub.f32 1.0, %v6458_v29  ;;  %v11280_v35 = vand.u32 2147483647, %v10389_v22 }
 0x3d3   : > { %v2509_v55 = vsel %vm2502_vm14, %v2505_v2, %v2508_v10  ;;  %v4981_v58 = vsel %vm4974_vm3, %v4977_v18, %v4980_v51  ;;  %vm6972_vm10 = vcmp.lt.s32.totalorder %v6971_v52, 0  ;;  %v3613_v23 = vshll.u32 %v11308_v17, %v10426_v13  ;;  %v7260_v10 = vld [vmem:[%s7461_s23 + $0x38] sm:$0xff] }
 0x3d4   : > { %v2510_v39 = vsel %vm2499_vm13, nan, %v2509_v55  ;;  %v10454_v56 = vsel %vm2499_vm13, nan, %v4981_v58  ;;  %v3550_v46 = vsel %vm6972_vm10, 0, %v6971_v52  ;;  %v3614_v27 = vshrl.u32 %v11305_v49, %v3611_v19 }
 0x3d5   : > { %v6366_v5 = vmul.f32 %v6365_v20, %v2510_v39  ;;  %v3616_v60 = vshll.u32 %v11305_v49, %v10426_v13  ;;  %v3551_v57 = vsub.s32 32, %v3550_v46  ;;  %v3552_v20 = vshll.u32 %v3543_v28, %v3550_v46 }
 0x3d6   : > { %v3555_v37 = vsub.s32 4294967266, %v3550_v46  ;;  %v3585_v26 = vadd.s32 3, %v3568_v43  ;;  %v6460_v50 = vmul.f32 %v10433_v62, %v6459_v30  ;;  %v3617_v31 = vshrl.u32 %v11306_v16, %v3611_v19 }
 0x3d7   : > { %v6494_v40 = vsel %vm1230_vm8, 0.5, %v6366_v5  ;;  %v3553_v2 = vshrl.u32 %v3535_v36, %v3551_v57  ;;  %v3609_v29 = vshrl.u32 %v3608_v53, 5  ;;  %v10472_v55 = vadd.s32 1, %v6958_v44 }
 0x3d8   : > { %v6510_v51 = vmul.f32 %v7260_v10, %v6494_v40  ;;  %v3556_v18 = vadd.s32 127, %v3555_v37  ;;  %v3612_v58 = vshrl.u32 %v11308_v17, %v3611_v19  ;;  %v3619_v28 = vshll.u32 %v11306_v16, %v10426_v13 }
 0x3d9   : > { %v3620_v52 = vshrl.u32 %v11318_v38, %v3611_v19  ;;  %v10481_v39 = vand.u32 8388607, %v11280_v35  ;;  %v3554_v30 = vor.u32 %v3553_v2, %v3552_v20  ;;  %vm6462_vm1 = vweird.f32 %v10411_v24 }
 0x3da   : > { %6646 = vrot.lane.b32.xlu2 %v6510_v51, %s7340_s16  ;;  %v3557_v5 = vshll.u32 %v3556_v18, 23  ;;  %vm6463_vm14 = vweird.f32 %v10433_v62  ;;  %v10485_v53 = vand.u32 3, %v3585_v26  ;;  %v6461_v36 = vadd.f32 %v10433_v62, %v6460_v50 }
 0x3db   : > { %v3615_v44 = vor.u32 %v3614_v27, %v3613_v23  ;;  %v3618_v46 = vor.u32 %v3617_v31, %v3616_v60  ;;  %v3561_v57 = vcvt.s32.f32 %v3554_v30  ;;  %v6468_v37 = vand.u32 2147483648, %v10411_v24  ;;  %vm10491_vm11 = vmor %vm6462_vm1, %vm6463_vm14 }
 0x3dc   : > { %v3558_v40 = vor.u32 4788187, %v3557_v5  ;;  %v3622_v10 = vshll.u32 %v11318_v38, %v10426_v13  ;;  %v3621_v51 = vor.u32 %v3620_v52, %v3619_v28  ;;  %v3623_v2 = vshrl.u32 %v11307_v25, %v3611_v19 }
 0x3dd   : > { %v3625_v26 = vshll.u32 %v11307_v25, %v10426_v13  ;;  %v3626_v23 = vshrl.u32 %v11309_v33, %v3611_v19  ;;  %v10499_v60 = vand.u32 3, %v3568_v43  ;;  %v6466_v50 = vand.u32 2147483647, %v10411_v24 }
 0x3de   : > { %v3559_v27 = vand.u32 2147483647, %v3558_v40  ;;  %vm3628_vm13 = vcmp.lt.s32.totalorder %v3609_v29, 1  ;;  %v3624_v31 = vor.u32 %v3623_v2, %v3622_v10  ;;  %vm3630_vm9 = vcmp.lt.s32.totalorder %v3609_v29, 3 }
 0x3df   : > { %v3627_v18 = vor.u32 %v3626_v23, %v3625_v26  ;;  %vm3631_vm7 = vcmp.lt.s32.totalorder %v3609_v29, 4  ;;  %v6465_v28 = vsel %vm10491_vm11, %v10433_v62, %v6461_v36  ;;  %vm3629_vm12 = vcmp.lt.s32.totalorder %v3609_v29, 2 }
 0x3e0   : > { %v3562_v30 = vmul.f32 %v3561_v57, %v3559_v27  ;;  %v3633_v52 = vsel %vm3631_vm7, %v3621_v51, 2102212464  ;;  %v6469_v13 = vor.u32 1.1754944e-38, %v6468_v37  ;;  %v3636_v19 = vsel %vm3628_vm13, %v3615_v44, %v3618_v46 }
 0x3e1   : > { %v3637_v5 = vsel %vm3631_vm7, %v3624_v31, 920167782  ;;  %v3640_v43 = vsel %vm3628_vm13, %v3618_v46, %v3621_v51  ;;  %vm6467_vm3 = vcmp.eq.f32.partialorder %v6466_v50, 8.507059e+37  ;;  %v3641_v10 = vsel %vm3631_vm7, %v3627_v18, 1326507024 }
 0x3e2   : > { %v3563_v40 = vxor.u32 2147483648, %v3562_v30  ;;  %v3638_v24 = vsel %vm3630_vm9, %v3621_v51, %v3637_v5  ;;  %v3632_v2 = vsel %vm3628_vm13, %v3612_v58, %v3615_v44  ;;  %v3634_v57 = vsel %vm3630_vm9, %v3618_v46, %v3633_v52 }
 0x3e3   : > { %v3639_v20 = vsel %vm3629_vm12, %v3636_v19, %v3638_v24  ;;  %v3642_v62 = vsel %vm3630_vm9, %v3624_v31, %v3641_v10  ;;  %v10520_v27 = vsel %vm6467_vm3, %v6469_v13, %v6465_v28  ;;  %v10525_v50 = vsel %vm3629_vm12, %v3632_v2, %v3634_v57 }
 0x3e4   : > { %v3564_v36 = vsel %vm3443_vm15, %v3563_v40, %v3562_v30  ;;  %v3643_v37 = vsel %vm3629_vm12, %v3640_v43, %v3642_v62  ;;  %v3669_v26 = vand.u32 65535, %v3639_v20  ;;  %v3670_v23 = vshrl.u32 %v3639_v20, 16 }
 0x3e5   : > { %v10518_v51 = vsel %vm10422_vm5, %v10013_v21, %v3564_v36  ;;  %v3647_v58 = vand.u32 65535, %v3643_v37  ;;  %v3648_v44 = vshrl.u32 %v3643_v37, 16  ;;  %vm2832_vm15 = vcmp.gt.s32.totalorder %v10472_v55, 0 }
 0x3e6   : > { %v3569_v46 = vmul.f32 %v10518_v51, %v10518_v51  ;;  %v3671_v31 = vmul.u32 %v3669_v26, %v10448_v54  ;;  %v3672_v18 = vmul.u32 %v3670_v23, %v10448_v54  ;;  %v3673_v28 = vmul.u32 %v3669_v26, %v10457_v0 }
 0x3e7   : > { %v3649_v30 = vmul.u32 %v3647_v58, %v10448_v54  ;;  %v3650_v61 = vmul.u32 %v3648_v44, %v10448_v54  ;;  %v3651_v52 = vmul.u32 %v3647_v58, %v10457_v0  ;;  %v3652_v29 = vmul.u32 %v3648_v44, %v10457_v0 }
 0x3e8   : > { %v3570_v13 = vmul.f32 -0.001358992, %v3569_v46  ;;  %v3577_v19 = vmul.f32 -0.00019511016, %v3569_v46  ;;  %v3675_v5 = vshll.u32 %v3672_v18, 16  ;;  %v3674_v24 = vmul.u32 %v3670_v23, %v10457_v0 }
 0x3e9   : > { %v3653_v43 = vshll.u32 %v3650_v61, 16  ;;  %v3655_v40 = vshll.u32 %v3651_v52, 16  ;;  %v3654_v57 = vshrl.u32 %v3650_v61, 16  ;;  %v3656_v20 = vshrl.u32 %v3651_v52, 16 }
 0x3ea   : > { %v3571_v10 = vadd.f32 0.041655596, %v3570_v13  ;;  %v3578_v2 = vadd.f32 0.008332121, %v3577_v19  ;;  %vm3591_vm5 = vcmp.eq.s32.totalorder %v10485_v53, 2  ;;  %vm6056_vm10 = vcmp.eq.s32.totalorder %v10499_v60, 2 }
 0x3eb   : > { %vm3657_vm1 = vc.u32 %v3649_v30, %v3653_v43  ;;  %v3659_v54 = vadd.s32 %v3653_v43, %v3649_v30  ;;  %v3677_v62 = vshll.u32 %v3673_v28, 16  ;;  %vm3679_vm14 = vc.u32 %v3671_v31, %v3675_v5 }
 0x3ec   : > { %v3572_v36 = vmul.f32 %v3571_v10, %v3569_v46  ;;  %v3579_v37 = vmul.f32 %v3578_v2, %v3569_v46  ;;  %v3658_v26 = vsel %vm3657_vm1, 1, %v11302_v9  ;;  %v3680_v58 = vsel %vm3679_vm14, 1, %v11302_v9 }
 0x3ed   : > { %vm3588_vm11 = vcmp.eq.s32.totalorder %v10485_v53, 0  ;;  %vm6053_vm13 = vcmp.eq.s32.totalorder %v10499_v60, 0  ;;  %v3660_v0 = vadd.s32 %v3658_v26, %v3652_v29  ;;  %vm3661_vm9 = vc.u32 %v3659_v54, %v3655_v40 }
 0x3ee   : > { %v3681_v23 = vadd.s32 %v3675_v5, %v3671_v31  ;;  %v3682_v44 = vadd.s32 %v3680_v58, %v3674_v24  ;;  %v3573_v61 = vadd.f32 -0.4999988, %v3572_v36  ;;  %v3580_v52 = vadd.f32 -0.16666654, %v3579_v37 }
 0x3ef   : > { %vm3587_vm7 = vcmp.lt.s32.totalorder %v10485_v53, 2  ;;  %vm6052_vm12 = vcmp.lt.s32.totalorder %v10499_v60, 2  ;;  %v3662_v30 = vsel %vm3661_vm9, 1, %v11302_v9  ;;  %v2833_v13 = vsel %vm2832_vm15, %v10472_v55, 0 }
 0x3f0   : > { %vm3584_vm3 = vweird.f32 %v10013_v21  ;;  %v3664_v19 = vadd.s32 %v3662_v30, %v3660_v0  ;;  %v3676_v43 = vshrl.u32 %v3672_v18, 16  ;;  %vm3683_vm1 = vc.u32 %v3681_v23, %v3677_v62 }
 0x3f1   : > { %v10549_v29 = vshrl.u32 %v2833_v13, 5  ;;  %v3574_v31 = vmul.f32 %v3573_v61, %v3569_v46  ;;  %v3581_v5 = vmul.f32 %v3580_v52, %v3569_v46  ;;  %v3684_v40 = vsel %vm3683_vm1, 1, %v11302_v9 }
 0x3f2   : > { %v2835_v24 = vand.u32 31, %v2833_v13  ;;  %v3665_v10 = vadd.s32 %v3664_v19, %v3654_v57  ;;  %v3678_v2 = vshrl.u32 %v3673_v28, 16  ;;  %v10552_v54 = vadd.s32 %v3681_v23, %v3677_v62 }
 0x3f3   : > { %v3686_v36 = vadd.s32 %v3684_v40, %v3682_v44  ;;  %v3575_v37 = vadd.f32 1.0, %v3574_v31  ;;  %v3582_v26 = vadd.f32 1.0, %v3581_v5  ;;  %v3689_v46 = vmul.u32 %v10429_v34, %v10525_v50 }
 0x3f4   : > { %v10554_v55 = vsub.s32 32, %v2835_v24  ;;  %v2838_v58 = vshll.u32 %v11308_v17, %v2835_v24  ;;  %v10557_v18 = vadd.s32 %v3665_v10, %v3656_v20  ;;  %v2841_v61 = vshll.u32 %v11305_v49, %v2835_v24 }
 0x3f5   : > { %v3687_v0 = vadd.s32 %v3686_v36, %v3676_v43  ;;  %v3583_v57 = vmul.f32 %v3582_v26, %v10518_v51  ;;  %v3592_v28 = vxor.u32 2147483648, %v3575_v37  ;;  %vm2853_vm15 = vcmp.lt.s32.totalorder %v10549_v29, 1 }
 0x3f6   : > { %v2839_v62 = vshrl.u32 %v11305_v49, %v10554_v55  ;;  %vm3691_vm14 = vc.u32 %v10557_v18, %v10552_v54  ;;  %v2842_v20 = vshrl.u32 %v11306_v16, %v10554_v55  ;;  %v2844_v44 = vshll.u32 %v11306_v16, %v2835_v24 }
 0x3f7   : > { %v3688_v23 = vadd.s32 %v3687_v0, %v3678_v2  ;;  %v3589_v34 = vxor.u32 2147483648, %v3583_v57  ;;  %v3593_v50 = vsel %vm3591_vm5, %v3592_v28, %v3583_v57  ;;  %v6058_v51 = vsel %vm6056_vm10, %v3592_v28, %v3583_v57 }
 0x3f8   : > { %v10575_v52 = vor.u32 %v2839_v62, %v2838_v58  ;;  %v10577_v13 = vor.u32 %v2842_v20, %v2841_v61  ;;  %v2845_v19 = vshrl.u32 %v11318_v38, %v10554_v55  ;;  %v2847_v43 = vshll.u32 %v11318_v38, %v2835_v24 }
 0x3f9   : > { %v3692_v30 = vadd.s32 1, %v3688_v23  ;;  %v3590_v31 = vsel %vm3588_vm11, %v3575_v37, %v3589_v34  ;;  %v6055_v5 = vsel %vm6053_vm13, %v3575_v37, %v3589_v34  ;;  %v2848_v40 = vshrl.u32 %v11307_v25, %v10554_v55 }
 0x3fa   : > { %v2850_v10 = vshll.u32 %v11307_v25, %v2835_v24  ;;  %v3594_v2 = vsel %vm3587_vm7, %v3590_v31, %v3593_v50  ;;  %v6059_v36 = vsel %vm6052_vm12, %v6055_v5, %v6058_v51  ;;  %v10596_v58 = vor.u32 %v2845_v19, %v2844_v44 }
 0x3fb   : > { %v3693_v26 = vsel %vm3691_vm14, %v3692_v30, %v3688_v23  ;;  %v3595_v37 = vsel %vm3584_vm3, nan, %v3594_v2  ;;  %v10602_v0 = vsel %vm3584_vm3, nan, %v6059_v36  ;;  %v2849_v53 = vor.u32 %v2848_v40, %v2847_v43  ;;  %v7261_v23 = vld [vmem:[%s7461_s23 + $0x70] sm:$0xff] }
 0x3fc   : > { %v3694_v24 = vadd.s32 %v3693_v26, %v3689_v46  ;;  %v6471_v61 = vmul.f32 %v10520_v27, %v3595_v37  ;;  %v2851_v60 = vshrl.u32 %v11309_v33, %v10554_v55  ;;  %vm2855_vm5 = vcmp.lt.s32.totalorder %v10549_v29, 3 }
 0x3fd   : > { %v2829_v28 = vor.u32 8388608, %v10481_v39  ;;  %vm2854_vm10 = vcmp.lt.s32.totalorder %v10549_v29, 2  ;;  %vm2856_vm11 = vcmp.lt.s32.totalorder %v10549_v29, 4  ;;  %vm11408_vm13 = vcmp.lt.f32.partialorder %v9960_v7, 1e-06 }
 0x3fe   : > { %v3695_v57 = vadd.s32 536870912, %v3694_v24  ;;  %v6501_v21 = vsel %vm11408_vm13, 0.5, %v6471_v61  ;;  %v2852_v62 = vor.u32 %v2851_v60, %v2850_v10  ;;  %v2861_v27 = vsel %vm2853_vm15, %v10575_v52, %v10577_v13 }
 0x3ff   : > { %v2862_v46 = vsel %vm2856_vm11, %v2849_v53, 920167782  ;;  %v6517_v20 = vmul.f32 %v7261_v23, %v6501_v21  ;;  %v2865_v34 = vsel %vm2853_vm15, %v10577_v13, %v10596_v58  ;;  %v10635_v19 = vshll.u32 %v2829_v28, 8 }
 0x400   : > { %v10620_v44 = vshrl.u32 %v3695_v57, 30  ;;  %v2863_v39 = vsel %vm2855_vm5, %v10596_v58, %v2862_v46  ;;  %v2866_v30 = vsel %vm2856_vm11, %v2852_v62, 1326507024  ;;  %v1188_v43 = vmul.f32 %v10414_v3, %v11400_v14 }
 0x401   : > { %6660 = vrot.lane.b32.xlu1 %v6517_v20, %s7340_s16  ;;  %v2864_v51 = vsel %vm2854_vm10, %v2861_v27, %v2863_v39  ;;  %v2867_v31 = vsel %vm2855_vm5, %v2849_v53, %v2866_v30  ;;  %v2870_v10 = vand.u32 65535, %v10635_v19  ;;  %v2871_v57 = vshrl.u32 %v10635_v19, 16 }
 0x402   : > { %v3697_v50 = vshll.u32 %v10620_v44, 30  ;;  %v2868_v40 = vsel %vm2854_vm10, %v2865_v34, %v2867_v31  ;;  %v2895_v2 = vshrl.u32 %v2864_v51, 16  ;;  %v1189_v61 = vmul.f32 %v10414_v3, %v1188_v43 }
 0x403   : > { %v2872_v26 = vand.u32 65535, %v2868_v40  ;;  %v2873_v37 = vshrl.u32 %v2868_v40, 16  ;;  %v2894_v53 = vand.u32 65535, %v2864_v51  ;;  %v3690_v39 = vadd.s32 %v10552_v54, %v10557_v18 }
 0x404   : > { %v3698_v5 = vsub.s32 %v3694_v24, %v3697_v50  ;;  %v10646_v24 = vmul.u32 %v2895_v2, %v2870_v10  ;;  %v1190_v23 = vmul.f32 0.5, %v1189_v61  ;;  %v2837_v43 = vshrl.u32 %v11308_v17, %v10554_v55 }
 0x405   : > { %v2874_v28 = vmul.u32 %v2872_v26, %v2870_v10  ;;  %v2875_v21 = vmul.u32 %v2873_v37, %v2870_v10  ;;  %v10648_v20 = vmul.u32 %v2872_v26, %v2871_v57  ;;  %v2896_v34 = vmul.u32 %v2894_v53, %v2870_v10 }
 0x406   : > { %vm3699_vm9 = vcmp.lt.s32.totalorder %v3698_v5, 0  ;;  %v3700_v36 = vsub.s32 0, %v3698_v5  ;;  %v2900_v50 = vshll.u32 %v10646_v24, 16  ;;  %v2877_v51 = vmul.u32 %v2873_v37, %v2871_v57 }
 0x407   : > { %v2878_v27 = vshll.u32 %v2875_v21, 16  ;;  %v1191_v26 = vsub.f32 1.5, %v1190_v23  ;;  %v2898_v35 = vmul.u32 %v2894_v53, %v2871_v57  ;;  %v10658_v10 = vadd.f32 1e-08, %v10352_v45 }
 0x408   : > { %v3701_v60 = vsel %vm3699_vm9, %v3700_v36, %v3698_v5  ;;  %vm2904_vm3 = vc.u32 %v2896_v34, %v2900_v50  ;;  %vm3598_vm1 = vcmp.lt.s32.totalorder %v10363_v6, 0  ;;  %v2857_v55 = vsel %vm2853_vm15, %v2837_v43, %v10575_v52 }
 0x409   : > { %v3702_v62 = vclz %v3701_v60  ;;  %vm2882_vm7 = vc.u32 %v2874_v28, %v2878_v27  ;;  %v2880_v60 = vshll.u32 %v10648_v20, 16  ;;  %v2899_v37 = vmul.u32 %v2895_v2, %v2871_v57 }
 0x40a   : > { %v2883_v61 = vsel %vm2882_vm7, 1, %v11302_v9  ;;  %vm10666_vm14 = vcmp.le.f32.partialorder %v3596_v4, 0.7853982  ;;  %v3720_v45 = vsub.s32 4, %v10620_v44  ;;  %v2879_v23 = vshrl.u32 %v2875_v21, 16 }
 0x40b   : > { %v6974_v46 = vadd.s32 4294967294, %v3702_v62  ;;  %v2884_v62 = vadd.s32 %v2878_v27, %v2874_v28  ;;  %v2858_v27 = vsel %vm2856_vm11, %v10596_v58, 2102212464  ;;  %v2905_v52 = vsel %vm2904_vm3, 1, %v11302_v9 }
 0x40c   : > { %7233 = vrcp.f32 %v10658_v10  ;;  %v3721_v58 = vsel %vm3598_vm1, %v3720_v45, %v10620_v44  ;;  %v2881_v21 = vshrl.u32 %v10648_v20, 16  ;;  %vm1194_vm11 = vcmp.eq.f32.partialorder %v11400_v14, inf  ;;  %v10693_v44 = vld [vmem:[%s11229_s6] ss:$0 sm:$0xff] }
 0x40d   : > { %vm6975_vm12 = vcmp.lt.s32.totalorder %v6974_v46, 0  ;;  %vm2886_vm13 = vc.u32 %v2884_v62, %v2880_v60  ;;  %v2901_v60 = vshrl.u32 %v10646_v24, 16  ;;  %v749_v62 = vpop.f32.mrf.mxu2  ;;  %v2903_v24 = vshrl.u32 %v2898_v35, 16 }
 0x40e   : > { %v3705_v30 = vsel %vm6975_vm12, 0, %v6974_v46  ;;  %v2887_v4 = vsel %vm2886_vm13, 1, %v11302_v9  ;;  %vm1196_vm9 = vcmp.eq.f32.partialorder %v11400_v14, 0.0  ;;  %vm11424_vm13 = vcmp.lt.f32.partialorder %v8439_v11, 1e-06  ;;  %v11428_v11 = vld [vmem:[#allocation19_spill] sm:$0xff] }
 0x40f   : > { %v3706_v31 = vsub.s32 32, %v3705_v30  ;;  %v3707_v40 = vshll.u32 %v3698_v5, %v3705_v30  ;;  %v3710_v36 = vsub.s32 4294967266, %v3705_v30  ;;  %v2885_v5 = vadd.s32 %v2883_v61, %v2877_v51 }
 0x410   : > { %v2859_v30 = vsel %vm2855_vm5, %v10577_v13, %v2858_v27  ;;  %v2906_v51 = vadd.s32 %v2900_v50, %v2896_v34  ;;  %v6556_v34 = vpop.permute.xlu0 %6555  ;;  %vm11411_vm5 = vcmask 23552   ;;  %v10798_v48 = vadd.f32 1e-08, %v10381_v32 }
 0x411   : > { %v3708_v54 = vshrl.u32 %v3690_v39, %v3706_v31  ;;  %v3711_v18 = vadd.s32 127, %v3710_v36  ;;  %v2902_v39 = vshll.u32 %v2898_v35, 16  ;;  %v2889_v43 = vadd.s32 %v2887_v4, %v2885_v5  ;;  %6593 = vst.msk [vmem:[%s8105_s14 + $0x50] sm:$0xff] %vm11411_vm5, %v6556_v34  ;;  %v11412_v35 = vld [vmem:[#allocation13_spill] sm:$0xff] }
 0x412   : > { %v2907_v31 = vadd.s32 %v2905_v52, %v2899_v37  ;;  %v1192_v36 = vmul.f32 %v10414_v3, %v1191_v26  ;;  %v750_v3 = vadd.f32 %v10693_v44, %v749_v62  ;;  %v10699_v26 = vpop.eup %7233  ;;  %v2860_v45 = vsel %vm2854_vm10, %v2857_v55, %v2859_v30 }
 0x413   : > { %v3709_v28 = vor.u32 %v3708_v54, %v3707_v40  ;;  %v3712_v53 = vshll.u32 %v3711_v18, 23  ;;  %v2890_v61 = vadd.s32 %v2889_v43, %v2879_v23  ;;  %vm2908_vm15 = vc.u32 %v2906_v51, %v2902_v39  ;;  %v11413_v23 = vld [vmem:[#allocation5_spill] sm:$0xff]  ;;  %v11415_v43 = vld [vmem:[#allocation15_spill] sm:$0xff] }
 0x414   : > { %v2909_v50 = vsel %vm2908_vm15, 1, %v11302_v9  ;;  %v1193_v54 = vmul.f32 %v1192_v36, %v11400_v14  ;;  %v1197_v18 = vand.u32 2147483648, %v11400_v14  ;;  %7235 = vtanh.f32 %v750_v3 }
 0x415   : > { %v3713_v2 = vor.u32 4788187, %v3712_v53  ;;  %v3716_v57 = vcvt.s32.f32 %v3709_v28  ;;  %v2911_v20 = vadd.s32 %v2909_v50, %v2907_v31  ;;  %v10701_v37 = vadd.s32 %v2890_v61, %v2881_v21  ;;  %v11421_v61 = vld [vmem:[#allocation18_spill] sm:$0xff] }
 0x416   : > { %v10703_v28 = vadd.s32 %v2906_v51, %v2902_v39  ;;  %v1195_v53 = vsel %vm1194_vm11, %v11400_v14, %v1193_v54  ;;  %vm11414_vm7 = vcmp.lt.f32.partialorder %v11413_v23, 1e-06  ;;  %v10719_v39 = vsel %vm10666_vm14, 0, %v3721_v58  ;;  %v11416_v51 = vld [vmem:[#allocation6_spill] sm:$0xff]  ;;  %v11419_v58 = vld [vmem:[#allocation7_spill] sm:$0xff] }
 0x417   : > { %v3714_v40 = vand.u32 2147483647, %v3713_v2  ;;  %v2912_v27 = vadd.s32 %v2911_v20, %v2901_v60  ;;  %v10713_v52 = vsel %vm11414_vm7, 1.0, %v11412_v35  ;;  %v6473_v29 = vmul.f32 %v10699_v26, %v10658_v10  ;;  %v11422_v60 = vld [vmem:[#allocation14_spill] sm:$0xff] }
 0x418   : > { %v2914_v30 = vmul.u32 %v10635_v19, %v2860_v45  ;;  %vm2916_vm12 = vc.u32 %v10701_v37, %v10703_v28  ;;  %vm11417_vm3 = vcmp.lt.f32.partialorder %v11416_v51, 1e-06  ;;  %v10762_v62 = vsel %vm11424_vm13, 1.0, %v8998_v63 }
 0x419   : > { %v3717_v13 = vmul.f32 %v3716_v57, %v3714_v40  ;;  %v10721_v57 = vsel %vm1196_vm9, %v1197_v18, %v1195_v53  ;;  %v2913_v55 = vadd.s32 %v2912_v27, %v2903_v24  ;;  %v10744_v31 = vsel %vm11417_vm3, 1.0, %v11415_v43  ;;  %v11418_v40 = vld [vmem:[#allocation16_spill] sm:$0xff]  ;;  %v11426_v53 = vld [vmem:[#allocation17_spill] sm:$0xff] }
 0x41a   : > { %vm1236_vm10 = vcmp.lt.f32.partialorder %v10721_v57, 1e-06  ;;  %v7236_v54 = vpop.eup %7235  ;;  %v3740_v18 = vadd.s32 3, %v10719_v39  ;;  %v6474_v3 = vsub.f32 1.0, %v6473_v29  ;;  %vm11427_vm15 = vcmp.lt.f32.partialorder %v11426_v53, 1e-06 }
 0x41b   : > { %v3718_v5 = vxor.u32 2147483648, %v3717_v13  ;;  %v10739_v46 = vsel %vm1236_vm10, 1.0, %v10721_v57  ;;  %v2917_v36 = vadd.s32 1, %v2913_v55  ;;  %6924 = vmatmul.msk.f32.gmra.mxu3 %vm506_vm2, %v7236_v54  ;;  %vm11429_vm11 = vcmp.lt.f32.partialorder %v11428_v11, 1e-06  ;;  %v11431_v29 = vld [vmem:[#allocation20_spill] sm:$0xff] }
 0x41c   : > { %v10752_v19 = vmul.f32 0.5, %v10739_v46  ;;  %v10775_v63 = vsel %vm11429_vm11, 1.0, %v9402_v8  ;;  %vm11432_vm5 = vcmp.lt.f32.partialorder %v11431_v29, 1e-06  ;;  %vm11433_vm9 = vcmp.lt.f32.partialorder %v9194_v1, 1e-06 }
 0x41d   : > { %v3719_v2 = vsel %vm3598_vm1, %v3718_v5, %v3717_v13  ;;  %vm11420_vm1 = vcmp.lt.f32.partialorder %v11419_v58, 1e-06  ;;  %v2918_v24 = vsel %vm2916_vm12, %v2917_v36, %v2913_v55  ;;  %v11425_v5 = vld [vmem:[#allocation21_spill] sm:$0xff]  ;;  %v10785_v43 = vsel %vm11433_vm9, 1.0, %v9821_v15 }
 0x41e   : > { %v10726_v14 = vsel %vm10666_vm14, %v10363_v6, %v3719_v2  ;;  %v10749_v21 = vsel %vm11420_vm1, 1.0, %v11418_v40  ;;  %vm11423_vm14 = vcmp.lt.f32.partialorder %v11422_v60, 1e-06  ;;  %v3289_v20 = vand.u32 2139095040, %v10752_v19  ;;  %v11430_v2 = vld [vmem:[#allocation11_spill] sm:$0xff] }
 0x41f   : > { %v3724_v4 = vmul.f32 %v10726_v14, %v10726_v14  ;;  %v10757_v13 = vsel %vm11423_vm14, 1.0, %v11421_v61  ;;  %v10769_v45 = vsel %vm11427_vm15, 1.0, %v11425_v5  ;;  %v2919_v23 = vadd.s32 %v2918_v24, %v2914_v30 }
 0x420   : > { %v10780_v55 = vsel %vm11432_vm5, 1.0, %v11430_v2  ;;  %v3290_v51 = vshrl.u32 %v3289_v20, 23  ;;  %v10790_v30 = vsel %vm1234_vm4, 1.0, %v10048_v42  ;;  %v3741_v36 = vand.u32 3, %v3740_v18 }
 0x421   : > { %v3725_v34 = vmul.f32 -0.001358992, %v3724_v4  ;;  %v3732_v50 = vmul.f32 -0.00019511016, %v3724_v4  ;;  %v2920_v8 = vadd.s32 536870912, %v2919_v23  ;;  %v6475_v61 = vmul.f32 %v10699_v26, %v6474_v3 }
 0x422   : > { %v3286_v60 = vand.u32 2147483647, %v10752_v19  ;;  %v6483_v1 = vand.u32 2147483648, %v10658_v10  ;;  %vm6477_vm7 = vweird.f32 %v10658_v10  ;;  %vm6478_vm12 = vweird.f32 %v10699_v26 }
 0x423   : > { %v3726_v27 = vadd.f32 0.041655596, %v3725_v34  ;;  %v3733_v35 = vadd.f32 0.008332121, %v3732_v50  ;;  %v6967_v34 = vadd.s32 4294967169, %v3290_v51  ;;  %v2921_v15 = vshrl.u32 %v2920_v8, 30  ;;  %vm10810_vm4 = vmor %vm6477_vm7, %vm6478_vm12 }
 0x424   : > { %v10803_v3 = vsel %vm1235_vm0, 1.0, %v10237_v41  ;;  %v6476_v53 = vadd.f32 %v10699_v26, %v6475_v61  ;;  %7237 = vrcp.f32 %v10798_v48  ;;  %vm3742_vm3 = vcmp.lt.s32.totalorder %v3741_v36, 2 }
 0x425   : > { %v3727_v40 = vmul.f32 %v3726_v27, %v3724_v4  ;;  %v3734_v58 = vmul.f32 %v3733_v35, %v3724_v4  ;;  %v3296_v42 = vadd.s32 1, %v6967_v34  ;;  %v2922_v5 = vshll.u32 %v2921_v15, 30 }
 0x426   : > { %v6481_v27 = vand.u32 2147483647, %v10658_v10  ;;  %v3293_v35 = vand.u32 8388607, %v3286_v60  ;;  %vm3743_vm1 = vcmp.eq.s32.totalorder %v3741_v36, 0  ;;  %vm3746_vm14 = vcmp.eq.s32.totalorder %v3741_v36, 2 }
 0x427   : > { %v3728_v50 = vadd.f32 -0.4999988, %v3727_v40  ;;  %v3735_v54 = vadd.f32 -0.16666654, %v3734_v58  ;;  %v2923_v41 = vsub.s32 %v2919_v23, %v2922_v5  ;;  %vm3297_vm0 = vcmp.gt.s32.totalorder %v3296_v42, 0 }
 0x428   : > { %v6205_v40 = vand.u32 3, %v10719_v39  ;;  %v6480_v58 = vsel %vm10810_vm4, %v10699_v26, %v6476_v53  ;;  %vm6482_vm15 = vcmp.eq.f32.partialorder %v6481_v27, 8.507059e+37  ;;  %v3298_v8 = vsel %vm3297_vm0, %v3296_v42, 0 }
 0x429   : > { %v3729_v24 = vmul.f32 %v3728_v50, %v3724_v4  ;;  %v3736_v20 = vmul.f32 %v3735_v54, %v3724_v4  ;;  %v6484_v4 = vor.u32 1.1754944e-38, %v6483_v1  ;;  %vm2924_vm13 = vcmp.lt.s32.totalorder %v2923_v41, 0 }
 0x42a   : > { %v2925_v51 = vsub.s32 0, %v2923_v41  ;;  %v3294_v50 = vor.u32 8388608, %v3293_v35  ;;  %v10819_v54 = vpop.eup %7237  ;;  %vm3739_vm11 = vweird.f32 %v10363_v6  ;;  %vm2823_vm5 = vcmp.lt.s32.totalorder %v10389_v22, 0 }
 0x42b   : > { %v3730_v32 = vadd.f32 1.0, %v3729_v24  ;;  %v3737_v11 = vadd.f32 1.0, %v3736_v20  ;;  %v2945_v1 = vsub.s32 4, %v2921_v15  ;;  %v6485_v18 = vsel %vm6482_vm15, %v6484_v4, %v6480_v58 }
 0x42c   : > { %v2926_v34 = vsel %vm2924_vm13, %v2925_v51, %v2923_v41  ;;  %v11437_v24 = vand.u32 2147483647, %v10389_v22  ;;  %v3300_v42 = vand.u32 31, %v3298_v8  ;;  %vm6207_vm7 = vcmp.eq.s32.totalorder %v6205_v40, 0 }
 0x42d   : > { %v3738_v29 = vmul.f32 %v3737_v11, %v10726_v14  ;;  %v3747_v10 = vxor.u32 2147483648, %v3730_v32  ;;  %v2927_v14 = vclz %v2926_v34  ;;  %vm6210_vm12 = vcmp.eq.s32.totalorder %v6205_v40, 2 }
 0x42e   : > { %vm10826_vm9 = vcmp.le.f32.partialorder %v11437_v24, 0.7853982  ;;  %vm6206_vm4 = vcmp.lt.s32.totalorder %v6205_v40, 2  ;;  %v2915_v27 = vadd.s32 %v10703_v28, %v10701_v37  ;;  %v10835_v35 = vshll.u32 %v3294_v50, 8 }
 0x42f   : > { %v3744_v61 = vxor.u32 2147483648, %v3738_v29  ;;  %v3748_v23 = vsel %vm3746_vm14, %v3747_v10, %v3738_v29  ;;  %v6959_v5 = vadd.s32 4294967294, %v2927_v14  ;;  %v2946_v2 = vsel %vm2823_vm5, %v2945_v1, %v2921_v15 }
 0x430   : > { %v6398_v36 = vmul.f32 %v10819_v54, %v10798_v48  ;;  %v6212_v51 = vsel %vm6210_vm12, %v3747_v10, %v3738_v29  ;;  %v10846_v50 = vsel %vm1230_vm8, 1.0, %v10454_v56  ;;  %v2948_v10 = vsel %vm10826_vm9, 0, %v2946_v2 }
 0x431   : > { %v3745_v39 = vsel %vm3743_vm1, %v3730_v32, %v3744_v61  ;;  %vm6960_vm0 = vcmp.lt.s32.totalorder %v6959_v5, 0  ;;  %v6209_v4 = vsel %vm6207_vm7, %v3730_v32, %v3744_v61  ;;  %v7263_v32 = vld [vmem:[%s7461_s23 + $0x78] sm:$0xff]  ;;  %v3303_v59 = vshll.u32 %v11308_v17, %v3300_v42 }
 0x432   : > { %v3749_v20 = vsel %vm3742_vm3, %v3745_v39, %v3748_v23  ;;  %v2930_v58 = vsel %vm6960_vm0, 0, %v6959_v5  ;;  %v3301_v23 = vsub.s32 32, %v3300_v42  ;;  %vm11440_vm3 = vcmp.lt.f32.partialorder %v9960_v7, 1e-06 }
 0x433   : > { %v3750_v53 = vsel %vm3739_vm11, nan, %v3749_v20  ;;  %v2931_v14 = vsub.s32 32, %v2930_v58  ;;  %v2932_v37 = vshll.u32 %v2923_v41, %v2930_v58  ;;  %v2935_v28 = vsub.s32 4294967266, %v2930_v58 }
 0x434   : > { %v6486_v11 = vmul.f32 %v6485_v18, %v3750_v53  ;;  %v10851_v15 = vsel %vm11440_vm3, 1.0, %v10602_v0  ;;  %v6213_v61 = vsel %vm6206_vm4, %v6209_v4, %v6212_v51  ;;  %v6399_v39 = vsub.f32 1.0, %v6398_v36 }
 0x435   : > { %v2933_v1 = vshrl.u32 %v2915_v27, %v2931_v14  ;;  %v2936_v41 = vadd.s32 127, %v2935_v28  ;;  %v3304_v56 = vshrl.u32 %v11305_v49, %v3301_v23  ;;  %v10861_v7 = vand.u32 65535, %v10835_v35 }
 0x436   : > { %v6502_v34 = vsel %vm1238_vm6, 0.5, %v6486_v11  ;;  %v10864_v0 = vshrl.u32 %v10835_v35, 16  ;;  %v10866_v20 = vshrl.u32 %v3298_v8, 5  ;;  %v3306_v40 = vshll.u32 %v11305_v49, %v3300_v42 }
 0x437   : > { %v6518_v29 = vmul.f32 %v7263_v32, %v6502_v34  ;;  %v2934_v18 = vor.u32 %v2933_v1, %v2932_v37  ;;  %v2937_v24 = vshll.u32 %v2936_v41, 23  ;;  %v6214_v5 = vsel %vm3739_vm11, nan, %v6213_v61  ;;  %v752_v1 = vpop.f32.mrf.mxu2  ;;  %v6562_v41 = vpop.permute.xlu0 %6561 }
 0x438   : > { %v2965_v53 = vadd.s32 3, %v2948_v10  ;;  %v3302_v27 = vshrl.u32 %v11308_v17, %v3301_v23  ;;  %v3309_v11 = vshll.u32 %v11306_v16, %v3300_v42  ;;  %v6400_v4 = vmul.f32 %v10819_v54, %v6399_v39 }
 0x439   : > { %6662 = vrot.lane.b32.xlu0 %v6518_v29, %s7340_s16  ;;  %v2938_v2 = vor.u32 4788187, %v2937_v24  ;;  %v2941_v36 = vcvt.s32.f32 %v2934_v18  ;;  %v3307_v51 = vshrl.u32 %v11306_v16, %v3301_v23  ;;  %v3305_v58 = vor.u32 %v3304_v56, %v3303_v59 }
 0x43a   : > { %v3310_v8 = vshrl.u32 %v11318_v38, %v3301_v23  ;;  %v3312_v34 = vshll.u32 %v11318_v38, %v3300_v42  ;;  %v3313_v49 = vshrl.u32 %v11307_v25, %v3301_v23  ;;  %v3315_v17 = vshll.u32 %v11307_v25, %v3300_v42 }
 0x43b   : > { %v2939_v6 = vand.u32 2147483647, %v2938_v2  ;;  %v3308_v14 = vor.u32 %v3307_v51, %v3306_v40  ;;  %v3316_v37 = vshrl.u32 %v11309_v33, %v3301_v23  ;;  %v10882_v28 = vsel %vm1238_vm6, 1.0, %v6214_v5 }
 0x43c   : > { %v3311_v32 = vor.u32 %v3310_v8, %v3309_v11  ;;  %v3314_v16 = vor.u32 %v3313_v49, %v3312_v34  ;;  %vm3318_vm8 = vcmp.lt.s32.totalorder %v10866_v20, 1  ;;  %v10885_v61 = vand.u32 3, %v2965_v53 }
 0x43d   : > { %v2942_v29 = vmul.f32 %v2941_v36, %v2939_v6  ;;  %v10887_v38 = vand.u32 3, %v2948_v10  ;;  %v3317_v39 = vor.u32 %v3316_v37, %v3315_v17  ;;  %v753_v25 = vadd.f32 %v10693_v44, %v752_v1 }
 0x43e   : > { %vm11441_vm1 = vcmask 23552   ;;  %vm3319_vm14 = vcmp.lt.s32.totalorder %v10866_v20, 2  ;;  %vm3320_vm6 = vcmp.lt.s32.totalorder %v10866_v20, 3  ;;  %vm3321_vm13 = vcmp.lt.s32.totalorder %v10866_v20, 4 }
 0x43f   : > { %6596 = vst.msk [vmem:[%s8105_s14 + $0x68] sm:$0xff] %vm11441_vm1, %v6562_v41  ;;  %v2943_v33 = vxor.u32 2147483648, %v2942_v29  ;;  %v10896_v12 = vadd.f32 %v10819_v54, %v6400_v4  ;;  %v3326_v42 = vsel %vm3318_vm8, %v3305_v58, %v3308_v14  ;;  %v3327_v23 = vsel %vm3321_vm13, %v3314_v16, 920167782 }
 0x440   : > { %v6406_v10 = vand.u32 2147483647, %v10798_v48  ;;  %7239 = vtanh.f32 %v753_v25  ;;  %v3328_v59 = vsel %vm3320_vm6, %v3311_v32, %v3327_v23  ;;  %v3330_v56 = vsel %vm3318_vm8, %v3308_v14, %v3311_v32 }
 0x441   : > { %v2944_v18 = vsel %vm2823_vm5, %v2943_v33, %v2942_v29  ;;  %v3323_v24 = vsel %vm3321_vm13, %v3311_v32, 2102212464  ;;  %v3329_v40 = vsel %vm3319_vm14, %v3326_v42, %v3328_v59  ;;  %v3331_v5 = vsel %vm3321_vm13, %v3317_v39, 1326507024 }
 0x442   : > { %v10912_v53 = vsel %vm10826_vm9, %v10389_v22, %v2944_v18  ;;  %v3332_v11 = vsel %vm3320_vm6, %v3314_v16, %v3331_v5  ;;  %v3359_v2 = vand.u32 65535, %v3329_v40  ;;  %v3360_v36 = vshrl.u32 %v3329_v40, 16 }
 0x443   : > { %v2949_v4 = vmul.f32 %v10912_v53, %v10912_v53  ;;  %v6408_v51 = vand.u32 2147483648, %v10798_v48  ;;  %v3333_v8 = vsel %vm3319_vm14, %v3330_v56, %v3332_v11  ;;  %vm6599_vm15 = vcmask 31768  }
 0x444   : > { %vm6402_vm11 = vweird.f32 %v10798_v48  ;;  %vm6403_vm5 = vweird.f32 %v10819_v54  ;;  %v10925_v26 = vsel %vm3318_vm8, %v3302_v27, %v3305_v58  ;;  %v3337_v34 = vand.u32 65535, %v3333_v8  ;;  %6601 = vst.msk [vmem:[%s8105_s14 + $0x8] sm:$0xff] %vm6599_vm15, %v10744_v31 }
 0x445   : > { %v3338_v49 = vshrl.u32 %v3333_v8, 16  ;;  %v10928_v6 = vmul.u32 %v3360_v36, %v10861_v7  ;;  %v2950_v17 = vmul.f32 -0.001358992, %v2949_v4  ;;  %v2957_v37 = vmul.f32 -0.00019511016, %v2949_v4  ;;  %6600 = vst.msk [vmem:[%s8105_s14] sm:$0xff] %vm6599_vm15, %v10713_v52  ;;  %vm10990_vm13 = vmor %vm6402_vm11, %vm6403_vm5 }
 0x446   : > { %v3324_v32 = vsel %vm3320_vm6, %v3308_v14, %v3323_v24  ;;  %v10936_v16 = vmul.u32 %v3359_v2, %v10864_v0  ;;  %v7240_v27 = vpop.eup %7239  ;;  %v3339_v58 = vmul.u32 %v3337_v34, %v10861_v7  ;;  %v10944_v1 = vmul.u32 %v3337_v34, %v10864_v0  ;;  %6602 = vst.msk [vmem:[%s8105_s14 + $0x10] sm:$0xff] %vm6599_vm15, %v10749_v21 }
 0x447   : > { %v3340_v29 = vmul.u32 %v3338_v49, %v10861_v7  ;;  %v3361_v31 = vmul.u32 %v3359_v2, %v10861_v7  ;;  %v2951_v14 = vadd.f32 0.041655596, %v2950_v17  ;;  %v2958_v41 = vadd.f32 0.008332121, %v2957_v37  ;;  %6925 = vmatmul.msk.f32.gmra.mxu3 %vm506_vm2, %v7240_v27  ;;  %6603 = vst.msk [vmem:[%s8105_s14 + $0x18] sm:$0xff] %vm6599_vm15, %v10762_v62 }
 0x448   : > { %v3364_v39 = vmul.u32 %v3360_v36, %v10864_v0  ;;  %v3365_v52 = vshll.u32 %v10928_v6, 16  ;;  %vm2971_vm9 = vcmp.eq.s32.totalorder %v10885_v61, 2  ;;  %v3342_v25 = vmul.u32 %v3338_v49, %v10864_v0  ;;  %6604 = vst.msk [vmem:[%s8105_s14 + $0x20] sm:$0xff] %vm6599_vm15, %v10757_v13 }
 0x449   : > { %v3343_v33 = vshll.u32 %v3340_v29, 16  ;;  %v3345_v7 = vshll.u32 %v10944_v1, 16  ;;  %v3366_v42 = vshrl.u32 %v10928_v6, 16  ;;  %v2952_v21 = vmul.f32 %v2951_v14, %v2949_v4  ;;  %6605 = vst.msk [vmem:[%s8105_s14 + $0x28] sm:$0xff] %vm6599_vm15, %v10769_v45 }
 0x44a   : > { %v2959_v23 = vmul.f32 %v2958_v41, %v2949_v4  ;;  %v3344_v59 = vshrl.u32 %v3340_v29, 16  ;;  %v3367_v56 = vshll.u32 %v10936_v16, 16  ;;  %vm2968_vm7 = vcmp.eq.s32.totalorder %v10885_v61, 0  ;;  %6606 = vst.msk [vmem:[%s8105_s14 + $0x30] sm:$0xff] %vm6599_vm15, %v10775_v63 }
 0x44b   : > { %vm3347_vm12 = vc.u32 %v3339_v58, %v3343_v33  ;;  %v3349_v0 = vadd.s32 %v3343_v33, %v3339_v58  ;;  %vm3369_vm4 = vc.u32 %v3361_v31, %v3365_v52  ;;  %v3371_v18 = vadd.s32 %v3365_v52, %v3361_v31  ;;  %6607 = vst.msk [vmem:[%s8105_s14 + $0x38] sm:$0xff] %vm6599_vm15, %v10846_v50  ;;  %v7264_v52 = vld [vmem:[%s7461_s23 + $0x50] sm:$0xff] }
 0x44c   : > { %v2953_v62 = vadd.f32 -0.4999988, %v2952_v21  ;;  %v2960_v24 = vadd.f32 -0.16666654, %v2959_v23  ;;  %vm2967_vm0 = vcmp.lt.s32.totalorder %v10885_v61, 2  ;;  %v3348_v40 = vsel %vm3347_vm12, 1, %v11302_v9 }
 0x44d   : > { %v3370_v13 = vsel %vm3369_vm4, 1, %v11302_v9  ;;  %v3350_v5 = vadd.s32 %v3348_v40, %v3342_v25  ;;  %vm3351_vm3 = vc.u32 %v3349_v0, %v3345_v7  ;;  %vm3373_vm8 = vc.u32 %v3371_v18, %v3367_v56  ;;  %6608 = vst.msk [vmem:[%s8105_s14 + $0x40] sm:$0xff] %vm6599_vm15, %v10780_v55 }
 0x44e   : > { %v3372_v11 = vadd.s32 %v3370_v13, %v3364_v39  ;;  %v2954_v2 = vmul.f32 %v2953_v62, %v2949_v4  ;;  %v2961_v36 = vmul.f32 %v2960_v24, %v2949_v4  ;;  %v3352_v45 = vsel %vm3351_vm3, 1, %v11302_v9  ;;  %6609 = vst.msk [vmem:[%s8105_s14 + $0x48] sm:$0xff] %vm6599_vm15, %v10785_v43 }
 0x44f   : > { %v3374_v8 = vsel %vm3373_vm8, 1, %v11302_v9  ;;  %v3346_v34 = vshrl.u32 %v10944_v1, 16  ;;  %v3354_v49 = vadd.s32 %v3352_v45, %v3350_v5  ;;  %v3368_v6 = vshrl.u32 %v10936_v16, 16  ;;  %6611 = vst.msk [vmem:[%s8105_s14 + $0x58] sm:$0xff] %vm6599_vm15, %v10790_v30 }
 0x450   : > { %v3376_v17 = vadd.s32 %v3374_v8, %v3372_v11  ;;  %v2955_v63 = vadd.f32 1.0, %v2954_v2  ;;  %v2962_v4 = vadd.f32 1.0, %v2961_v36  ;;  %vm5436_vm1 = vcmp.lt.s32.totalorder %v10887_v38, 2  ;;  %6612 = vst.msk [vmem:[%s8105_s14 + $0x60] sm:$0xff] %vm6599_vm15, %v10803_v3  ;;  %v755_v8 = vpop.f32.mrf.mxu2 }
 0x451   : > { %vm5440_vm6 = vcmp.eq.s32.totalorder %v10887_v38, 2  ;;  %v3325_v55 = vsel %vm3319_vm14, %v10925_v26, %v3324_v32  ;;  %v3355_v50 = vadd.s32 %v3354_v49, %v3344_v59  ;;  %v3375_v37 = vadd.s32 %v3371_v18, %v3367_v56  ;;  %6614 = vst.msk [vmem:[%s8105_s14 + $0x70] sm:$0xff] %vm6599_vm15, %v10851_v15 }
 0x452   : > { %v3377_v16 = vadd.s32 %v3376_v17, %v3366_v42  ;;  %v2963_v27 = vmul.f32 %v2962_v4, %v10912_v53  ;;  %v2972_v58 = vxor.u32 2147483648, %v2955_v63  ;;  %vm5437_vm11 = vcmp.eq.s32.totalorder %v10887_v38, 0  ;;  %6615 = vst.msk [vmem:[%s8105_s14 + $0x78] sm:$0xff] %vm6599_vm15, %v10882_v28 }
 0x453   : > { %v6409_v29 = vor.u32 1.1754944e-38, %v6408_v51  ;;  %v6405_v43 = vsel %vm10990_vm13, %v10819_v54, %v10896_v12  ;;  %vm6407_vm14 = vcmp.eq.f32.partialorder %v6406_v10, 8.507059e+37  ;;  %v3356_v30 = vadd.s32 %v3355_v50, %v3346_v34  ;;  %v11048_v34 = vpop.f32.mrf.mxu3 }
 0x454   : > { %v3378_v20 = vadd.s32 %v3377_v16, %v3368_v6  ;;  %v2969_v53 = vxor.u32 2147483648, %v2963_v27  ;;  %v2973_v51 = vsel %vm2971_vm9, %v2972_v58, %v2963_v27  ;;  %v5442_v3 = vsel %vm5440_vm6, %v2972_v58, %v2963_v27 }
 0x455   : > { %v3379_v26 = vmul.u32 %v10835_v35, %v3325_v55  ;;  %vm2964_vm5 = vweird.f32 %v10389_v22  ;;  %vm3381_vm12 = vc.u32 %v3356_v30, %v3375_v37  ;;  %v6410_v12 = vsel %vm6407_vm14, %v6409_v29, %v6405_v43  ;;  %v6635_v29 = vpop.permute.xlu2 %6634 }
 0x456   : > { %v3382_v48 = vadd.s32 1, %v3378_v20  ;;  %v2970_v54 = vsel %vm2968_vm7, %v2955_v63, %v2969_v53  ;;  %v5439_v15 = vsel %vm5437_vm11, %v2955_v63, %v2969_v53  ;;  %vm11444_vm9 = vcmp.lt.f32.partialorder %v10367_v47, 1e-06 }
 0x457   : > { %v2974_v10 = vsel %vm2967_vm0, %v2970_v54, %v2973_v51  ;;  %v5443_v35 = vsel %vm5436_vm1, %v5439_v15, %v5442_v3  ;;  %vm11445_vm7 = vmmov %vm11444_vm9  ;;  %v3380_v59 = vadd.s32 %v3375_v37, %v3356_v30  ;;  %v11045_v40 = vadd.f32 1e-08, %v10739_v46  ;;  %v11062_v37 = vld [vmem:[%s11231_s8] ss:$0 sm:$0xff]  ;;  %v6633_v51 = vpop.permute.xlu0 %6632 }
 0x458   : > { %v3383_v28 = vsel %vm3381_vm12, %v3382_v48, %v3378_v20  ;;  %v2975_v32 = vsel %vm2964_vm5, nan, %v2974_v10  ;;  %v5444_v1 = vsel %vm2964_vm5, nan, %v5443_v35  ;;  %vm3288_vm3 = vcmp.lt.s32.totalorder %v10752_v19, 0  ;;  %v758_v58 = vpop.f32.mrf.mxu2 }
 0x459   : > { %v3384_v22 = vadd.s32 %v3383_v28, %v3379_v26  ;;  %v6225_v31 = vsel %vm11444_vm9, 1.0, %v5444_v1  ;;  %v6411_v14 = vmul.f32 %v6410_v12, %v2975_v32  ;;  %7241 = vrcp.f32 %v11045_v40 }
 0x45a   : > { %6610 = vst.msk [vmem:[%s8105_s14 + $0x50] sm:$0xff] %vm6599_vm15, %v6225_v31  ;;  %v756_v6 = vadd.f32 %v10693_v44, %v755_v8  ;;  %vm3287_vm8 = vcmp.le.f32.partialorder %v3286_v60, 0.7853982  ;;  %vm6680_vm1 = vcmask 56352   ;;  %v759_v20 = vadd.f32 %v10693_v44, %v758_v58 }
 0x45b   : > { %v3385_v41 = vadd.s32 536870912, %v3384_v22  ;;  %v6497_v39 = vsel %vm11445_vm7, 0.5, %v6411_v14  ;;  %6682 = vst.msk [vmem:[%s8105_s14 + $0x8] sm:$0xff] %vm6680_vm1, %v6635_v29  ;;  %v857_v53 = vpop.f32.mrf.mxu3  ;;  %vm6447_vm6 = vweird.f32 %v11045_v40  ;;  %v6453_v31 = vand.u32 2147483648, %v11045_v40 }
 0x45c   : > { %v6513_v61 = vmul.f32 %v7264_v52, %v6497_v39  ;;  %7243 = vtanh.f32 %v756_v6  ;;  %v858_v48 = vadd.f32 %v11062_v37, %v857_v53  ;;  %6681 = vst.msk [vmem:[%s8105_s14] sm:$0xff] %vm6680_vm1, %v6633_v51 }
 0x45d   : > { %v3386_v25 = vshrl.u32 %v3385_v41, 30  ;;  %7245 = vtanh.f32 %v759_v20  ;;  %v6641_v14 = vpop.permute.xlu2 %6640  ;;  %v6637_v41 = vpop.permute.xlu1 %6636 }
 0x45e   : > { %6652 = vrot.lane.b32.xlu2 %v6513_v61, %s7340_s16  ;;  %6715 = vrot.lane.b32.xlu1 %v858_v48, %s7341_s17  ;;  %v6451_v61 = vand.u32 2147483647, %v11045_v40  ;;  %6685 = vst.msk [vmem:[%s8105_s14 + $0x20] sm:$0xff] %vm6680_vm1, %v6641_v14 }
 0x45f   : > { %v3387_v38 = vshll.u32 %v3386_v25, 30  ;;  %v3410_v49 = vsub.s32 4, %v3386_v25  ;;  %v11052_v17 = vpop.eup %7241  ;;  %6683 = vst.msk [vmem:[%s8105_s14 + $0x10] sm:$0xff] %vm6680_vm1, %v6637_v41 }
 0x460   : > { %v6443_v55 = vmul.f32 %v11052_v17, %v11045_v40  ;;  %vm6448_vm13 = vweird.f32 %v11052_v17 }
 0x461   : > { %v3388_v33 = vsub.s32 %v3384_v22, %v3387_v38  ;;  %v3411_v4 = vsel %vm3288_vm3, %v3410_v49, %v3386_v25  ;;  %v6639_v38 = vpop.permute.xlu0 %6638  ;;  %vm11082_vm11 = vmor %vm6447_vm6, %vm6448_vm13 }
 0x462   : > { %v3413_v16 = vsel %vm3287_vm8, 0, %v3411_v4  ;;  %v7244_v43 = vpop.eup %7243  ;;  %v6444_v30 = vsub.f32 1.0, %v6443_v55  ;;  %6684 = vst.msk [vmem:[%s8105_s14 + $0x18] sm:$0xff] %vm6680_vm1, %v6639_v38 }
 0x463   : > { %vm3389_vm4 = vcmp.lt.s32.totalorder %v3388_v33, 0  ;;  %v3390_v7 = vsub.s32 0, %v3388_v33  ;;  %6926 = vmatmul.msk.f32.gmra.mxu3 %vm506_vm2, %v7244_v43  ;;  %v3430_v54 = vadd.s32 3, %v3413_v16  ;;  %v5897_v32 = vand.u32 3, %v3413_v16  ;;  %v7246_v39 = vpop.eup %7245  ;;  %v860_v25 = vpop.f32.mrf.mxu3 }
 0x464   : > { %v6445_v44 = vmul.f32 %v11052_v17, %v6444_v30 }
 0x465   : > { %v3391_v42 = vsel %vm3389_vm4, %v3390_v7, %v3388_v33  ;;  %v3431_v28 = vand.u32 3, %v3430_v54  ;;  %vm5902_vm5 = vcmp.eq.s32.totalorder %v5897_v32, 2  ;;  %vm5899_vm7 = vcmp.eq.s32.totalorder %v5897_v32, 0 }
 0x466   : > { %v3392_v21 = vclz %v3391_v42  ;;  %v6446_v52 = vadd.f32 %v11052_v17, %v6445_v44  ;;  %vm5898_vm4 = vcmp.lt.s32.totalorder %v5897_v32, 2 }
 0x467   : > { %vm3436_vm14 = vcmp.eq.s32.totalorder %v3431_v28, 2  ;;  %vm3432_vm12 = vcmp.lt.s32.totalorder %v3431_v28, 2  ;;  %vm3433_vm9 = vcmp.eq.s32.totalorder %v3431_v28, 0 }
 0x468   : > { %v6968_v23 = vadd.s32 4294967294, %v3392_v21  ;;  %v861_v21 = vadd.f32 %v11062_v37, %v860_v25 }
 0x469   : > { %v6645_v8 = vpop.permute.xlu0 %6644 }
 0x46a   : > { %vm6969_vm0 = vcmp.lt.s32.totalorder %v6968_v23, 0  ;;  %6717 = vrot.lane.b32.xlu0 %v861_v21, %s7341_s17  ;;  %6687 = vst.msk [vmem:[%s8105_s14 + $0x30] sm:$0xff] %vm6680_vm1, %v6645_v8 }
 0x46b   : > { %v3395_v56 = vsel %vm6969_vm0, 0, %v6968_v23  ;;  %6927 = vmatmul.msk.f32.gmra.mxu3 %vm506_vm2, %v7246_v39  ;;  %vm6452_vm2 = vcmp.eq.f32.partialorder %v6451_v61, 8.507059e+37  ;;  %vm3429_vm0 = vweird.f32 %v10752_v19 }
 0x46c   : > { %v3396_v0 = vsub.s32 32, %v3395_v56  ;;  %v3397_v18 = vshll.u32 %v3388_v33, %v3395_v56  ;;  %v3400_v62 = vsub.s32 4294967266, %v3395_v56  ;;  %v6454_v56 = vor.u32 1.1754944e-38, %v6453_v31 }
 0x46e   : > { %v3398_v47 = vshrl.u32 %v3380_v59, %v3396_v0  ;;  %v3401_v24 = vadd.s32 127, %v3400_v62  ;;  %v6450_v0 = vsel %vm11082_vm11, %v11052_v17, %v6446_v52 }
 0x470   : > { %v3399_v13 = vor.u32 %v3398_v47, %v3397_v18  ;;  %v3402_v5 = vshll.u32 %v3401_v24, 23 }
 0x472   : > { %v3403_v11 = vor.u32 4788187, %v3402_v5  ;;  %v3406_v2 = vcvt.s32.f32 %v3399_v13  ;;  %v6455_v13 = vsel %vm6452_vm2, %v6454_v56, %v6450_v0  ;;  %v6647_v5 = vpop.permute.xlu2 %6646 }
 0x473   : > { %6688 = vst.msk [vmem:[%s8105_s14 + $0x38] sm:$0xff] %vm6680_vm1, %v6647_v5 }
 0x474   : > { %v3404_v36 = vand.u32 2147483647, %v3403_v11  ;;  %v6643_v11 = vpop.permute.xlu1 %6642 }
 0x475   : > { %6686 = vst.msk [vmem:[%s8105_s14 + $0x28] sm:$0xff] %vm6680_vm1, %v6643_v11 }
 0x476   : > { %v3407_v45 = vmul.f32 %v3406_v2, %v3404_v36 }
 0x478   : > { %v3408_v46 = vxor.u32 2147483648, %v3407_v45 }
 0x47a   : > { %v3409_v63 = vsel %vm3288_vm3, %v3408_v46, %v3407_v45  ;;  %v863_v45 = vpop.f32.mrf.mxu3 }
 0x47b   : > { %v3412_v9 = vsel %vm3287_vm8, %v10752_v19, %v3409_v63  ;;  %v7265_v63 = vld [vmem:[%s7461_s23 + $0x68] sm:$0xff]  ;;  %v864_v58 = vadd.f32 %v11062_v37, %v863_v45  ;;  %s7029_s23 = sshll.u32 %s7415_s13, 7 }
 0x47c   : > { %v3414_v50 = vmul.f32 %v3412_v9, %v3412_v9  ;;  %v6649_v16 = vpop.permute.xlu1 %6648  ;;  %s6790_s22 = scalar_lea.hbm %s11232_s9, %s7029_s23  ;;  %s7286_s23 = scalar_lea.hbm %s11232_s9, 256 }
 0x47d   : > { %6689 = vst.msk [vmem:[%s8105_s14 + $0x40] sm:$0xff] %vm6680_vm1, %v6649_v16  ;;  %s6793_s24 = sshll.u32 %s6790_s22, 4  ;;  %s6794_s24 = int_to_ptr.hbm [resolvable:$true] %s6793_s24 }
 0x47e   : > { %v3415_v27 = vmul.f32 -0.001358992, %v3414_v50  ;;  %v3422_v60 = vmul.f32 -0.00019511016, %v3414_v50  ;;  %s7280_s27 = sshra.s32 %s6794_s24, 4  ;;  %s7281_s27 = int_to_ptr.hbm [resolvable:$true] %s7280_s27 }
 0x47f   : > { %s7282_s29 = scalar_lea.hbm %s7281_s27, 128  ;;  %p7287_p0 = scmp.lt.s32.totalorder %s7281_s27, %s11232_s9 }
 0x480   : > { %v3416_v3 = vadd.f32 0.041655596, %v3415_v27  ;;  %v3423_v26 = vadd.f32 0.008332121, %v3422_v60  ;;  %v6651_v27 = vpop.permute.xlu0 %6650  ;;  %p7283_p11 = scmp.ne.s32.totalorder %s7281_s27, %s7282_s29  ;;  %p7288_p1 = scmp.lt.s32.totalorder %s7286_s23, %s7282_s29 }
 0x481   : > { %6690 = vst.msk [vmem:[%s8105_s14 + $0x48] sm:$0xff] %vm6680_vm1, %v6651_v27 }
 0x482   : > { %v3417_v15 = vmul.f32 %v3416_v3, %v3414_v50  ;;  %v3424_v12 = vmul.f32 %v3423_v26, %v3414_v50  ;;  %p7284_p12 = pnand %p7283_p11, %p7432_p5  ;;  %p7289_p2 = por %p7288_p1, %p7287_p0 }
 0x484   : > { %v3418_v10 = vadd.f32 -0.4999988, %v3417_v15  ;;  %v3425_v35 = vadd.f32 -0.16666654, %v3424_v12  ;;  %v6655_v53 = vpop.permute.xlu1 %6654  ;;  %p7285_p13 = pneg %p7284_p12 }
 0x485   : > { %6692 = vst.msk [vmem:[%s8105_s14 + $0x58] sm:$0xff] %vm6680_vm1, %v6655_v53 }
 0x486   : > { %v3419_v1 = vmul.f32 %v3418_v10, %v3414_v50  ;;  %v3426_v22 = vmul.f32 %v3425_v35, %v3414_v50  ;;  %v855_v50 = vadd.f32 %v11062_v37, %v11048_v34  ;;  %p7290_p3 = pnand %p7289_p2, %p7285_p13 }
 0x488   : > { %v3420_v33 = vadd.f32 1.0, %v3419_v1  ;;  %v3427_v7 = vadd.f32 1.0, %v3426_v22  ;;  %v6657_v51 = vpop.permute.xlu0 %6656 }
 0x489   : > { %6693 = vst.msk [vmem:[%s8105_s14 + $0x60] sm:$0xff] %vm6680_vm1, %v6657_v51 }
 0x48a   : > { %v3428_v23 = vmul.f32 %v3427_v7, %v3412_v9  ;;  %v3437_v59 = vxor.u32 2147483648, %v3420_v33  ;;  %v866_v9 = vpop.f32.mrf.mxu3 }
 0x48b   : > { %v867_v55 = vadd.f32 %v11062_v37, %v866_v9 }
 0x48c   : > { %v3434_v18 = vxor.u32 2147483648, %v3428_v23  ;;  %v3438_v62 = vsel %vm3436_vm14, %v3437_v59, %v3428_v23  ;;  %v5904_v47 = vsel %vm5902_vm5, %v3437_v59, %v3428_v23  ;;  %v6661_v48 = vpop.permute.xlu1 %6660 }
 0x48d   : > { %6721 = vrot.lane.b32.xlu1 %v867_v55, %s7341_s17  ;;  %6695 = vst.msk [vmem:[%s8105_s14 + $0x70] sm:$0xff] %vm6680_vm1, %v6661_v48 }
 0x48e   : > { %v3435_v24 = vsel %vm3433_vm9, %v3420_v33, %v3434_v18  ;;  %v5901_v40 = vsel %vm5899_vm7, %v3420_v33, %v3434_v18 }
 0x48f   : > { %v3439_v2 = vsel %vm3432_vm12, %v3435_v24, %v3438_v62  ;;  %v5905_v36 = vsel %vm5898_vm4, %v5901_v40, %v5904_v47 }
 0x490   : > { %v3440_v49 = vsel %vm3429_vm0, nan, %v3439_v2  ;;  %v5906_v6 = vsel %vm3429_vm0, nan, %v5905_v36 }
 0x491   : > { %v6228_v19 = vsel %vm1236_vm10, 1.0, %v5906_v6  ;;  %v6456_v17 = vmul.f32 %v6455_v13, %v3440_v49 }
 0x492   : > { %6613 = vst.msk [vmem:[%s8105_s14 + $0x68] sm:$0xff] %vm6599_vm15, %v6228_v19  ;;  %v869_v57 = vpop.f32.mrf.mxu3 }
 0x493   : > { %v6500_v46 = vsel %vm1236_vm10, 0.5, %v6456_v17  ;;  %v870_v60 = vadd.f32 %v11062_v37, %v869_v57  ;;  %vm6761_vm10 = vcmask 105528  }
 0x494   : > { %v6516_v4 = vmul.f32 %v7265_v63, %v6500_v46 }
 0x495   : > { %6723 = vrot.lane.b32.xlu0 %v870_v60, %s7341_s17 }
 0x496   : > { %6658 = vrot.lane.b32.xlu2 %v6516_v4, %s7340_s16 }
 0x49a   : > { %v872_v34 = vpop.f32.mrf.mxu3 }
 0x49b   : > { %v873_v29 = vadd.f32 %v11062_v37, %v872_v34 }
 0x49e   : > { %6713 = vrot.lane.b32.xlu2 %v855_v50, %s7341_s17 }
 0x4a2   : > { %v875_v43 = vpop.f32.mrf.mxu3 }
 0x4a3   : > { %v876_v30 = vadd.f32 %v11062_v37, %v875_v43 }
 0x4a5   : > { %6727 = vrot.lane.b32.xlu1 %v876_v30, %s7341_s17 }
 0x4a6   : > { %6719 = vrot.lane.b32.xlu2 %v864_v58, %s7341_s17 }
 0x4aa   : > { %v878_v3 = vpop.f32.mrf.mxu3 }
 0x4ab   : > { %v879_v26 = vadd.f32 %v11062_v37, %v878_v3  ;;  %v6663_v54 = vpop.permute.xlu0 %6662 }
 0x4ac   : > { %6696 = vst.msk [vmem:[%s8105_s14 + $0x78] sm:$0xff] %vm6680_vm1, %v6663_v54 }
 0x4ad   : > { %6729 = vrot.lane.b32.xlu0 %v879_v26, %s7341_s17 }
 0x4ae   : > { %6725 = vrot.lane.b32.xlu2 %v873_v29, %s7341_s17 }
 0x4b2   : > { %v881_v15 = vpop.f32.mrf.mxu3 }
 0x4b3   : > { %v882_v12 = vadd.f32 %v11062_v37, %v881_v15 }
 0x4b6   : > { %6731 = vrot.lane.b32.xlu2 %v882_v12, %s7341_s17 }
 0x4b8   : > { %v6653_v20 = vpop.permute.xlu2 %6652 }
 0x4b9   : > { %6691 = vst.msk [vmem:[%s8105_s14 + $0x50] sm:$0xff] %vm6680_vm1, %v6653_v20 }
 0x4ba   : > { %v884_v44 = vpop.f32.mrf.mxu3 }
 0x4bb   : > { %v885_v10 = vadd.f32 %v11062_v37, %v884_v44 }
 0x4bd   : > { %6733 = vrot.lane.b32.xlu1 %v885_v10, %s7341_s17 }
 0x4c2   : > { %v887_v35 = vpop.f32.mrf.mxu3 }
 0x4c3   : > { %v888_v28 = vadd.f32 %v11062_v37, %v887_v35 }
 0x4c5   : > { %6735 = vrot.lane.b32.xlu0 %v888_v28, %s7341_s17 }
 0x4ca   : > { %v890_v1 = vpop.f32.mrf.mxu3 }
 0x4cb   : > { %v891_v22 = vadd.f32 %v11062_v37, %v890_v1 }
 0x4cd   : > { %6737 = vrot.lane.b32.xlu2 %v891_v22, %s7341_s17 }
 0x4d0   : > { %v6716_v31 = vpop.permute.xlu1 %6715 }
 0x4d1   : > { %6763 = vst.msk [vmem:[%s8105_s14 + $0x8] sm:$0xff] %vm6761_vm10, %v6716_v31 }
 0x4d2   : > { %v893_v41 = vpop.f32.mrf.mxu3 }
 0x4d3   : > { %v894_v39 = vadd.f32 %v11062_v37, %v893_v41 }
 0x4d5   : > { %6739 = vrot.lane.b32.xlu1 %v894_v39, %s7341_s17 }
 0x4dc   : > { %v6718_v52 = vpop.permute.xlu0 %6717 }
 0x4dd   : > { %6764 = vst.msk [vmem:[%s8105_s14 + $0x10] sm:$0xff] %vm6761_vm10, %v6718_v52 }
 0x4e6   : > { %v896_v25 = vpop.f32.mrf.mxu3 }
 0x4e7   : > { %v897_v38 = vadd.f32 %v11062_v37, %v896_v25 }
 0x4e9   : > { %6741 = vrot.lane.b32.xlu0 %v897_v38, %s7341_s17 }
 0x4ee   : > { %v899_v7 = vpop.f32.mrf.mxu3 }
 0x4ef   : > { %v900_v42 = vadd.f32 %v11062_v37, %v899_v7 }
 0x4f0   : > { %v6659_v32 = vpop.permute.xlu2 %6658 }
 0x4f1   : > { %6694 = vst.msk [vmem:[%s8105_s14 + $0x68] sm:$0xff] %vm6680_vm1, %v6659_v32  ;;  %6743 = vrot.lane.b32.xlu2 %v900_v42, %s7341_s17 }
 0x4f8   : > { %v6714_v14 = vpop.permute.xlu2 %6713 }
 0x4f9   : > { %6762 = vst.msk [vmem:[%s8105_s14] sm:$0xff] %vm6761_vm10, %v6714_v14 }
 0x4ff   : > { %v6722_v21 = vpop.permute.xlu1 %6721 }
 0x500   : > { %v6720_v61 = vpop.permute.xlu2 %6719  ;;  %6766 = vst.msk [vmem:[%s8105_s14 + $0x20] sm:$0xff] %vm6761_vm10, %v6722_v21 }
 0x501   : > { %6765 = vst.msk [vmem:[%s8105_s14 + $0x18] sm:$0xff] %vm6761_vm10, %v6720_v61 }
 0x507   : > { %v6724_v23 = vpop.permute.xlu0 %6723 }
 0x508   : > { %v6726_v33 = vpop.permute.xlu2 %6725  ;;  %6767 = vst.msk [vmem:[%s8105_s14 + $0x28] sm:$0xff] %vm6761_vm10, %v6724_v23 }
 0x509   : > { %6768 = vst.msk [vmem:[%s8105_s14 + $0x30] sm:$0xff] %vm6761_vm10, %v6726_v33 }
 0x510   : > { %v6732_v56 = vpop.permute.xlu2 %6731 }
 0x511   : > { %6771 = vst.msk [vmem:[%s8105_s14 + $0x48] sm:$0xff] %vm6761_vm10, %v6732_v56 }
 0x517   : > { %v6728_v59 = vpop.permute.xlu1 %6727 }
 0x518   : > { %6769 = vst.msk [vmem:[%s8105_s14 + $0x38] sm:$0xff] %vm6761_vm10, %v6728_v59 }
 0x51f   : > { %v6730_v37 = vpop.permute.xlu0 %6729 }
 0x520   : > { %6770 = vst.msk [vmem:[%s8105_s14 + $0x40] sm:$0xff] %vm6761_vm10, %v6730_v37 }
 0x527   : > { %v6738_v0 = vpop.permute.xlu2 %6737 }
 0x528   : > { %6774 = vst.msk [vmem:[%s8105_s14 + $0x60] sm:$0xff] %vm6761_vm10, %v6738_v0 }
 0x52f   : > { %v6734_v18 = vpop.permute.xlu1 %6733 }
 0x530   : > { %6772 = vst.msk [vmem:[%s8105_s14 + $0x50] sm:$0xff] %vm6761_vm10, %v6734_v18 }
 0x537   : > { %v6736_v62 = vpop.permute.xlu0 %6735 }
 0x538   : > { %6773 = vst.msk [vmem:[%s8105_s14 + $0x58] sm:$0xff] %vm6761_vm10, %v6736_v62 }
 0x547   : > { %v6740_v24 = vpop.permute.xlu1 %6739 }
 0x548   : > { %6775 = vst.msk [vmem:[%s8105_s14 + $0x68] sm:$0xff] %vm6761_vm10, %v6740_v24 }
 0x54b   : > { %v6744_v47 = vpop.permute.xlu2 %6743 }
 0x54c   : > { %6777 = vst.msk [vmem:[%s8105_s14 + $0x78] sm:$0xff] %vm6761_vm10, %v6744_v47 }
 0x55b   : > { %v6742_v40 = vpop.permute.xlu0 %6741 }
 0x55c   : > { %6776 = vst.msk [vmem:[%s8105_s14 + $0x70] sm:$0xff] %vm6761_vm10, %v6742_v40 }
 0x55d   : > { %7293 = shalt.err (!%p7290_p3)
}
 0x55e   : > { %s7342_s28 = smov 128   ;;  %s7343_s14 = smov 8  }
 0x55f   : > { %7030 = dma.vmem_to_hbm [thread:$0]  (%p7432_p5), %s6792_s25, 2048, %s6794_s24, %s6779_s26, %s7342_s28, %s7342_s28, %s7343_s14  }
 0x560 PF: > { %p7036_p4 = scmp.ge.s32.totalorder %s7328_s12, 2  ;;  %s6808_s22 = sand.u32 1, %s7316_s30  }
 0x561   : > { %s6809_s13 = scalar_lea.sflag [#allocation3], %s6808_s22 }
 0x562   : > { %p7033_p7 = pnand %p7036_p4, %p7436_p6 }
 0x564   : > { %p7034_p8 = pneg %p7033_p7 }
 0x566   : > { %7311 = dma.done.wait (%p7034_p8), %s6809_s13, 2048  }
 0x567   : > { %7313 = vsyncadd (%p7034_p8), %s6809_s13, 4294965248  ;;  %p19_p9 = scmp.ge.s32.totalorder %s7419_s15, 4   ;;  %s11448_s30 = smov %s7320_s10 }
 0x568   : > { %s11449_s10 = smov %s7324_s11  ;;  %s11450_s11 = smov %s7430_s18 }
 0x569   : > { %s11451_s12 = smov %s7419_s15  ;;  %21 = sbr.rel (!%p19_p9) target bundleno = 3 (0x3), region = 91 }
 0x56e   :  { %6815 = vsyncpa [#allocation3], 1 }
 0x56f   :  { %6817 = vsyncpa [#allocation3 + $0x1], 1 }

</bundles_post_ra>
